<compile_context>
chip_gen: v5e
topology: v5e:2x2
jax: 0.10.0
libtpu: 0.0.40
codegen_flags: <defaults>
</compile_context>

<pallas_src>
import jax
import jax.numpy as jnp
from jax.experimental import pallas as pl
from jax.experimental.pallas import tpu as pltpu


def _round_up(x, m):
    return ((x + m - 1) // m) * m


def _disc_mlp_kernel(x_ref, lab_ref, w1i_ref, w1l_ref, b1_ref,
                     w2_ref, b2_ref, w3_ref, b3_ref, w4_ref, b4_ref, o_ref):
    def leaky(h):
        return jnp.maximum(h, 0.2 * h)          # 2 VPU ops (no cmp+select)

    x = x_ref[...].astype(jnp.bfloat16)          # f32 stream, bf16 cast on VPU
    labels = lab_ref[...]                        # (TB, 1) int32
    tb = x.shape[0]
    nc = w1l_ref.shape[0]

    # Embedding folded into layer 1: one_hot(labels) @ (emb @ W1_emb).
    col = jax.lax.broadcasted_iota(jnp.int32, (tb, nc), 1)
    one_hot = (labels == col).astype(w1l_ref.dtype)          # exact 0/1 bf16

    # Layer 1: aligned K=d_pad image matmul + tiny K=nc folded label matmul.
    h = jnp.dot(x, w1i_ref[...], preferred_element_type=jnp.float32)
    h = h + jnp.dot(one_hot, w1l_ref[...], preferred_element_type=jnp.float32)
    h = leaky(h + b1_ref[...])

    # Layer 2 (Dropout(0.4) -> identity in eval).
    h = leaky(jnp.dot(h.astype(w2_ref.dtype), w2_ref[...],
                      preferred_element_type=jnp.float32) + b2_ref[...])

    # Layer 3 (Dropout(0.4) -> identity in eval).
    h = leaky(jnp.dot(h.astype(w3_ref.dtype), w3_ref[...],
                      preferred_element_type=jnp.float32) + b3_ref[...])

    # Output layer (zero-padded to 128 lanes for a dense store).
    h = jnp.dot(h.astype(w4_ref.dtype), w4_ref[...],
                preferred_element_type=jnp.float32) + b4_ref[...]
    o_ref[...] = jax.nn.sigmoid(h)


def discriminator_label_forward(img, labels, params):
    """img: (B, C, H, W) float32, labels: (B,) int.  Returns (B, n_classes)."""
    B = img.shape[0]
    w1_img, w1_lab = params["w1_img"], params["w1_lab"]
    w2, w3, w4 = params["w2"], params["w3"], params["w4"]
    b1, b2, b3, b4 = params["b1"], params["b2"], params["b3"], params["b4"]

    n_classes = w1_lab.shape[0]
    d_pad = w1_img.shape[0]
    hidden = w1_img.shape[1]
    n_pad = w4.shape[1]

    img_flat = img.reshape(B, -1)                # f32 view; bf16 cast in-kernel
    d_img = img_flat.shape[1]
    labels2d = labels.reshape(B, 1).astype(jnp.int32)

    # Batch tile: multiple of 16 (bf16 sublane packing), capped at 512.
    tb = min(512, _round_up(B, 16))

    # Only tiny batches need an explicit row pad (block must fit the array);
    # larger batches rely on Pallas masking of the partial tail block.
    row_pad = tb - B if B < tb else 0
    col_pad = d_pad - d_img
    if row_pad or col_pad:
        img_flat = jnp.pad(img_flat, ((0, row_pad), (0, col_pad)))
    if row_pad:
        labels2d = jnp.pad(labels2d, ((0, row_pad), (0, 0)))
    b_arr = B + row_pad

    grid = (pl.cdiv(b_arr, tb),)
    row = lambda i: (i, 0)       # activations / outputs stream over the batch
    const = lambda i: (0, 0)     # weights: block index never changes

    def build_specs(single_buffer):
        kw = dict(pipeline_mode=pl.Buffered(1)) if single_buffer else {}
        wspec = lambda shape: pl.BlockSpec(shape, const, **kw)
        in_specs = [
            pl.BlockSpec((tb, d_pad), row),
            pl.BlockSpec((tb, 1), row),
            wspec((d_pad, hidden)),
            wspec((n_classes, hidden)),
            wspec((1, hidden)),
            wspec((hidden, hidden)),
            wspec((1, hidden)),
            wspec((hidden, hidden)),
            wspec((1, hidden)),
            wspec((hidden, n_pad)),
            wspec((1, n_pad)),
        ]
        out_specs = pl.BlockSpec((tb, n_pad), row)
        return in_specs, out_specs

    # VMEM budget: resident weights (single buffer), double-buffered streamed
    # tiles, plus headroom for live activations / compiler scratch.
    bytes_weights = sum(int(a.size) * a.dtype.itemsize
                        for a in (w1_img, w1_lab, w2, w3, w4, b1, b2, b3, b4))
    bytes_stream = 2 * (tb * d_pad * 4 + tb * 128 * 4 + tb * n_pad * 4)
    bytes_live = 8 * tb * hidden * 4
    vmem_limit = int(min(max(bytes_weights + bytes_stream + bytes_live
                             + (4 << 20), 16 << 20), 64 << 20))

    flops = 2 * b_arr * (d_pad * hidden + n_classes * hidden
                         + 2 * hidden * hidden + hidden * n_pad)
    bytes_accessed = (bytes_weights + int(img_flat.size) * 4
                      + int(labels2d.size) * 4 + b_arr * n_pad * 4)
    cost = pl.CostEstimate(flops=flops, transcendentals=b_arr * n_pad,
                           bytes_accessed=bytes_accessed)

    def run(single_buffer):
        in_specs, out_specs = build_specs(single_buffer)
        return pl.pallas_call(
            _disc_mlp_kernel,
            out_shape=jax.ShapeDtypeStruct((b_arr, n_pad), jnp.float32),
            grid=grid,
            in_specs=in_specs,
            out_specs=out_specs,
            compiler_params=pltpu.CompilerParams(
                dimension_semantics=("parallel",),
                vmem_limit_bytes=vmem_limit,
            ),
            cost_estimate=cost,
        )(img_flat, labels2d, w1_img, w1_lab, b1, w2, b2, w3, b3, w4, b4)

    try:
        out = run(True)
    except Exception:
        # Fallback if this JAX build rejects single-buffered BlockSpecs.
        out = run(False)

    return out[:B, :n_classes]


def init_params(key, input_dim, n_classes, hidden=512):
    d_img = 1
    for s in input_dim:
        d_img *= s
    d_in = n_classes + d_img
    d_pad = _round_up(d_img, 128)
    n_pad = max(128, _round_up(n_classes, 128))
    ks = jax.random.split(key, 9)

    def lin(kw, kb, fan_in, fan_out):
        bound = 1.0 / float(fan_in) ** 0.5
        w = jax.random.uniform(kw, (fan_in, fan_out), jnp.float32, -bound, bound)
        b = jax.random.uniform(kb, (1, fan_out), jnp.float32, -bound, bound)
        return w, b

    emb = jax.random.normal(ks[0], (n_classes, n_classes), jnp.float32)
    w1, b1 = lin(ks[1], ks[2], d_in, hidden)   # acts on concat([img_flat, emb])
    w2, b2 = lin(ks[3], ks[4], hidden, hidden)
    w3, b3 = lin(ks[5], ks[6], hidden, hidden)
    w4, b4 = lin(ks[7], ks[8], hidden, n_classes)

    # Split W1 to match concat([img_flat, emb(labels)]) ordering.
    w1_img, w1_emb = w1[:d_img], w1[d_img:]
    # Fold the embedding table into layer 1 (f32 contraction, then bf16):
    #   emb(labels) @ W1_emb == one_hot(labels) @ (emb @ W1_emb).
    w1_lab = jnp.dot(emb, w1_emb)                        # (n_classes, hidden)
    # Zero-pad layer-1 image K to a multiple of 128 for full MXU tiles.
    w1_img_p = jnp.zeros((d_pad, hidden), jnp.float32).at[:d_img].set(w1_img)
    # Zero-pad W4/b4 to 128 output lanes for lane-dense stores.
    w4p = jnp.zeros((hidden, n_pad), jnp.float32).at[:, :n_classes].set(w4)
    b4p = jnp.zeros((1, n_pad), jnp.float32).at[:, :n_classes].set(b4)

    return dict(
        w1_img=w1_img_p.astype(jnp.bfloat16),
        w1_lab=w1_lab.astype(jnp.bfloat16),
        b1=b1,
        w2=w2.astype(jnp.bfloat16), b2=b2,
        w3=w3.astype(jnp.bfloat16), b3=b3,
        w4=w4p.astype(jnp.bfloat16), b4=b4p,
    )


def _reference(img, labels, params):
    """Plain-JAX reference with the same bf16 casts as the kernel."""
    B = img.shape[0]
    n_classes = params["w1_lab"].shape[0]
    f32 = jnp.float32

    def leaky(h):
        return jnp.maximum(h, 0.2 * h)

    x = img.reshape(B, -1).astype(jnp.bfloat16)
    d_img = x.shape[1]
    h = (jnp.dot(x, params["w1_img"][:d_img], preferred_element_type=f32)
         + params["w1_lab"][labels].astype(f32)
         + params["b1"])
    h = leaky(h)
    h = leaky(jnp.dot(h.astype(jnp.bfloat16), params["w2"],
                      preferred_element_type=f32) + params["b2"])
    h = leaky(jnp.dot(h.astype(jnp.bfloat16), params["w3"],
                      preferred_element_type=f32) + params["b3"])
    h = jnp.dot(h.astype(jnp.bfloat16), params["w4"],
                preferred_element_type=f32) + params["b4"]
    return jax.nn.sigmoid(h)[:, :n_classes]


if __name__ == "__main__":
    key = jax.random.PRNGKey(0)
    k_img, k_lab, k_par = jax.random.split(key, 3)

    # Small shapes: input_dim = (1, 16, 16), n_classes = 10, batch = 2
    input_dim = (1, 16, 16)
    n_classes = 10
    B = 2

    img = jax.random.normal(k_img, (B,) + input_dim, jnp.float32)
    labels = jax.random.randint(k_lab, (B,), 0, n_classes, jnp.int32)
    params = init_params(k_par, input_dim, n_classes)

    out = discriminator_label_forward(img, labels, params)
    jax.block_until_ready(out)

    ref = _reference(img, labels, params)
    err = float(jnp.max(jnp.abs(out - ref)))

    assert out.shape == (B, n_classes)
    assert bool(jnp.all((out >= 0.0) & (out <= 1.0)))
    assert err < 3e-2, f"max abs err vs reference: {err}"
    print("KERNEL_OK")
</pallas_src>

<mosaic_0001>
module attributes {stable_mosaic.version = 11 : i64} {
  func.func @_disc_mlp_kernel(%arg0: i32, %arg1: memref<16x256xf32, #tpu.memory_space<vmem>>, %arg2: memref<16x1xi32, #tpu.memory_space<vmem>>, %arg3: memref<256x512xbf16, #tpu.memory_space<vmem>>, %arg4: memref<10x512xbf16, #tpu.memory_space<vmem>>, %arg5: memref<1x512xf32, #tpu.memory_space<vmem>>, %arg6: memref<512x512xbf16, #tpu.memory_space<vmem>>, %arg7: memref<1x512xf32, #tpu.memory_space<vmem>>, %arg8: memref<512x512xbf16, #tpu.memory_space<vmem>>, %arg9: memref<1x512xf32, #tpu.memory_space<vmem>>, %arg10: memref<512x128xbf16, #tpu.memory_space<vmem>>, %arg11: memref<1x128xf32, #tpu.memory_space<vmem>>, %arg12: memref<16x128xf32, #tpu.memory_space<vmem>>) attributes {dimension_semantics = [#tpu.dimension_semantics<parallel>], iteration_bounds = array<i64: 1>, scalar_prefetch = 0 : i64, scratch_operands = 0 : i64, tpu.core_type = #tpu.core_type<tc>, window_params = [{transform_indices = @transform_0, window_bounds = array<i64: 16, 256>}, {transform_indices = @transform_1, window_bounds = array<i64: 16, 1>}, {pipeline_mode = #tpu.pipeline_mode<synchronous>, transform_indices = @transform_2, window_bounds = array<i64: 256, 512>}, {pipeline_mode = #tpu.pipeline_mode<synchronous>, transform_indices = @transform_3, window_bounds = array<i64: 10, 512>}, {pipeline_mode = #tpu.pipeline_mode<synchronous>, transform_indices = @transform_4, window_bounds = array<i64: 1, 512>}, {pipeline_mode = #tpu.pipeline_mode<synchronous>, transform_indices = @transform_5, window_bounds = array<i64: 512, 512>}, {pipeline_mode = #tpu.pipeline_mode<synchronous>, transform_indices = @transform_6, window_bounds = array<i64: 1, 512>}, {pipeline_mode = #tpu.pipeline_mode<synchronous>, transform_indices = @transform_7, window_bounds = array<i64: 512, 512>}, {pipeline_mode = #tpu.pipeline_mode<synchronous>, transform_indices = @transform_8, window_bounds = array<i64: 1, 512>}, {pipeline_mode = #tpu.pipeline_mode<synchronous>, transform_indices = @transform_9, window_bounds = array<i64: 512, 128>}, {pipeline_mode = #tpu.pipeline_mode<synchronous>, transform_indices = @transform_10, window_bounds = array<i64: 1, 128>}, {transform_indices = @transform_11, window_bounds = array<i64: 16, 128>}]} {
    %c0 = arith.constant 0 : index
    %c0_0 = arith.constant 0 : index
    %0 = vector.load %arg1[%c0, %c0_0] : memref<16x256xf32, #tpu.memory_space<vmem>>, vector<16x256xf32>
    %1 = arith.truncf %0 : vector<16x256xf32> to vector<16x256xbf16>
    %c0_1 = arith.constant 0 : index
    %c0_2 = arith.constant 0 : index
    %2 = vector.load %arg2[%c0_1, %c0_2] : memref<16x1xi32, #tpu.memory_space<vmem>>, vector<16x1xi32>
    %3 = tpu.iota {dimensions = array<i32: 1>} : vector<16x10xi32>
    %4 = vector.broadcast %2 : vector<16x1xi32> to vector<16x10xi32>
    %5 = arith.cmpi eq, %4, %3 : vector<16x10xi32>
    %6 = arith.extui %5 : vector<16x10xi1> to vector<16x10xi32>
    %7 = arith.sitofp %6 : vector<16x10xi32> to vector<16x10xf32>
    %8 = arith.truncf %7 : vector<16x10xf32> to vector<16x10xbf16>
    %c0_3 = arith.constant 0 : index
    %c0_4 = arith.constant 0 : index
    %9 = vector.load %arg3[%c0_3, %c0_4] : memref<256x512xbf16, #tpu.memory_space<vmem>>, vector<256x512xbf16>
    %cst = arith.constant dense<0.000000e+00> : vector<16x512xf32>
    %10 = tpu.matmul %1, %9, %cst {dimension_numbers = #tpu.dot_dimension_numbers<[1], [0], [0], [1], [0, 0, 1, 1], [], []>} : vector<16x256xbf16>, vector<256x512xbf16>, vector<16x512xf32> -> vector<16x512xf32>
    %c0_5 = arith.constant 0 : index
    %c0_6 = arith.constant 0 : index
    %11 = vector.load %arg4[%c0_5, %c0_6] : memref<10x512xbf16, #tpu.memory_space<vmem>>, vector<10x512xbf16>
    %cst_7 = arith.constant dense<0.000000e+00> : vector<16x512xf32>
    %12 = tpu.matmul %8, %11, %cst_7 {dimension_numbers = #tpu.dot_dimension_numbers<[1], [0], [0], [1], [0, 0, 1, 1], [], []>} : vector<16x10xbf16>, vector<10x512xbf16>, vector<16x512xf32> -> vector<16x512xf32>
    %13 = arith.addf %10, %12 : vector<16x512xf32>
    %c0_8 = arith.constant 0 : index
    %c0_9 = arith.constant 0 : index
    %14 = vector.load %arg5[%c0_8, %c0_9] : memref<1x512xf32, #tpu.memory_space<vmem>>, vector<1x512xf32>
    %15 = vector.broadcast %14 : vector<1x512xf32> to vector<16x512xf32>
    %16 = arith.addf %13, %15 : vector<16x512xf32>
    %cst_10 = arith.constant 2.000000e-01 : f32
    %17 = vector.broadcast %cst_10 : f32 to vector<16x512xf32>
    %18 = arith.mulf %17, %16 : vector<16x512xf32>
    %19 = arith.maximumf %16, %18 : vector<16x512xf32>
    %20 = arith.truncf %19 : vector<16x512xf32> to vector<16x512xbf16>
    %c0_11 = arith.constant 0 : index
    %c0_12 = arith.constant 0 : index
    %21 = vector.load %arg6[%c0_11, %c0_12] : memref<512x512xbf16, #tpu.memory_space<vmem>>, vector<512x512xbf16>
    %cst_13 = arith.constant dense<0.000000e+00> : vector<16x512xf32>
    %22 = tpu.matmul %20, %21, %cst_13 {dimension_numbers = #tpu.dot_dimension_numbers<[1], [0], [0], [1], [0, 0, 1, 1], [], []>} : vector<16x512xbf16>, vector<512x512xbf16>, vector<16x512xf32> -> vector<16x512xf32>
    %c0_14 = arith.constant 0 : index
    %c0_15 = arith.constant 0 : index
    %23 = vector.load %arg7[%c0_14, %c0_15] : memref<1x512xf32, #tpu.memory_space<vmem>>, vector<1x512xf32>
    %24 = vector.broadcast %23 : vector<1x512xf32> to vector<16x512xf32>
    %25 = arith.addf %22, %24 : vector<16x512xf32>
    %cst_16 = arith.constant 2.000000e-01 : f32
    %26 = vector.broadcast %cst_16 : f32 to vector<16x512xf32>
    %27 = arith.mulf %26, %25 : vector<16x512xf32>
    %28 = arith.maximumf %25, %27 : vector<16x512xf32>
    %29 = arith.truncf %28 : vector<16x512xf32> to vector<16x512xbf16>
    %c0_17 = arith.constant 0 : index
    %c0_18 = arith.constant 0 : index
    %30 = vector.load %arg8[%c0_17, %c0_18] : memref<512x512xbf16, #tpu.memory_space<vmem>>, vector<512x512xbf16>
    %cst_19 = arith.constant dense<0.000000e+00> : vector<16x512xf32>
    %31 = tpu.matmul %29, %30, %cst_19 {dimension_numbers = #tpu.dot_dimension_numbers<[1], [0], [0], [1], [0, 0, 1, 1], [], []>} : vector<16x512xbf16>, vector<512x512xbf16>, vector<16x512xf32> -> vector<16x512xf32>
    %c0_20 = arith.constant 0 : index
    %c0_21 = arith.constant 0 : index
    %32 = vector.load %arg9[%c0_20, %c0_21] : memref<1x512xf32, #tpu.memory_space<vmem>>, vector<1x512xf32>
    %33 = vector.broadcast %32 : vector<1x512xf32> to vector<16x512xf32>
    %34 = arith.addf %31, %33 : vector<16x512xf32>
    %cst_22 = arith.constant 2.000000e-01 : f32
    %35 = vector.broadcast %cst_22 : f32 to vector<16x512xf32>
    %36 = arith.mulf %35, %34 : vector<16x512xf32>
    %37 = arith.maximumf %34, %36 : vector<16x512xf32>
    %38 = arith.truncf %37 : vector<16x512xf32> to vector<16x512xbf16>
    %c0_23 = arith.constant 0 : index
    %c0_24 = arith.constant 0 : index
    %39 = vector.load %arg10[%c0_23, %c0_24] : memref<512x128xbf16, #tpu.memory_space<vmem>>, vector<512x128xbf16>
    %cst_25 = arith.constant dense<0.000000e+00> : vector<16x128xf32>
    %40 = tpu.matmul %38, %39, %cst_25 {dimension_numbers = #tpu.dot_dimension_numbers<[1], [0], [0], [1], [0, 0, 1, 1], [], []>} : vector<16x512xbf16>, vector<512x128xbf16>, vector<16x128xf32> -> vector<16x128xf32>
    %c0_26 = arith.constant 0 : index
    %c0_27 = arith.constant 0 : index
    %41 = vector.load %arg11[%c0_26, %c0_27] : memref<1x128xf32, #tpu.memory_space<vmem>>, vector<1x128xf32>
    %42 = vector.broadcast %41 : vector<1x128xf32> to vector<16x128xf32>
    %43 = arith.addf %40, %42 : vector<16x128xf32>
    %44 = arith.negf %43 : vector<16x128xf32>
    %45 = math.exp %44 : vector<16x128xf32>
    %cst_28 = arith.constant 1.000000e+00 : f32
    %46 = vector.broadcast %cst_28 : f32 to vector<16x128xf32>
    %47 = arith.addf %46, %45 : vector<16x128xf32>
    %48 = arith.divf %46, %47 : vector<16x128xf32>
    %c0_29 = arith.constant 0 : index
    %c0_30 = arith.constant 0 : index
    %49 = vector.load %arg12[%c0_29, %c0_30] : memref<16x128xf32, #tpu.memory_space<vmem>>, vector<16x128xf32>
    tpu.vector_store %arg12[%c0_29, %c0_30], %48 {strides = array<i32>} : memref<16x128xf32, #tpu.memory_space<vmem>>, vector<16x128xf32>,
    return
  }
  func.func @transform_0(%arg0: i32) -> (i32, i32) {
    %c0_i32 = arith.constant 0 : i32
    %c0_i32_0 = arith.constant 0 : i32
    return %arg0, %c0_i32 : i32, i32
  }
  func.func @transform_1(%arg0: i32) -> (i32, i32) {
    %c0_i32 = arith.constant 0 : i32
    %c0_i32_0 = arith.constant 0 : i32
    return %arg0, %c0_i32 : i32, i32
  }
  func.func @transform_2(%arg0: i32) -> (i32, i32) {
    %c0_i32 = arith.constant 0 : i32
    %c0_i32_0 = arith.constant 0 : i32
    %c0_i32_1 = arith.constant 0 : i32
    return %c0_i32, %c0_i32_0 : i32, i32
  }
  func.func @transform_3(%arg0: i32) -> (i32, i32) {
    %c0_i32 = arith.constant 0 : i32
    %c0_i32_0 = arith.constant 0 : i32
    %c0_i32_1 = arith.constant 0 : i32
    return %c0_i32, %c0_i32_0 : i32, i32
  }
  func.func @transform_4(%arg0: i32) -> (i32, i32) {
    %c0_i32 = arith.constant 0 : i32
    %c0_i32_0 = arith.constant 0 : i32
    %c0_i32_1 = arith.constant 0 : i32
    return %c0_i32, %c0_i32_0 : i32, i32
  }
  func.func @transform_5(%arg0: i32) -> (i32, i32) {
    %c0_i32 = arith.constant 0 : i32
    %c0_i32_0 = arith.constant 0 : i32
    %c0_i32_1 = arith.constant 0 : i32
    return %c0_i32, %c0_i32_0 : i32, i32
  }
  func.func @transform_6(%arg0: i32) -> (i32, i32) {
    %c0_i32 = arith.constant 0 : i32
    %c0_i32_0 = arith.constant 0 : i32
    %c0_i32_1 = arith.constant 0 : i32
    return %c0_i32, %c0_i32_0 : i32, i32
  }
  func.func @transform_7(%arg0: i32) -> (i32, i32) {
    %c0_i32 = arith.constant 0 : i32
    %c0_i32_0 = arith.constant 0 : i32
    %c0_i32_1 = arith.constant 0 : i32
    return %c0_i32, %c0_i32_0 : i32, i32
  }
  func.func @transform_8(%arg0: i32) -> (i32, i32) {
    %c0_i32 = arith.constant 0 : i32
    %c0_i32_0 = arith.constant 0 : i32
    %c0_i32_1 = arith.constant 0 : i32
    return %c0_i32, %c0_i32_0 : i32, i32
  }
  func.func @transform_9(%arg0: i32) -> (i32, i32) {
    %c0_i32 = arith.constant 0 : i32
    %c0_i32_0 = arith.constant 0 : i32
    %c0_i32_1 = arith.constant 0 : i32
    return %c0_i32, %c0_i32_0 : i32, i32
  }
  func.func @transform_10(%arg0: i32) -> (i32, i32) {
    %c0_i32 = arith.constant 0 : i32
    %c0_i32_0 = arith.constant 0 : i32
    %c0_i32_1 = arith.constant 0 : i32
    return %c0_i32, %c0_i32_0 : i32, i32
  }
  func.func @transform_11(%arg0: i32) -> (i32, i32) {
    %c0_i32 = arith.constant 0 : i32
    %c0_i32_0 = arith.constant 0 : i32
    return %arg0, %c0_i32 : i32, i32
  }
}

module attributes {stable_mosaic.version = 11 : i64} {
  func.func @_disc_mlp_kernel(%arg0: i32, %arg1: memref<16x256xf32, #tpu.memory_space<vmem>>, %arg2: memref<16x1xi32, #tpu.memory_space<vmem>>, %arg3: memref<256x512xbf16, #tpu.memory_space<vmem>>, %arg4: memref<10x512xbf16, #tpu.memory_space<vmem>>, %arg5: memref<1x512xf32, #tpu.memory_space<vmem>>, %arg6: memref<512x512xbf16, #tpu.memory_space<vmem>>, %arg7: memref<1x512xf32, #tpu.memory_space<vmem>>, %arg8: memref<512x512xbf16, #tpu.memory_space<vmem>>, %arg9: memref<1x512xf32, #tpu.memory_space<vmem>>, %arg10: memref<512x128xbf16, #tpu.memory_space<vmem>>, %arg11: memref<1x128xf32, #tpu.memory_space<vmem>>, %arg12: memref<16x128xf32, #tpu.memory_space<vmem>>) attributes {dimension_semantics = [#tpu.dimension_semantics<parallel>], iteration_bounds = array<i64: 1>, scalar_prefetch = 0 : i64, scratch_operands = 0 : i64, tpu.core_type = #tpu.core_type<tc>, window_params = [{transform_indices = @transform_0, window_bounds = array<i64: 16, 256>}, {transform_indices = @transform_1, window_bounds = array<i64: 16, 1>}, {pipeline_mode = #tpu.pipeline_mode<synchronous>, transform_indices = @transform_2, window_bounds = array<i64: 256, 512>}, {pipeline_mode = #tpu.pipeline_mode<synchronous>, transform_indices = @transform_3, window_bounds = array<i64: 10, 512>}, {pipeline_mode = #tpu.pipeline_mode<synchronous>, transform_indices = @transform_4, window_bounds = array<i64: 1, 512>}, {pipeline_mode = #tpu.pipeline_mode<synchronous>, transform_indices = @transform_5, window_bounds = array<i64: 512, 512>}, {pipeline_mode = #tpu.pipeline_mode<synchronous>, transform_indices = @transform_6, window_bounds = array<i64: 1, 512>}, {pipeline_mode = #tpu.pipeline_mode<synchronous>, transform_indices = @transform_7, window_bounds = array<i64: 512, 512>}, {pipeline_mode = #tpu.pipeline_mode<synchronous>, transform_indices = @transform_8, window_bounds = array<i64: 1, 512>}, {pipeline_mode = #tpu.pipeline_mode<synchronous>, transform_indices = @transform_9, window_bounds = array<i64: 512, 128>}, {pipeline_mode = #tpu.pipeline_mode<synchronous>, transform_indices = @transform_10, window_bounds = array<i64: 1, 128>}, {transform_indices = @transform_11, window_bounds = array<i64: 16, 128>}]} {
    %c0 = arith.constant 0 : index
    %c0_0 = arith.constant 0 : index
    %0 = vector.load %arg1[%c0, %c0_0] : memref<16x256xf32, #tpu.memory_space<vmem>>, vector<16x256xf32>
    %1 = arith.truncf %0 : vector<16x256xf32> to vector<16x256xbf16>
    %c0_1 = arith.constant 0 : index
    %c0_2 = arith.constant 0 : index
    %2 = vector.load %arg2[%c0_1, %c0_2] : memref<16x1xi32, #tpu.memory_space<vmem>>, vector<16x1xi32>
    %3 = tpu.iota {dimensions = array<i32: 1>} : vector<16x10xi32>
    %4 = vector.broadcast %2 : vector<16x1xi32> to vector<16x10xi32>
    %5 = arith.cmpi eq, %4, %3 : vector<16x10xi32>
    %6 = arith.extui %5 : vector<16x10xi1> to vector<16x10xi32>
    %7 = arith.sitofp %6 : vector<16x10xi32> to vector<16x10xf32>
    %8 = arith.truncf %7 : vector<16x10xf32> to vector<16x10xbf16>
    %c0_3 = arith.constant 0 : index
    %c0_4 = arith.constant 0 : index
    %9 = vector.load %arg3[%c0_3, %c0_4] : memref<256x512xbf16, #tpu.memory_space<vmem>>, vector<256x512xbf16>
    %cst = arith.constant dense<0.000000e+00> : vector<16x512xf32>
    %10 = tpu.matmul %1, %9, %cst {dimension_numbers = #tpu.dot_dimension_numbers<[1], [0], [0], [1], [0, 0, 1, 1], [], []>} : vector<16x256xbf16>, vector<256x512xbf16>, vector<16x512xf32> -> vector<16x512xf32>
    %c0_5 = arith.constant 0 : index
    %c0_6 = arith.constant 0 : index
    %11 = vector.load %arg4[%c0_5, %c0_6] : memref<10x512xbf16, #tpu.memory_space<vmem>>, vector<10x512xbf16>
    %cst_7 = arith.constant dense<0.000000e+00> : vector<16x512xf32>
    %12 = tpu.matmul %8, %11, %cst_7 {dimension_numbers = #tpu.dot_dimension_numbers<[1], [0], [0], [1], [0, 0, 1, 1], [], []>} : vector<16x10xbf16>, vector<10x512xbf16>, vector<16x512xf32> -> vector<16x512xf32>
    %13 = arith.addf %10, %12 : vector<16x512xf32>
    %c0_8 = arith.constant 0 : index
    %c0_9 = arith.constant 0 : index
    %14 = vector.load %arg5[%c0_8, %c0_9] : memref<1x512xf32, #tpu.memory_space<vmem>>, vector<1x512xf32>
    %15 = vector.broadcast %14 : vector<1x512xf32> to vector<16x512xf32>
    %16 = arith.addf %13, %15 : vector<16x512xf32>
    %cst_10 = arith.constant 2.000000e-01 : f32
    %17 = vector.broadcast %cst_10 : f32 to vector<16x512xf32>
    %18 = arith.mulf %17, %16 : vector<16x512xf32>
    %19 = arith.maximumf %16, %18 : vector<16x512xf32>
    %20 = arith.truncf %19 : vector<16x512xf32> to vector<16x512xbf16>
    %c0_11 = arith.constant 0 : index
    %c0_12 = arith.constant 0 : index
    %21 = vector.load %arg6[%c0_11, %c0_12] : memref<512x512xbf16, #tpu.memory_space<vmem>>, vector<512x512xbf16>
    %cst_13 = arith.constant dense<0.000000e+00> : vector<16x512xf32>
    %22 = tpu.matmul %20, %21, %cst_13 {dimension_numbers = #tpu.dot_dimension_numbers<[1], [0], [0], [1], [0, 0, 1, 1], [], []>} : vector<16x512xbf16>, vector<512x512xbf16>, vector<16x512xf32> -> vector<16x512xf32>
    %c0_14 = arith.constant 0 : index
    %c0_15 = arith.constant 0 : index
    %23 = vector.load %arg7[%c0_14, %c0_15] : memref<1x512xf32, #tpu.memory_space<vmem>>, vector<1x512xf32>
    %24 = vector.broadcast %23 : vector<1x512xf32> to vector<16x512xf32>
    %25 = arith.addf %22, %24 : vector<16x512xf32>
    %cst_16 = arith.constant 2.000000e-01 : f32
    %26 = vector.broadcast %cst_16 : f32 to vector<16x512xf32>
    %27 = arith.mulf %26, %25 : vector<16x512xf32>
    %28 = arith.maximumf %25, %27 : vector<16x512xf32>
    %29 = arith.truncf %28 : vector<16x512xf32> to vector<16x512xbf16>
    %c0_17 = arith.constant 0 : index
    %c0_18 = arith.constant 0 : index
    %30 = vector.load %arg8[%c0_17, %c0_18] : memref<512x512xbf16, #tpu.memory_space<vmem>>, vector<512x512xbf16>
    %cst_19 = arith.constant dense<0.000000e+00> : vector<16x512xf32>
    %31 = tpu.matmul %29, %30, %cst_19 {dimension_numbers = #tpu.dot_dimension_numbers<[1], [0], [0], [1], [0, 0, 1, 1], [], []>} : vector<16x512xbf16>, vector<512x512xbf16>, vector<16x512xf32> -> vector<16x512xf32>
    %c0_20 = arith.constant 0 : index
    %c0_21 = arith.constant 0 : index
    %32 = vector.load %arg9[%c0_20, %c0_21] : memref<1x512xf32, #tpu.memory_space<vmem>>, vector<1x512xf32>
    %33 = vector.broadcast %32 : vector<1x512xf32> to vector<16x512xf32>
    %34 = arith.addf %31, %33 : vector<16x512xf32>
    %cst_22 = arith.constant 2.000000e-01 : f32
    %35 = vector.broadcast %cst_22 : f32 to vector<16x512xf32>
    %36 = arith.mulf %35, %34 : vector<16x512xf32>
    %37 = arith.maximumf %34, %36 : vector<16x512xf32>
    %38 = arith.truncf %37 : vector<16x512xf32> to vector<16x512xbf16>
    %c0_23 = arith.constant 0 : index
    %c0_24 = arith.constant 0 : index
    %39 = vector.load %arg10[%c0_23, %c0_24] : memref<512x128xbf16, #tpu.memory_space<vmem>>, vector<512x128xbf16>
    %cst_25 = arith.constant dense<0.000000e+00> : vector<16x128xf32>
    %40 = tpu.matmul %38, %39, %cst_25 {dimension_numbers = #tpu.dot_dimension_numbers<[1], [0], [0], [1], [0, 0, 1, 1], [], []>} : vector<16x512xbf16>, vector<512x128xbf16>, vector<16x128xf32> -> vector<16x128xf32>
    %c0_26 = arith.constant 0 : index
    %c0_27 = arith.constant 0 : index
    %41 = vector.load %arg11[%c0_26, %c0_27] : memref<1x128xf32, #tpu.memory_space<vmem>>, vector<1x128xf32>
    %42 = vector.broadcast %41 : vector<1x128xf32> to vector<16x128xf32>
    %43 = arith.addf %40, %42 : vector<16x128xf32>
    %44 = arith.negf %43 : vector<16x128xf32>
    %45 = math.exp %44 : vector<16x128xf32>
    %cst_28 = arith.constant 1.000000e+00 : f32
    %46 = vector.broadcast %cst_28 : f32 to vector<16x128xf32>
    %47 = arith.addf %46, %45 : vector<16x128xf32>
    %48 = arith.divf %46, %47 : vector<16x128xf32>
    %c0_29 = arith.constant 0 : index
    %c0_30 = arith.constant 0 : index
    %49 = vector.load %arg12[%c0_29, %c0_30] : memref<16x128xf32, #tpu.memory_space<vmem>>, vector<16x128xf32>
    tpu.vector_store %arg12[%c0_29, %c0_30], %48 {strides = array<i32>} : memref<16x128xf32, #tpu.memory_space<vmem>>, vector<16x128xf32>,
    return
  }
  func.func @transform_0(%arg0: i32) -> (i32, i32) {
    %c0_i32 = arith.constant 0 : i32
    %c0_i32_0 = arith.constant 0 : i32
    return %arg0, %c0_i32 : i32, i32
  }
  func.func @transform_1(%arg0: i32) -> (i32, i32) {
    %c0_i32 = arith.constant 0 : i32
    %c0_i32_0 = arith.constant 0 : i32
    return %arg0, %c0_i32 : i32, i32
  }
  func.func @transform_2(%arg0: i32) -> (i32, i32) {
    %c0_i32 = arith.constant 0 : i32
    %c0_i32_0 = arith.constant 0 : i32
    %c0_i32_1 = arith.constant 0 : i32
    return %c0_i32, %c0_i32_0 : i32, i32
  }
  func.func @transform_3(%arg0: i32) -> (i32, i32) {
    %c0_i32 = arith.constant 0 : i32
    %c0_i32_0 = arith.constant 0 : i32
    %c0_i32_1 = arith.constant 0 : i32
    return %c0_i32, %c0_i32_0 : i32, i32
  }
  func.func @transform_4(%arg0: i32) -> (i32, i32) {
    %c0_i32 = arith.constant 0 : i32
    %c0_i32_0 = arith.constant 0 : i32
    %c0_i32_1 = arith.constant 0 : i32
    return %c0_i32, %c0_i32_0 : i32, i32
  }
  func.func @transform_5(%arg0: i32) -> (i32, i32) {
    %c0_i32 = arith.constant 0 : i32
    %c0_i32_0 = arith.constant 0 : i32
    %c0_i32_1 = arith.constant 0 : i32
    return %c0_i32, %c0_i32_0 : i32, i32
  }
  func.func @transform_6(%arg0: i32) -> (i32, i32) {
    %c0_i32 = arith.constant 0 : i32
    %c0_i32_0 = arith.constant 0 : i32
    %c0_i32_1 = arith.constant 0 : i32
    return %c0_i32, %c0_i32_0 : i32, i32
  }
  func.func @transform_7(%arg0: i32) -> (i32, i32) {
    %c0_i32 = arith.constant 0 : i32
    %c0_i32_0 = arith.constant 0 : i32
    %c0_i32_1 = arith.constant 0 : i32
    return %c0_i32, %c0_i32_0 : i32, i32
  }
  func.func @transform_8(%arg0: i32) -> (i32, i32) {
    %c0_i32 = arith.constant 0 : i32
    %c0_i32_0 = arith.constant 0 : i32
    %c0_i32_1 = arith.constant 0 : i32
    return %c0_i32, %c0_i32_0 : i32, i32
  }
  func.func @transform_9(%arg0: i32) -> (i32, i32) {
    %c0_i32 = arith.constant 0 : i32
    %c0_i32_0 = arith.constant 0 : i32
    %c0_i32_1 = arith.constant 0 : i32
    return %c0_i32, %c0_i32_0 : i32, i32
  }
  func.func @transform_10(%arg0: i32) -> (i32, i32) {
    %c0_i32 = arith.constant 0 : i32
    %c0_i32_0 = arith.constant 0 : i32
    %c0_i32_1 = arith.constant 0 : i32
    return %c0_i32, %c0_i32_0 : i32, i32
  }
  func.func @transform_11(%arg0: i32) -> (i32, i32) {
    %c0_i32 = arith.constant 0 : i32
    %c0_i32_0 = arith.constant 0 : i32
    return %arg0, %c0_i32 : i32, i32
  }
}

</mosaic_0001>

<bundles_post_ra>
// kernel: tpu_custom_call.1
= control target key start
LH: loop header
LB: loop body
LE: loop exit
PB: predicated region body
PF: predicated region fallthrough
CT: control target
= control target key end

     0   :  { %16 = vsyncpa [#allocation3], 0  ;;  %s5436_s0 = inlined_call_operand.hbm [shape: f32[16,256], index: 0, kind: input, shape index: {}]   ;;  %s5437_s1 = inlined_call_operand.vmem [shape: s32[16,1], index: 1, kind: input, shape index: {}]   ;;  %s5438_s2 = inlined_call_operand.hbm [shape: bf16[256,512], index: 2, kind: input, shape index: {}]   ;;  %s5439_s3 = inlined_call_operand.hbm [shape: bf16[10,512], index: 3, kind: input, shape index: {}]   ;;  %s5440_s4 = inlined_call_operand.vmem [shape: f32[1,512], index: 4, kind: input, shape index: {}]   ;;  %s5441_s5 = inlined_call_operand.hbm [shape: bf16[512,512], index: 5, kind: input, shape index: {}]   ;;  %s5442_s6 = inlined_call_operand.vmem [shape: f32[1,512], index: 6, kind: input, shape index: {}]   ;;  %s5443_s7 = inlined_call_operand.hbm [shape: bf16[512,512], index: 7, kind: input, shape index: {}]   ;;  %s5444_s8 = inlined_call_operand.vmem [shape: f32[1,512], index: 8, kind: input, shape index: {}]   ;;  %s5445_s9 = inlined_call_operand.hbm [shape: bf16[512,128], index: 9, kind: input, shape index: {}]   ;;  %s5446_s10 = inlined_call_operand.vmem [shape: f32[1,128], index: 10, kind: input, shape index: {}]   ;;  %s5447_s11 = inlined_call_operand.hbm [shape: f32[16,128], index: 11, kind: output, shape index: {}]  }
   0x1   :  { %17 = vsyncpa [#allocation6], 0 }
   0x2   :  { %18 = vsyncpa [#allocation9], 0 }
   0x3   :  { %19 = vsyncpa [#allocation12], 0 }
   0x4   :  { %20 = vsyncpa [#allocation4], 0  ;;  %s40_s19 = sshll.u32 %s5438_s2, 4  ;;  %s5197_s20 = smov [#allocation5]   ;;  %s41_s19 = int_to_ptr.hbm [resolvable:$true] %s40_s19 }
   0x5   :  { %s42_s21 = sshll.u32 %s5197_s20, 4  ;;  %s68_s24 = sshll.u32 %s5441_s5, 4  ;;  %s43_s21 = int_to_ptr.vmem [resolvable:$true] %s42_s21  ;;  %s69_s24 = int_to_ptr.hbm [resolvable:$true] %s68_s24 }
   0x6   :  { %s5198_s25 = smov 256   ;;  %s5199_s26 = smov 16  }
   0x7   :  { %48 = dma.hbm_to_vmem [thread:$0]  %s41_s19, 8192, %s43_s21, [#allocation6], %s5198_s25, %s5198_s25, %s5199_s26  }
   0x8   :  { %s5200_s27 = smov [#allocation8]   ;;  %s25_s2 = sshll.u32 %s5436_s0, 4  ;;  %s26_s2 = int_to_ptr.hbm [resolvable:$true] %s25_s2 }
   0x9   :  { %s70_s28 = sshll.u32 %s5200_s27, 4  ;;  %s53_s13 = sshll.u32 %s5439_s3, 4  ;;  %s71_s28 = int_to_ptr.vmem [resolvable:$true] %s70_s28  ;;  %s54_s13 = int_to_ptr.hbm [resolvable:$true] %s53_s13 }
   0xa   :  { %76 = dma.hbm_to_vmem [thread:$0]  %s69_s24, 16384, %s71_s28, [#allocation9], %s5198_s25, %s5198_s25, %s5199_s26  }
   0xb   :  { %s5201_s14 = smov [#allocation2]   ;;  %s5202_s16 = smov [#allocation7]  }
   0xc   :  { %s27_s15 = sshll.u32 %s5201_s14, 4  ;;  %s55_s0 = sshll.u32 %s5202_s16, 4  ;;  %s28_s15 = int_to_ptr.vmem [resolvable:$true] %s27_s15  ;;  %s56_s0 = int_to_ptr.vmem [resolvable:$true] %s55_s0 }
   0xd   :  { %33 = dma.hbm_to_vmem [thread:$0]  %s26_s2, 512, %s28_s15, [#allocation3], %s5198_s25, %s5198_s25, %s5199_s26  }
   0xe   :  { %s83_s19 = sshll.u32 %s5443_s7, 4  ;;  %s98_s21 = sshll.u32 %s5445_s9, 4  ;;  %s84_s19 = int_to_ptr.hbm [resolvable:$true] %s83_s19  ;;  %s99_s21 = int_to_ptr.hbm [resolvable:$true] %s98_s21 }
   0xf   :  { %61 = dma.hbm_to_vmem [thread:$0]  %s54_s13, 512, %s56_s0, [#allocation6], %s5198_s25, %s5198_s25, %s5199_s26  }
  0x10   :  { %s5203_s22 = smov [#allocation10]   ;;  %s5204_s24 = smov [#allocation11]  }
  0x11   :  { %s85_s23 = sshll.u32 %s5203_s22, 4  ;;  %s100_s7 = sshll.u32 %s5204_s24, 4  ;;  %s86_s23 = int_to_ptr.vmem [resolvable:$true] %s85_s23  ;;  %s101_s7 = int_to_ptr.vmem [resolvable:$true] %s100_s7 }
  0x12   :  { %91 = dma.hbm_to_vmem [thread:$0]  %s84_s19, 16384, %s86_s23, [#allocation9], %s5198_s25, %s5198_s25, %s5199_s26  }
  0x13   :  { %s5205_s27 = smov 64   ;;  %s5206_s28 = smov 4  }
  0x14   :  { %106 = dma.hbm_to_vmem [thread:$0]  %s99_s21, 4096, %s101_s7, [#allocation12], %s5205_s27, %s5205_s27, %s5206_s28  }
  0x15   :  { %5187 = dma.done.wait [#allocation3], 512  }
  0x16   :  { %5188 = vsyncadd [#allocation3], 4294966784 }
  0x17   :  { %5189 = dma.done.wait [#allocation6], 8704  }
  0x18   :  { %5190 = vsyncadd [#allocation6], 4294958592 }
  0x19   :  { %5191 = dma.done.wait [#allocation9], 32768  }
  0x1a   :  { %5192 = vsyncadd [#allocation9], 4294934528 }
  0x1b   :  { %5193 = dma.done.wait [#allocation12], 4096  }
  0x1c   :  { %5194 = vsyncadd [#allocation12], 4294963200  ;;  %v5207_v0 = vmov 0   ;;  %v140_v1 = vld [vmem:[%s5437_s1] sm:$0xff]  ;;  %vm245_vm0 = vcmask 1044480   ;;  %v141_v25 = vld [vmem:[%s5437_s1 + $0x8] sm:$0xff] }
  0x1d   :  { %5009 = vset.pattern.permute.xlu0 %v5207_v0  ;;  %v3210_v2 = vld [vmem:[#allocation7] sm:$0xf]  ;;  %v4704_v3 = vld [vmem:[#allocation7 + $0xc] sm:$0x10]  ;;  %v4702_v4 = vld [vmem:[#allocation7 + $0x4] sm:$0xf] }
  0x1e   :  { %145 = vperm.xlu0 %5009, %v140_v1   ;;  %v3212_v5 = vld [vmem:[#allocation7 + $0x10] sm:$0x10]  ;;  %v3211_v6 = vor.u32 %v4704_v3, %v3210_v2  ;;  %v3218_v8 = vld [vmem:[#allocation7 + $0x8] sm:$0xf]  ;;  %v4705_v9 = vld [vmem:[#allocation7 + $0x14] sm:$0x10] }
  0x1f   :  { %v3215_v7 = vor.u32 %v4702_v4, %v3212_v5  ;;  %v4703_v10 = vld [vmem:[#allocation7 + $0xc] sm:$0xf]  ;;  %v3219_v11 = vor.u32 %v4705_v9, %v3218_v8  ;;  %v3220_v12 = vld [vmem:[#allocation7 + $0x18] sm:$0x10]  ;;  %v3342_v13 = vld [vmem:[#allocation5 + $0xe0] sm:$0xf] }
  0x20   :  { %v4668_v14 = vld [vmem:[#allocation5 + $0xec] sm:$0xf0]  ;;  %v247_v15 = vsel %vm245_vm0, %v3211_v6, 0  ;;  %v3223_v17 = vor.u32 %v4703_v10, %v3220_v12  ;;  %v3470_v19 = vld [vmem:[#allocation5 + $0x1e0] sm:$0xf]  ;;  %vm241_vm3 = vcmask 80896  }
  0x21   :  { %v250_v16 = vsel %vm245_vm0, %v3215_v7, 0  ;;  %v3343_v18 = vor.u32 %v4668_v14, %v3342_v13  ;;  %v4700_v20 = vld [vmem:[#allocation5 + $0x1ec] sm:$0xf0]  ;;  %265 = vmatpush.bf16.msra.mxu0 %v247_v15  ;;  %v253_v21 = vsel %vm245_vm0, %v3219_v11, 0  ;;  %v4666_v23 = vld [vmem:[#allocation5 + $0xe4] sm:$0xf] }
  0x22   :  { %279 = vmatpush.bf16.msra.mxu1 %v250_v16  ;;  %v3471_v22 = vor.u32 %v4700_v20, %v3470_v19  ;;  %v3344_v24 = vld [vmem:[#allocation5 + $0xf0] sm:$0xf0]  ;;  %293 = vmatpush.bf16.msra.mxu2 %v253_v21  ;;  %v256_v26 = vsel %vm245_vm0, %v3223_v17, 0  ;;  %v4698_v28 = vld [vmem:[#allocation5 + $0x1e4] sm:$0xf]  ;;  %s3190_s16 = sshll.u32 %s5447_s11, 4  ;;  %s3191_s16 = int_to_ptr.hbm [resolvable:$true] %s3190_s16 }
  0x23   :  { %v3347_v27 = vor.u32 %v4666_v23, %v3344_v24  ;;  %v3472_v29 = vld [vmem:[#allocation5 + $0x1f0] sm:$0xf0]  ;;  %307 = vmatpush.bf16.msra.mxu3 %v256_v26  ;;  %v3326_v31 = vld [vmem:[#allocation5 + $0xc0] sm:$0xf]  ;;  %v4664_v32 = vld [vmem:[#allocation5 + $0xcc] sm:$0xf0] }
  0x24   :  { %v3475_v30 = vor.u32 %v4698_v28, %v3472_v29  ;;  %v3454_v33 = vld [vmem:[#allocation5 + $0x1c0] sm:$0xf]  ;;  %v3327_v34 = vor.u32 %v4664_v32, %v3326_v31  ;;  %v4696_v35 = vld [vmem:[#allocation5 + $0x1cc] sm:$0xf0]  ;;  %v4662_v36 = vld [vmem:[#allocation5 + $0xc4] sm:$0xf] }
  0x25   :  { %634 = vmatpush.bf16.msrb.mxu0 %v3343_v18  ;;  %v3328_v37 = vld [vmem:[#allocation5 + $0xd0] sm:$0xf0]  ;;  %v3455_v38 = vor.u32 %v4696_v35, %v3454_v33  ;;  %v4694_v40 = vld [vmem:[#allocation5 + $0x1c4] sm:$0xf]  ;;  %v3310_v42 = vld [vmem:[#allocation5 + $0xa0] sm:$0xf] }
  0x26   :  { %648 = vmatpush.bf16.msrb.mxu1 %v3471_v22  ;;  %662 = vmatpush.bf16.msrb.mxu2 %v3347_v27  ;;  %v3331_v39 = vor.u32 %v4662_v36, %v3328_v37  ;;  %v3456_v41 = vld [vmem:[#allocation5 + $0x1d0] sm:$0xf0]  ;;  %v4660_v44 = vld [vmem:[#allocation5 + $0xac] sm:$0xf0]  ;;  %v3438_v45 = vld [vmem:[#allocation5 + $0x1a0] sm:$0xf] }
  0x27   :  { %148 = vperm.xlu0 %5009, %v141_v25   ;;  %676 = vmatpush.bf16.msrb.mxu3 %v3475_v30  ;;  %v3459_v43 = vor.u32 %v4694_v40, %v3456_v41  ;;  %v4692_v46 = vld [vmem:[#allocation5 + $0x1ac] sm:$0xf0]  ;;  %v3311_v47 = vor.u32 %v4660_v44, %v3310_v42  ;;  %v4658_v49 = vld [vmem:[#allocation5 + $0xa4] sm:$0xf]  ;;  %v3312_v50 = vld [vmem:[#allocation5 + $0xb0] sm:$0xf0] }
  0x28   :  { %v3439_v48 = vor.u32 %v4692_v46, %v3438_v45  ;;  %v4690_v51 = vld [vmem:[#allocation5 + $0x1a4] sm:$0xf]  ;;  %v3315_v52 = vor.u32 %v4658_v49, %v3312_v50  ;;  %v3440_v53 = vld [vmem:[#allocation5 + $0x1b0] sm:$0xf0]  ;;  %v3294_v54 = vld [vmem:[#allocation5 + $0x80] sm:$0xf] }
  0x29   :  { %635 = vmatpush.bf16.msrb.mxu0 %v3327_v34  ;;  %v4656_v55 = vld [vmem:[#allocation5 + $0x8c] sm:$0xf0]  ;;  %v3443_v56 = vor.u32 %v4690_v51, %v3440_v53  ;;  %v3422_v57 = vld [vmem:[#allocation5 + $0x180] sm:$0xf]  ;;  %v4654_v59 = vld [vmem:[#allocation5 + $0x84] sm:$0xf]  ;;  %v142_v51 = vlaneseq }
  0x2a   :  { %649 = vmatpush.bf16.msrb.mxu1 %v3455_v38  ;;  %663 = vmatpush.bf16.msrb.mxu2 %v3331_v39  ;;  %v4688_v58 = vld [vmem:[#allocation5 + $0x18c] sm:$0xf0]  ;;  %v3295_v60 = vor.u32 %v4656_v55, %v3294_v54  ;;  %v3296_v61 = vld [vmem:[#allocation5 + $0x90] sm:$0xf0]  ;;  %v4686_v62 = vld [vmem:[#allocation5 + $0x184] sm:$0xf] }
  0x2b   :  { %677 = vmatpush.bf16.msrb.mxu3 %v3459_v43  ;;  %v3424_v63 = vld [vmem:[#allocation5 + $0x190] sm:$0xf0]  ;;  %v3423_v0 = vor.u32 %v4688_v58, %v3422_v57  ;;  %v3299_v1 = vor.u32 %v4654_v59, %v3296_v61  ;;  %v3278_v3 = vld [vmem:[#allocation5 + $0x60] sm:$0xf]  ;;  %v4652_v4 = vld [vmem:[#allocation5 + $0x6c] sm:$0xf0] }
  0x2c   :  { %v3427_v2 = vor.u32 %v4686_v62, %v3424_v63  ;;  %v3406_v5 = vld [vmem:[#allocation5 + $0x160] sm:$0xf]  ;;  %v3279_v6 = vor.u32 %v4652_v4, %v3278_v3  ;;  %v4684_v7 = vld [vmem:[#allocation5 + $0x16c] sm:$0xf0]  ;;  %v4650_v8 = vld [vmem:[#allocation5 + $0x64] sm:$0xf] }
  0x2d   :  { %636 = vmatpush.bf16.msrb.mxu0 %v3311_v47  ;;  %v3280_v9 = vld [vmem:[#allocation5 + $0x70] sm:$0xf0]  ;;  %v3407_v10 = vor.u32 %v4684_v7, %v3406_v5  ;;  %v4682_v12 = vld [vmem:[#allocation5 + $0x164] sm:$0xf]  ;;  %v3262_v15 = vld [vmem:[#allocation5 + $0x40] sm:$0xf] }
  0x2e   :  { %650 = vmatpush.bf16.msrb.mxu1 %v3439_v48  ;;  %664 = vmatpush.bf16.msrb.mxu2 %v3315_v52  ;;  %v3283_v11 = vor.u32 %v4650_v8, %v3280_v9  ;;  %v3408_v13 = vld [vmem:[#allocation5 + $0x170] sm:$0xf0]  ;;  %v4648_v16 = vld [vmem:[#allocation5 + $0x4c] sm:$0xf0]  ;;  %v3390_v17 = vld [vmem:[#allocation5 + $0x140] sm:$0xf] }
  0x2f   :  { %678 = vmatpush.bf16.msrb.mxu3 %v3443_v56  ;;  %v3411_v14 = vor.u32 %v4682_v12, %v3408_v13  ;;  %v3263_v18 = vor.u32 %v4648_v16, %v3262_v15  ;;  %v4680_v19 = vld [vmem:[#allocation5 + $0x14c] sm:$0xf0]  ;;  %v4646_v20 = vld [vmem:[#allocation5 + $0x44] sm:$0xf]  ;;  %v3264_v21 = vld [vmem:[#allocation5 + $0x50] sm:$0xf0] }
  0x30   :  { %v3391_v22 = vor.u32 %v4680_v19, %v3390_v17  ;;  %v3267_v23 = vor.u32 %v4646_v20, %v3264_v21  ;;  %v4678_v24 = vld [vmem:[#allocation5 + $0x144] sm:$0xf]  ;;  %v3392_v25 = vld [vmem:[#allocation5 + $0x150] sm:$0xf0]  ;;  %v3246_v27 = vld [vmem:[#allocation5 + $0x20] sm:$0xf] }
  0x31   :  { %637 = vmatpush.bf16.msrb.mxu0 %v3295_v60  ;;  %v3395_v26 = vor.u32 %v4678_v24, %v3392_v25  ;;  %v4644_v28 = vld [vmem:[#allocation5 + $0x2c] sm:$0xf0]  ;;  %v3374_v29 = vld [vmem:[#allocation5 + $0x120] sm:$0xf]  ;;  %v4642_v32 = vld [vmem:[#allocation5 + $0x24] sm:$0xf] }
  0x32   :  { %651 = vmatpush.bf16.msrb.mxu1 %v3423_v0  ;;  %665 = vmatpush.bf16.msrb.mxu2 %v3299_v1  ;;  %v3247_v30 = vor.u32 %v4644_v28, %v3246_v27  ;;  %v4676_v31 = vld [vmem:[#allocation5 + $0x12c] sm:$0xf0]  ;;  %v3248_v33 = vld [vmem:[#allocation5 + $0x30] sm:$0xf0]  ;;  %v4674_v36 = vld [vmem:[#allocation5 + $0x124] sm:$0xf] }
  0x33   :  { %679 = vmatpush.bf16.msrb.mxu3 %v3427_v2  ;;  %v3375_v34 = vor.u32 %v4676_v31, %v3374_v29  ;;  %v3251_v35 = vor.u32 %v4642_v32, %v3248_v33  ;;  %v3376_v37 = vld [vmem:[#allocation5 + $0x130] sm:$0xf0]  ;;  %v3230_v39 = vld [vmem:[#allocation5] sm:$0xf]  ;;  %v4640_v40 = vld [vmem:[#allocation5 + $0xc] sm:$0xf0] }
  0x34   :  { %v3379_v38 = vor.u32 %v4674_v36, %v3376_v37  ;;  %v3231_v41 = vor.u32 %v4640_v40, %v3230_v39  ;;  %v3358_v42 = vld [vmem:[#allocation5 + $0x100] sm:$0xf]  ;;  %v4672_v43 = vld [vmem:[#allocation5 + $0x10c] sm:$0xf0]  ;;  %v4638_v44 = vld [vmem:[#allocation5 + $0x4] sm:$0xf] }
  0x35   :  { %638 = vmatpush.bf16.msrb.mxu0 %v3279_v6  ;;  %v3359_v45 = vor.u32 %v4672_v43, %v3358_v42  ;;  %v3232_v46 = vld [vmem:[#allocation5 + $0x10] sm:$0xf0]  ;;  %v4670_v47 = vld [vmem:[#allocation5 + $0x104] sm:$0xf]  ;;  %v143_v53 = vand.u32 127, %v142_v51  ;;  %v5208_v63 = vmov 0.0  }
  0x36   :  { %652 = vmatpush.bf16.msrb.mxu1 %v3407_v10  ;;  %666 = vmatpush.bf16.msrb.mxu2 %v3283_v11  ;;  %v3360_v48 = vld [vmem:[#allocation5 + $0x110] sm:$0xf0]  ;;  %v3235_v49 = vor.u32 %v4638_v44, %v3232_v46  ;;  %v3350_v54 = vld [vmem:[#allocation5 + $0xe8] sm:$0xf]  ;;  %v4669_v55 = vld [vmem:[#allocation5 + $0xf4] sm:$0xf0] }
  0x37   :  { %680 = vmatpush.bf16.msrb.mxu3 %v3411_v14  ;;  %v3363_v50 = vor.u32 %v4670_v47, %v3360_v48  ;;  %v3478_v57 = vld [vmem:[#allocation5 + $0x1e8] sm:$0xf]  ;;  %v4701_v58 = vld [vmem:[#allocation5 + $0x1f4] sm:$0xf0]  ;;  %v4667_v59 = vld [vmem:[#allocation5 + $0xec] sm:$0xf]  ;;  %v3351_v3 = vor.u32 %v4669_v55, %v3350_v54 }
  0x38   :  { %v3352_v60 = vld [vmem:[#allocation5 + $0xf8] sm:$0xf0]  ;;  %v4699_v61 = vld [vmem:[#allocation5 + $0x1ec] sm:$0xf]  ;;  %v3479_v4 = vor.u32 %v4701_v58, %v3478_v57  ;;  %v3334_v5 = vld [vmem:[#allocation5 + $0xc8] sm:$0xf] }
  0x39   :  { %639 = vmatpush.bf16.msrb.mxu0 %v3263_v18  ;;  %v3480_v62 = vld [vmem:[#allocation5 + $0x1f8] sm:$0xf0]  ;;  %v4665_v6 = vld [vmem:[#allocation5 + $0xd4] sm:$0xf0]  ;;  %v3355_v7 = vor.u32 %v4667_v59, %v3352_v60  ;;  %v3462_v9 = vld [vmem:[#allocation5 + $0x1c8] sm:$0xf] }
  0x3a   :  { %653 = vmatpush.bf16.msrb.mxu1 %v3391_v22  ;;  %667 = vmatpush.bf16.msrb.mxu2 %v3267_v23  ;;  %v3483_v8 = vor.u32 %v4699_v61, %v3480_v62  ;;  %v4697_v10 = vld [vmem:[#allocation5 + $0x1d4] sm:$0xf0]  ;;  %v4663_v11 = vld [vmem:[#allocation5 + $0xcc] sm:$0xf]  ;;  %v3336_v12 = vld [vmem:[#allocation5 + $0xd8] sm:$0xf0]  ;;  %v3335_v15 = vor.u32 %v4665_v6, %v3334_v5 }
  0x3b   :  { %681 = vmatpush.bf16.msrb.mxu3 %v3395_v26  ;;  %v4695_v13 = vld [vmem:[#allocation5 + $0x1cc] sm:$0xf]  ;;  %v3464_v14 = vld [vmem:[#allocation5 + $0x1d8] sm:$0xf0]  ;;  %v3463_v16 = vor.u32 %v4697_v10, %v3462_v9  ;;  %v3318_v17 = vld [vmem:[#allocation5 + $0xa8] sm:$0xf]  ;;  %v3339_v19 = vor.u32 %v4663_v11, %v3336_v12 }
  0x3c   :  { %v4661_v18 = vld [vmem:[#allocation5 + $0xb4] sm:$0xf0]  ;;  %v3467_v20 = vor.u32 %v4695_v13, %v3464_v14  ;;  %v3446_v21 = vld [vmem:[#allocation5 + $0x1a8] sm:$0xf]  ;;  %v4659_v23 = vld [vmem:[#allocation5 + $0xac] sm:$0xf] }
  0x3d   :  { %640 = vmatpush.bf16.msrb.mxu0 %v3247_v30  ;;  %v4693_v22 = vld [vmem:[#allocation5 + $0x1b4] sm:$0xf0]  ;;  %v3320_v24 = vld [vmem:[#allocation5 + $0xb8] sm:$0xf0]  ;;  %v4691_v25 = vld [vmem:[#allocation5 + $0x1ac] sm:$0xf]  ;;  %v3319_v27 = vor.u32 %v4661_v18, %v3318_v17 }
  0x3e   :  { %654 = vmatpush.bf16.msrb.mxu1 %v3375_v34  ;;  %668 = vmatpush.bf16.msrb.mxu2 %v3251_v35  ;;  %v3448_v26 = vld [vmem:[#allocation5 + $0x1b8] sm:$0xf0]  ;;  %v3447_v28 = vor.u32 %v4693_v22, %v3446_v21  ;;  %v3302_v29 = vld [vmem:[#allocation5 + $0x88] sm:$0xf]  ;;  %v4657_v30 = vld [vmem:[#allocation5 + $0x94] sm:$0xf0]  ;;  %v3323_v32 = vor.u32 %v4659_v23, %v3320_v24 }
  0x3f   :  { %682 = vmatpush.bf16.msrb.mxu3 %v3379_v38  ;;  %v3430_v31 = vld [vmem:[#allocation5 + $0x188] sm:$0xf]  ;;  %v3451_v33 = vor.u32 %v4691_v25, %v3448_v26  ;;  %v4689_v34 = vld [vmem:[#allocation5 + $0x194] sm:$0xf0]  ;;  %v4655_v35 = vld [vmem:[#allocation5 + $0x8c] sm:$0xf]  ;;  %v3303_v43 = vor.u32 %v4657_v30, %v3302_v29 }
  0x40   :  { %v3304_v36 = vld [vmem:[#allocation5 + $0x98] sm:$0xf0]  ;;  %v4687_v37 = vld [vmem:[#allocation5 + $0x18c] sm:$0xf]  ;;  %v134_v39 = vld [vmem:[#allocation2] sm:$0xff]  ;;  %v3431_v44 = vor.u32 %v4689_v34, %v3430_v31  ;;  %s5210_s0 = smov 128  }
  0x41   :  { %641 = vmatpush.bf16.msrb.mxu0 %v3231_v41  ;;  %v3432_v38 = vld [vmem:[#allocation5 + $0x198] sm:$0xf0]  ;;  %v136_v40 = vld [vmem:[#allocation2 + $0x10] sm:$0xff]  ;;  %v135_v41 = vld [vmem:[#allocation2 + $0x8] sm:$0xff]  ;;  %v3307_v47 = vor.u32 %v4655_v35, %v3304_v36  ;;  %s5211_s17 = smov 8  }
  0x42   :  { %655 = vmatpush.bf16.msrb.mxu1 %v3359_v45  ;;  %669 = vmatpush.bf16.msrb.mxu2 %v3235_v49  ;;  %v137_v42 = vld [vmem:[#allocation2 + $0x18] sm:$0xff]  ;;  %v3286_v45 = vld [vmem:[#allocation5 + $0x68] sm:$0xf]  ;;  %v3435_v48 = vor.u32 %v4687_v37, %v3432_v38  ;;  %v4651_v51 = vld [vmem:[#allocation5 + $0x6c] sm:$0xf] }
  0x43   :  { %683 = vmatpush.bf16.msrb.mxu3 %v3363_v50  ;;  %v4653_v46 = vld [vmem:[#allocation5 + $0x74] sm:$0xf0]  ;;  %v3414_v49 = vld [vmem:[#allocation5 + $0x168] sm:$0xf]  ;;  %v3288_v54 = vld [vmem:[#allocation5 + $0x78] sm:$0xf0] }
  0x44   :  { %v4685_v50 = vld [vmem:[#allocation5 + $0x174] sm:$0xf0]  ;;  %v4683_v55 = vld [vmem:[#allocation5 + $0x16c] sm:$0xf]  ;;  %v3287_v57 = vor.u32 %v4653_v46, %v3286_v45  ;;  %v3270_v59 = vld [vmem:[#allocation5 + $0x48] sm:$0xf]  ;;  %v3291_v61 = vor.u32 %v4651_v51, %v3288_v54 }
  0x45   :  { %v3415_v58 = vor.u32 %v4685_v50, %v3414_v49  ;;  %v4649_v60 = vld [vmem:[#allocation5 + $0x54] sm:$0xf0]  ;;  %v3382_v11 = vld [vmem:[#allocation5 + $0x128] sm:$0xf]  ;;  %v4643_v13 = vld [vmem:[#allocation5 + $0x2c] sm:$0xf] }
  0x46   :  { %v3271_v5 = vor.u32 %v4649_v60, %v3270_v59  ;;  %v4677_v12 = vld [vmem:[#allocation5 + $0x134] sm:$0xf0]  ;;  %v3256_v14 = vld [vmem:[#allocation5 + $0x38] sm:$0xf0]  ;;  %v3366_v21 = vld [vmem:[#allocation5 + $0x108] sm:$0xf] }
  0x47   :  { %v3383_v18 = vor.u32 %v4677_v12, %v3382_v11  ;;  %v3259_v22 = vor.u32 %v4643_v13, %v3256_v14  ;;  %v4673_v24 = vld [vmem:[#allocation5 + $0x114] sm:$0xf0]  ;;  %v4639_v25 = vld [vmem:[#allocation5 + $0xc] sm:$0xf]  ;;  %v3240_v26 = vld [vmem:[#allocation5 + $0x18] sm:$0xf0] }
  0x48   :  { %v3598_v29 = vld [vmem:[#allocation8 + $0xe0] sm:$0xf]  ;;  %v4736_v30 = vld [vmem:[#allocation8 + $0xec] sm:$0xf0]  ;;  %v3367_v34 = vor.u32 %v4673_v24, %v3366_v21  ;;  %v3243_v35 = vor.u32 %v4639_v25, %v3240_v26 }
  0x49   :  { %v3726_v31 = vld [vmem:[#allocation8 + $0x1e0] sm:$0xf]  ;;  %v3599_v37 = vor.u32 %v4736_v30, %v3598_v29  ;;  %v4796_v50 = vld [vmem:[#allocation8 + $0x2cc] sm:$0xf0]  ;;  %v3600_v29 = vld [vmem:[#allocation8 + $0xf0] sm:$0xf0] }
  0x4a   :  { %v3582_v38 = vld [vmem:[#allocation8 + $0xc0] sm:$0xf]  ;;  %v4728_v51 = vld [vmem:[#allocation8 + $0xac] sm:$0xf0] }
  0x4b   :  { %v3838_v49 = vld [vmem:[#allocation8 + $0x2c0] sm:$0xf]  ;;  %v4724_v60 = vld [vmem:[#allocation8 + $0x8c] sm:$0xf0] }
  0x4c   :  { %v3694_v54 = vld [vmem:[#allocation8 + $0x1a0] sm:$0xf]  ;;  %v4712_v11 = vld [vmem:[#allocation8 + $0x2c] sm:$0xf0] }
  0x4d   :  { %v3822_v14 = vld [vmem:[#allocation8 + $0x2a0] sm:$0xf]  ;;  %v4708_v24 = vld [vmem:[#allocation8 + $0xc] sm:$0xf0] }
  0x4e   :  { %v3806_v25 = vld [vmem:[#allocation8 + $0x280] sm:$0xf] }
  0x90   :  { %v146_v52 = vpop.permute.xlu0 %145 }
  0x91   :  { %vm150_vm1 = vcmp.eq.s32.totalorder %v146_v52, %v143_v53  ;;  %v5319_v52 = vpack.c.bf16 %v136_v40, %v134_v39  ;;  %v3854_v40 = vld [vmem:[#allocation8 + $0x2e0] sm:$0xf] }
  0x92   :  { %v3206_v0 = vsel %vm150_vm1, 1.0, %v5208_v63 }
  0x99   :  { %v149_v56 = vpop.permute.xlu0 %148 }
  0x9a   :  { %vm151_vm2 = vcmp.eq.s32.totalorder %v149_v56, %v143_v53  ;;  %v5321_v53 = vpack.c.bf16 %v137_v42, %v135_v41  ;;  %v3416_v56 = vld [vmem:[#allocation5 + $0x178] sm:$0xf0]  ;;  %v4800_v41 = vld [vmem:[#allocation8 + $0x2ec] sm:$0xf0] }
  0x9b   :  { %v3207_v1 = vsel %vm151_vm2, 1.0, %v5208_v63  ;;  %v3419_v62 = vor.u32 %v4683_v55, %v3416_v56  ;;  %v3398_v63 = vld [vmem:[#allocation5 + $0x148] sm:$0xf]  ;;  %v4732_v42 = vld [vmem:[#allocation8 + $0xcc] sm:$0xf0]  ;;  %v3855_v45 = vor.u32 %v4800_v41, %v3854_v40  ;;  %v3839_v56 = vor.u32 %v4796_v50, %v3838_v49 }
  0x9c   :  { %v156_v2 = vpack.c.bf16 %v3207_v1, %v3206_v0  ;;  %v4681_v0 = vld [vmem:[#allocation5 + $0x154] sm:$0xf0]  ;;  %v4647_v1 = vld [vmem:[#allocation5 + $0x4c] sm:$0xf]  ;;  %v3583_v46 = vor.u32 %v4732_v42, %v3582_v38  ;;  %v4760_v55 = vld [vmem:[#allocation8 + $0x1ac] sm:$0xf0] }
  0x9d   :  { %v3399_v6 = vor.u32 %v4681_v0, %v3398_v63  ;;  %v3695_v59 = vor.u32 %v4760_v55, %v3694_v54  ;;  %v4784_v38 = vld [vmem:[#allocation8 + $0x26c] sm:$0xf0]  ;;  %v4730_v41 = vld [vmem:[#allocation8 + $0xc4] sm:$0xf]  ;;  %v3584_v42 = vld [vmem:[#allocation8 + $0xd0] sm:$0xf0] }
  0x9e   :  { %3224 = vmatmul.msk.bf16.vlgmr.msra.gmra.mxu0 %vm241_vm3, %v156_v2  ;;  %3225 = vmatmul.msk.bf16.vlgmr.msra.gmra.mxu1 %vm241_vm3, %v156_v2  ;;  %v4766_v50 = vld [vmem:[#allocation8 + $0x1e4] sm:$0xf]  ;;  %v3774_v55 = vld [vmem:[#allocation8 + $0x240] sm:$0xf] }
  0x9f   :  { %3226 = vmatmul.msk.bf16.vlgmr.msra.gmra.mxu2 %vm241_vm3, %v156_v2  ;;  %3227 = vmatmul.msk.bf16.vlgmr.msra.gmra.mxu3 %vm241_vm3, %v156_v2  ;;  %v3272_v2 = vld [vmem:[#allocation5 + $0x58] sm:$0xf0] }
  0xa0   :  { %690 = vmatpush.bf16.msra.mxu0 %v3351_v3  ;;  %704 = vmatpush.bf16.msra.mxu1 %v3479_v4  ;;  %v4679_v3 = vld [vmem:[#allocation5 + $0x14c] sm:$0xf]  ;;  %v3400_v4 = vld [vmem:[#allocation5 + $0x158] sm:$0xf0]  ;;  %v3275_v9 = vor.u32 %v4647_v1, %v3272_v2  ;;  %v3534_v1 = vld [vmem:[#allocation8 + $0x60] sm:$0xf] }
  0xa1   :  { %718 = vmatpush.bf16.msra.mxu2 %v3355_v7  ;;  %732 = vmatpush.bf16.msra.mxu3 %v3483_v8  ;;  %v3254_v7 = vld [vmem:[#allocation5 + $0x28] sm:$0xf]  ;;  %v4645_v8 = vld [vmem:[#allocation5 + $0x34] sm:$0xf0]  ;;  %v3403_v10 = vor.u32 %v4679_v3, %v3400_v4  ;;  %v4720_v2 = vld [vmem:[#allocation8 + $0x6c] sm:$0xf0] }
  0xa2   :  { %v3255_v17 = vor.u32 %v4645_v8, %v3254_v7  ;;  %v4716_v3 = vld [vmem:[#allocation8 + $0x4c] sm:$0xf0]  ;;  %v3982_v7 = vld [vmem:[#allocation8 + $0x3e0] sm:$0xf] }
  0xa4   :  { %691 = vmatpush.bf16.msra.mxu0 %v3335_v15  ;;  %705 = vmatpush.bf16.msra.mxu1 %v3463_v16  ;;  %v4675_v15 = vld [vmem:[#allocation5 + $0x12c] sm:$0xf]  ;;  %v3384_v16 = vld [vmem:[#allocation5 + $0x138] sm:$0xf0] }
  0xa5   :  { %719 = vmatpush.bf16.msra.mxu2 %v3339_v19  ;;  %733 = vmatpush.bf16.msra.mxu3 %v3467_v20  ;;  %v3238_v19 = vld [vmem:[#allocation5 + $0x8] sm:$0xf]  ;;  %v4641_v20 = vld [vmem:[#allocation5 + $0x14] sm:$0xf0]  ;;  %v3387_v23 = vor.u32 %v4675_v15, %v3384_v16  ;;  %v4792_v15 = vld [vmem:[#allocation8 + $0x2ac] sm:$0xf0] }
  0xa6   :  { %v3646_v16 = vld [vmem:[#allocation8 + $0x140] sm:$0xf] }
  0xa8   :  { %692 = vmatpush.bf16.msra.mxu0 %v3319_v27  ;;  %706 = vmatpush.bf16.msra.mxu1 %v3447_v28  ;;  %v4671_v27 = vld [vmem:[#allocation5 + $0x10c] sm:$0xf]  ;;  %v3368_v28 = vld [vmem:[#allocation5 + $0x118] sm:$0xf0] }
  0xa9   :  { %720 = vmatpush.bf16.msra.mxu2 %v3323_v32  ;;  %734 = vmatpush.bf16.msra.mxu3 %v3451_v33  ;;  %v4768_v32 = vld [vmem:[#allocation8 + $0x1ec] sm:$0xf0]  ;;  %v3239_v33 = vor.u32 %v4641_v20, %v3238_v19  ;;  %v3371_v36 = vor.u32 %v4671_v27, %v3368_v28  ;;  %v3966_v19 = vld [vmem:[#allocation8 + $0x3c0] sm:$0xf]  ;;  %v4734_v28 = vld [vmem:[#allocation8 + $0xe4] sm:$0xf] }
  0xaa   :  { %v3727_v39 = vor.u32 %v4768_v32, %v3726_v31  ;;  %v4828_v20 = vld [vmem:[#allocation8 + $0x3cc] sm:$0xf0]  ;;  %v3603_v31 = vor.u32 %v4734_v28, %v3600_v29  ;;  %v3630_v32 = vld [vmem:[#allocation8 + $0x120] sm:$0xf]  ;;  %v4714_v28 = vld [vmem:[#allocation8 + $0x44] sm:$0xf] }
  0xab   :  { %v4788_v27 = vld [vmem:[#allocation8 + $0x28c] sm:$0xf0]  ;;  %v3520_v29 = vld [vmem:[#allocation8 + $0x50] sm:$0xf0] }
  0xac   :  { %693 = vmatpush.bf16.msra.mxu0 %v3303_v43  ;;  %707 = vmatpush.bf16.msra.mxu1 %v3431_v44  ;;  %v3710_v43 = vld [vmem:[#allocation8 + $0x1c0] sm:$0xf]  ;;  %v4764_v44 = vld [vmem:[#allocation8 + $0x1cc] sm:$0xf0]  ;;  %v3807_v30 = vor.u32 %v4788_v27, %v3806_v25  ;;  %v4754_v25 = vld [vmem:[#allocation8 + $0x184] sm:$0xf] }
  0xad   :  { %721 = vmatpush.bf16.msra.mxu2 %v3307_v47  ;;  %735 = vmatpush.bf16.msra.mxu3 %v3435_v48  ;;  %v3566_v47 = vld [vmem:[#allocation8 + $0xa0] sm:$0xf]  ;;  %v3711_v48 = vor.u32 %v4764_v44, %v3710_v43  ;;  %v3587_v44 = vor.u32 %v4730_v41, %v3584_v42  ;;  %v3984_v41 = vld [vmem:[#allocation8 + $0x3f0] sm:$0xf0] }
  0xae   :  { %642 = vmatmul.bf16.vlgmr.msrb.gmra.mxu0 %v5319_v52  ;;  %656 = vmatmul.bf16.vlgmr.msrb.gmra.mxu1 %v5321_v53  ;;  %v3614_v43 = vld [vmem:[#allocation8 + $0x100] sm:$0xf] }
  0xaf   :  { %670 = vmatmul.bf16.vlgmr.msrb.gmra.mxu2 %v5319_v52  ;;  %684 = vmatmul.bf16.vlgmr.msrb.gmra.mxu3 %v5321_v53 }
  0xb0   :  { %694 = vmatpush.bf16.msra.mxu0 %v3287_v57  ;;  %708 = vmatpush.bf16.msra.mxu1 %v3415_v58  ;;  %v3567_v57 = vor.u32 %v4728_v51, %v3566_v47  ;;  %v3550_v58 = vld [vmem:[#allocation8 + $0x80] sm:$0xf]  ;;  %v4820_v47 = vld [vmem:[#allocation8 + $0x38c] sm:$0xf0]  ;;  %v3728_v51 = vld [vmem:[#allocation8 + $0x1f0] sm:$0xf0] }
  0xb1   :  { %722 = vmatpush.bf16.msra.mxu2 %v3291_v61  ;;  %736 = vmatpush.bf16.msra.mxu3 %v3419_v62  ;;  %v3678_v61 = vld [vmem:[#allocation8 + $0x180] sm:$0xf]  ;;  %v4756_v62 = vld [vmem:[#allocation8 + $0x18c] sm:$0xf0]  ;;  %v3551_v63 = vor.u32 %v4724_v60, %v3550_v58  ;;  %v3731_v54 = vor.u32 %v4766_v50, %v3728_v51  ;;  %v4726_v58 = vld [vmem:[#allocation8 + $0xa4] sm:$0xf] }
  0xb2   :  { %v3679_v0 = vor.u32 %v4756_v62, %v3678_v61  ;;  %v3918_v61 = vld [vmem:[#allocation8 + $0x360] sm:$0xf]  ;;  %v4816_v62 = vld [vmem:[#allocation8 + $0x36c] sm:$0xf0]  ;;  %v4746_v51 = vld [vmem:[#allocation8 + $0x144] sm:$0xf] }
  0xb4   :  { %695 = vmatpush.bf16.msra.mxu0 %v3271_v5  ;;  %709 = vmatpush.bf16.msra.mxu1 %v3399_v6  ;;  %v3662_v5 = vld [vmem:[#allocation8 + $0x160] sm:$0xf]  ;;  %v4752_v6 = vld [vmem:[#allocation8 + $0x16c] sm:$0xf0] }
  0xb5   :  { %723 = vmatpush.bf16.msra.mxu2 %v3275_v9  ;;  %737 = vmatpush.bf16.msra.mxu3 %v3403_v10  ;;  %v3663_v8 = vor.u32 %v4752_v6, %v3662_v5  ;;  %v4832_v9 = vld [vmem:[#allocation8 + $0x3ec] sm:$0xf0]  ;;  %v3502_v10 = vld [vmem:[#allocation8 + $0x20] sm:$0xf]  ;;  %v3552_v5 = vld [vmem:[#allocation8 + $0x90] sm:$0xf0] }
  0xb6   :  { %v3983_v12 = vor.u32 %v4832_v9, %v3982_v7  ;;  %v3503_v13 = vor.u32 %v4712_v11, %v3502_v10  ;;  %v3902_v7 = vld [vmem:[#allocation8 + $0x340] sm:$0xf]  ;;  %v4758_v10 = vld [vmem:[#allocation8 + $0x1a4] sm:$0xf]  ;;  %v3696_v11 = vld [vmem:[#allocation8 + $0x1b0] sm:$0xf0] }
  0xb8   :  { %696 = vmatpush.bf16.msra.mxu0 %v3255_v17  ;;  %710 = vmatpush.bf16.msra.mxu1 %v3383_v18  ;;  %v3823_v17 = vor.u32 %v4792_v15, %v3822_v14  ;;  %v4748_v18 = vld [vmem:[#allocation8 + $0x14c] sm:$0xf0] }
  0xb9   :  { %724 = vmatpush.bf16.msra.mxu2 %v3259_v22  ;;  %738 = vmatpush.bf16.msra.mxu3 %v3387_v23  ;;  %v3647_v21 = vor.u32 %v4748_v18, %v3646_v16  ;;  %v3967_v22 = vor.u32 %v4828_v20, %v3966_v19  ;;  %v3486_v23 = vld [vmem:[#allocation8] sm:$0xf]  ;;  %v4772_v14 = vld [vmem:[#allocation8 + $0x20c] sm:$0xf0]  ;;  %v4718_v16 = vld [vmem:[#allocation8 + $0x64] sm:$0xf] }
  0xba   :  { %v3487_v26 = vor.u32 %v4708_v24, %v3486_v23  ;;  %v4798_v18 = vld [vmem:[#allocation8 + $0x2e4] sm:$0xf]  ;;  %v3856_v20 = vld [vmem:[#allocation8 + $0x2f0] sm:$0xf0] }
  0xbb   :  { %v3859_v23 = vor.u32 %v4798_v18, %v3856_v20  ;;  %v4778_v18 = vld [vmem:[#allocation8 + $0x244] sm:$0xf] }
  0xbc   :  { %697 = vmatpush.bf16.msra.mxu0 %v3239_v33  ;;  %711 = vmatpush.bf16.msra.mxu1 %v3367_v34  ;;  %v4744_v33 = vld [vmem:[#allocation8 + $0x12c] sm:$0xf0]  ;;  %v3950_v34 = vld [vmem:[#allocation8 + $0x3a0] sm:$0xf] }
  0xbd   :  { %725 = vmatpush.bf16.msra.mxu2 %v3243_v35  ;;  %739 = vmatpush.bf16.msra.mxu3 %v3371_v36  ;;  %v3631_v35 = vor.u32 %v4744_v33, %v3630_v32  ;;  %v4824_v36 = vld [vmem:[#allocation8 + $0x3ac] sm:$0xf0]  ;;  %v3840_v32 = vld [vmem:[#allocation8 + $0x2d0] sm:$0xf0]  ;;  %v3870_v33 = vld [vmem:[#allocation8 + $0x300] sm:$0xf] }
  0xbf   :  { %698 = vmatmul.bf16.vlgmr.msra.gmra.mxu0 %v5319_v52  ;;  %712 = vmatmul.bf16.vlgmr.msra.gmra.mxu1 %v5321_v53 }
  0xc0   :  { %1562 = vmatpush.bf16.msrb.mxu0 %v3599_v37  ;;  %1576 = vmatpush.bf16.msrb.mxu1 %v3727_v39  ;;  %v3790_v37 = vld [vmem:[#allocation8 + $0x260] sm:$0xf]  ;;  %v3951_v39 = vor.u32 %v4824_v36, %v3950_v34  ;;  %v4804_v34 = vld [vmem:[#allocation8 + $0x30c] sm:$0xf0] }
  0xc1   :  { %726 = vmatmul.bf16.vlgmr.msra.gmra.mxu2 %v5319_v52  ;;  %740 = vmatmul.bf16.vlgmr.msra.gmra.mxu3 %v5321_v53  ;;  %v3535_v52 = vor.u32 %v4720_v2, %v3534_v1  ;;  %v3518_v53 = vld [vmem:[#allocation8 + $0x40] sm:$0xf]  ;;  %v3791_v40 = vor.u32 %v4784_v38, %v3790_v37  ;;  %v3712_v1 = vld [vmem:[#allocation8 + $0x1d0] sm:$0xf0]  ;;  %v3871_v36 = vor.u32 %v4804_v34, %v3870_v33  ;;  %v4750_v37 = vld [vmem:[#allocation8 + $0x164] sm:$0xf] }
  0xc2   :  { %1590 = vmatpush.bf16.msrb.mxu2 %v3855_v45  ;;  %v3519_v4 = vor.u32 %v4716_v3, %v3518_v53  ;;  %1604 = vmatpush.bf16.msrb.mxu3 %v3983_v12  ;;  %v4740_v45 = vld [vmem:[#allocation8 + $0x10c] sm:$0xf0]  ;;  %v3699_v12 = vor.u32 %v4758_v10, %v3696_v11  ;;  %v3664_v38 = vld [vmem:[#allocation8 + $0x170] sm:$0xf0]  ;;  %v5349_v34 = vld [vmem:[%s5440_s4] sm:$0xf] }
  0xc3   :  { %v4776_v53 = vld [vmem:[#allocation8 + $0x22c] sm:$0xf0]  ;;  %v3904_v33 = vld [vmem:[#allocation8 + $0x350] sm:$0xf0] }
  0xc4   :  { %1563 = vmatpush.bf16.msrb.mxu0 %v3583_v46  ;;  %1577 = vmatpush.bf16.msrb.mxu1 %v3711_v48  ;;  %v3934_v46 = vld [vmem:[#allocation8 + $0x380] sm:$0xf]  ;;  %v3615_v48 = vor.u32 %v4740_v45, %v3614_v43  ;;  %v4710_v43 = vld [vmem:[#allocation8 + $0x24] sm:$0xf] }
  0xc5   :  { %v3935_v49 = vor.u32 %v4820_v47, %v3934_v46  ;;  %v4790_v45 = vld [vmem:[#allocation8 + $0x2a4] sm:$0xf] }
  0xc6   :  { %1591 = vmatpush.bf16.msrb.mxu2 %v3839_v56  ;;  %1605 = vmatpush.bf16.msrb.mxu3 %v3967_v22  ;;  %v4780_v56 = vld [vmem:[#allocation8 + $0x24c] sm:$0xf0] }
  0xc7   :  { %v4808_v22 = vld [vmem:[#allocation8 + $0x32c] sm:$0xf0] }
  0xc8   :  { %1564 = vmatpush.bf16.msrb.mxu0 %v3567_v57  ;;  %1578 = vmatpush.bf16.msrb.mxu1 %v3695_v59  ;;  %v3775_v57 = vor.u32 %v4780_v56, %v3774_v55  ;;  %v3568_v59 = vld [vmem:[#allocation8 + $0xb0] sm:$0xf0]  ;;  %v4826_v55 = vld [vmem:[#allocation8 + $0x3c4] sm:$0xf] }
  0xc9   :  { %v3571_v60 = vor.u32 %v4726_v58, %v3568_v59  ;;  %v4706_v59 = vld [vmem:[#allocation8 + $0x4] sm:$0xf] }
  0xca   :  { %1592 = vmatpush.bf16.msrb.mxu2 %v3823_v17  ;;  %1606 = vmatpush.bf16.msrb.mxu3 %v3951_v39  ;;  %v3536_v17 = vld [vmem:[#allocation8 + $0x70] sm:$0xf0]  ;;  %v4830_v39 = vld [vmem:[#allocation8 + $0x3e4] sm:$0xf] }
  0xcb   :  { %v3539_v19 = vor.u32 %v4718_v16, %v3536_v17  ;;  %v3987_v42 = vor.u32 %v4830_v39, %v3984_v41  ;;  %v3936_v16 = vld [vmem:[#allocation8 + $0x390] sm:$0xf0]  ;;  %v4806_v41 = vld [vmem:[#allocation8 + $0x324] sm:$0xf] }
  0xcc   :  { %1565 = vmatpush.bf16.msrb.mxu0 %v3551_v63  ;;  %1579 = vmatpush.bf16.msrb.mxu1 %v3679_v0  ;;  %v3919_v63 = vor.u32 %v4816_v62, %v3918_v61  ;;  %v4762_v0 = vld [vmem:[#allocation8 + $0x1c4] sm:$0xf] }
  0xcd   :  { %v3715_v2 = vor.u32 %v4762_v0, %v3712_v1  ;;  %v4786_v61 = vld [vmem:[#allocation8 + $0x284] sm:$0xf] }
  0xce   :  { %1593 = vmatpush.bf16.msrb.mxu2 %v3807_v30  ;;  %1607 = vmatpush.bf16.msrb.mxu3 %v3935_v49  ;;  %v4794_v30 = vld [vmem:[#allocation8 + $0x2c4] sm:$0xf]  ;;  %v3824_v49 = vld [vmem:[#allocation8 + $0x2b0] sm:$0xf0] }
  0xcf   :  { %v3827_v50 = vor.u32 %v4790_v45, %v3824_v49  ;;  %v4742_v1 = vld [vmem:[#allocation8 + $0x124] sm:$0xf] }
  0xd0   :  { %1566 = vmatpush.bf16.msrb.mxu0 %v3535_v52  ;;  %1580 = vmatpush.bf16.msrb.mxu1 %v3663_v8  ;;  %v3758_v52 = vld [vmem:[#allocation8 + $0x220] sm:$0xf]  ;;  %v4812_v8 = vld [vmem:[#allocation8 + $0x34c] sm:$0xf0] }
  0xd1   :  { %v3759_v3 = vor.u32 %v4776_v53, %v3758_v52  ;;  %v3903_v9 = vor.u32 %v4812_v8, %v3902_v7  ;;  %v4822_v53 = vld [vmem:[#allocation8 + $0x3a4] sm:$0xf]  ;;  %v3792_v8 = vld [vmem:[#allocation8 + $0x270] sm:$0xf0] }
  0xd2   :  { %1594 = vmatpush.bf16.msrb.mxu2 %v3791_v40  ;;  %1608 = vmatpush.bf16.msrb.mxu3 %v3919_v63  ;;  %v3667_v40 = vor.u32 %v4750_v37, %v3664_v38  ;;  %v3808_v63 = vld [vmem:[#allocation8 + $0x290] sm:$0xf0]  ;;  %v4782_v7 = vld [vmem:[#allocation8 + $0x264] sm:$0xf] }
  0xd3   :  { %v3811_v0 = vor.u32 %v4786_v61, %v3808_v63  ;;  %v3795_v11 = vor.u32 %v4782_v7, %v3792_v8  ;;  %v3744_v37 = vld [vmem:[#allocation8 + $0x210] sm:$0xf0] }
  0xd4   :  { %1567 = vmatpush.bf16.msrb.mxu0 %v3519_v4  ;;  %1581 = vmatpush.bf16.msrb.mxu1 %v3647_v21  ;;  %v4722_v4 = vld [vmem:[#allocation8 + $0x84] sm:$0xf]  ;;  %v3886_v21 = vld [vmem:[#allocation8 + $0x320] sm:$0xf] }
  0xd5   :  { %v3555_v6 = vor.u32 %v4722_v4, %v3552_v5  ;;  %v3887_v24 = vor.u32 %v4808_v22, %v3886_v21  ;;  %v4814_v21 = vld [vmem:[#allocation8 + $0x364] sm:$0xf]  ;;  %v3920_v22 = vld [vmem:[#allocation8 + $0x370] sm:$0xf0] }
  0xd6   :  { %1595 = vmatpush.bf16.msrb.mxu2 %v3775_v57  ;;  %1609 = vmatpush.bf16.msrb.mxu3 %v3903_v9  ;;  %v3968_v57 = vld [vmem:[#allocation8 + $0x3d0] sm:$0xf0] }
  0xd7   :  { %v3971_v58 = vor.u32 %v4826_v55, %v3968_v57  ;;  %v3872_v55 = vld [vmem:[#allocation8 + $0x310] sm:$0xf0] }
  0xd8   :  { %1568 = vmatpush.bf16.msrb.mxu0 %v3503_v13  ;;  %1582 = vmatpush.bf16.msrb.mxu1 %v3631_v35  ;;  %v3742_v13 = vld [vmem:[#allocation8 + $0x200] sm:$0xf]  ;;  %v3843_v35 = vor.u32 %v4794_v30, %v3840_v32  ;;  %v4810_v32 = vld [vmem:[#allocation8 + $0x344] sm:$0xf] }
  0xd9   :  { %v3743_v15 = vor.u32 %v4772_v14, %v3742_v13  ;;  %v3616_v13 = vld [vmem:[#allocation8 + $0x110] sm:$0xf0]  ;;  %v4818_v14 = vld [vmem:[#allocation8 + $0x384] sm:$0xf] }
  0xda   :  { %1596 = vmatpush.bf16.msrb.mxu2 %v3759_v3  ;;  %1610 = vmatpush.bf16.msrb.mxu3 %v3887_v24  ;;  %v3952_v3 = vld [vmem:[#allocation8 + $0x3b0] sm:$0xf0]  ;;  %v3939_v17 = vor.u32 %v4818_v14, %v3936_v16  ;;  %v4733_v14 = vld [vmem:[#allocation8 + $0xd4] sm:$0xf0] }
  0xdc   :  { %1569 = vmatpush.bf16.msrb.mxu0 %v3487_v26  ;;  %1583 = vmatpush.bf16.msrb.mxu1 %v3615_v48  ;;  %v3680_v26 = vld [vmem:[#allocation8 + $0x190] sm:$0xf0] }
  0xdd   :  { %v3683_v27 = vor.u32 %v4754_v25, %v3680_v26  ;;  %v4774_v26 = vld [vmem:[#allocation8 + $0x224] sm:$0xf] }
  0xde   :  { %1597 = vmatpush.bf16.msrb.mxu2 %v3743_v15  ;;  %1611 = vmatpush.bf16.msrb.mxu3 %v3871_v36  ;;  %v4770_v36 = vld [vmem:[#allocation8 + $0x204] sm:$0xf] }
  0xdf   :  { %v3747_v38 = vor.u32 %v4770_v36, %v3744_v37  ;;  %v3718_v37 = vld [vmem:[#allocation8 + $0x1c8] sm:$0xf] }
  0xe0   :  { %1618 = vmatpush.bf16.msra.mxu0 %v3603_v31  ;;  %1632 = vmatpush.bf16.msra.mxu1 %v3731_v54  ;;  %v3523_v31 = vor.u32 %v4714_v28, %v3520_v29  ;;  %v3648_v54 = vld [vmem:[#allocation8 + $0x150] sm:$0xf0] }
  0xe1   :  { %v3651_v56 = vor.u32 %v4746_v51, %v3648_v54  ;;  %v4802_v54 = vld [vmem:[#allocation8 + $0x304] sm:$0xf] }
  0xe2   :  { %1646 = vmatpush.bf16.msra.mxu2 %v3859_v23  ;;  %1660 = vmatpush.bf16.msra.mxu3 %v3987_v42  ;;  %v3923_v23 = vor.u32 %v4814_v21, %v3920_v22  ;;  %v3888_v42 = vld [vmem:[#allocation8 + $0x330] sm:$0xf0]  ;;  %v4769_v21 = vld [vmem:[#allocation8 + $0x1f4] sm:$0xf0]  ;;  %v3574_v22 = vld [vmem:[#allocation8 + $0xa8] sm:$0xf] }
  0xe4   :  { %1619 = vmatpush.bf16.msra.mxu0 %v3587_v44  ;;  %1633 = vmatpush.bf16.msra.mxu1 %v3715_v2  ;;  %v3504_v44 = vld [vmem:[#allocation8 + $0x30] sm:$0xf0] }
  0xe5   :  { %v3507_v48 = vor.u32 %v4710_v43, %v3504_v44  ;;  %v3632_v2 = vld [vmem:[#allocation8 + $0x130] sm:$0xf0]  ;;  %v3891_v43 = vor.u32 %v4806_v41, %v3888_v42  ;;  %v4725_v41 = vld [vmem:[#allocation8 + $0x94] sm:$0xf0] }
  0xe6   :  { %1647 = vmatpush.bf16.msra.mxu2 %v3843_v35  ;;  %1661 = vmatpush.bf16.msra.mxu3 %v3971_v58  ;;  %v3635_v52 = vor.u32 %v4742_v1, %v3632_v2  ;;  %v3907_v35 = vor.u32 %v4810_v32, %v3904_v33  ;;  %v3606_v1 = vld [vmem:[#allocation8 + $0xe8] sm:$0xf] }
  0xe8   :  { %1620 = vmatpush.bf16.msra.mxu0 %v3571_v60  ;;  %1634 = vmatpush.bf16.msra.mxu1 %v3699_v12  ;;  %v3488_v60 = vld [vmem:[#allocation8 + $0x10] sm:$0xf0]  ;;  %v4738_v12 = vld [vmem:[#allocation8 + $0x104] sm:$0xf] }
  0xe9   :  { %v3491_v62 = vor.u32 %v4706_v59, %v3488_v60  ;;  %v3619_v15 = vor.u32 %v4738_v12, %v3616_v13  ;;  %v749_v59 = vperm.slane %v5349_v34, 1  ;;  %v3590_v13 = vld [vmem:[#allocation8 + $0xc8] sm:$0xf] }
  0xea   :  { %1648 = vmatpush.bf16.msra.mxu2 %v3827_v50 }
  0xec   :  { %1621 = vmatpush.bf16.msra.mxu0 %v3555_v6  ;;  %1635 = vmatpush.bf16.msra.mxu1 %v3683_v27  ;;  %v3955_v6 = vor.u32 %v4822_v53, %v3952_v3  ;;  %v3760_v27 = vld [vmem:[#allocation8 + $0x230] sm:$0xf0] }
  0xed   :  { %v3763_v30 = vor.u32 %v4774_v26, %v3760_v27 }
  0xee   :  { %1649 = vmatpush.bf16.msra.mxu2 %v3811_v0  ;;  %1662 = vmatpush.bf16.msra.mxu3 %v3955_v6 }
  0xf0   :  { %1622 = vmatpush.bf16.msra.mxu0 %v3539_v19  ;;  %1636 = vmatpush.bf16.msra.mxu1 %v3667_v40  ;;  %v3776_v19 = vld [vmem:[#allocation8 + $0x250] sm:$0xf0]  ;;  %v748_v40 = vperm.slane %v5349_v34, 0 }
  0xf1   :  { %v3779_v20 = vor.u32 %v4778_v18, %v3776_v19  ;;  %v3591_v19 = vor.u32 %v4733_v14, %v3590_v13  ;;  %v4753_v14 = vld [vmem:[#allocation8 + $0x174] sm:$0xf0] }
  0xf2   :  { %1650 = vmatpush.bf16.msra.mxu2 %v3795_v11  ;;  %1663 = vmatpush.bf16.msra.mxu3 %v3939_v17  ;;  %v750_v17 = vperm.slane %v5349_v34, 2 }
  0xf4   :  { %1623 = vmatpush.bf16.msra.mxu0 %v3523_v31  ;;  %1637 = vmatpush.bf16.msra.mxu1 %v3651_v56  ;;  %v3875_v56 = vor.u32 %v4802_v54, %v3872_v55 }
  0xf6   :  { %1651 = vmatpush.bf16.msra.mxu2 %v3779_v20  ;;  %1664 = vmatpush.bf16.msra.mxu3 %v3923_v23  ;;  %v3734_v20 = vld [vmem:[#allocation8 + $0x1e8] sm:$0xf]  ;;  %v4729_v23 = vld [vmem:[#allocation8 + $0xb4] sm:$0xf0] }
  0xf7   :  { %v3575_v36 = vor.u32 %v4729_v23, %v3574_v22 }
  0xf8   :  { %1624 = vmatpush.bf16.msra.mxu0 %v3507_v48  ;;  %1638 = vmatpush.bf16.msra.mxu1 %v3635_v52 }
  0xfa   :  { %1652 = vmatpush.bf16.msra.mxu2 %v3763_v30  ;;  %1665 = vmatpush.bf16.msra.mxu3 %v3907_v35 }
  0xfc   :  { %1625 = vmatpush.bf16.msra.mxu0 %v3491_v62  ;;  %1639 = vmatpush.bf16.msra.mxu1 %v3619_v15 }
  0xfe   :  { %1653 = vmatpush.bf16.msra.mxu2 %v3747_v38  ;;  %1666 = vmatpush.bf16.msra.mxu3 %v3891_v43  ;;  %v4765_v38 = vld [vmem:[#allocation8 + $0x1d4] sm:$0xf0] }
 0x102   :  { %1667 = vmatpush.bf16.msra.mxu3 %v3875_v56  ;;  %v3862_v56 = vld [vmem:[#allocation8 + $0x2e8] sm:$0xf] }
 0x11b   :  { %v5331_v46 = vpop.f32.mrf.mxu0  ;;  %v5333_v47 = vpop.f32.mrf.mxu1 }
 0x122   :  { %v5335_v4 = vpop.f32.mrf.mxu2  ;;  %v5337_v5 = vpop.f32.mrf.mxu3 }
 0x123   :  { %v269_v9 = vpop.f32.mrf.mxu0  ;;  %v5339_v10 = vpop.f32.mrf.mxu1 }
 0x12a   :  { %v5341_v24 = vpop.f32.mrf.mxu2  ;;  %v5343_v25 = vpop.f32.mrf.mxu3 }
 0x12b   :  { %v643_v28 = vpop.f32.mrf.mxu0  ;;  %v657_v29 = vpop.f32.mrf.mxu1 }
 0x12c   :  { %v644_v31 = vadd.f32 %v643_v28, %v5331_v46 }
 0x12e   :  { %v658_v39 = vadd.f32 %v657_v29, %v644_v31  ;;  %v3735_v31 = vor.u32 %v4769_v21, %v3734_v20  ;;  %v3830_v20 = vld [vmem:[#allocation8 + $0x2a8] sm:$0xf]  ;;  %v4793_v21 = vld [vmem:[#allocation8 + $0x2b4] sm:$0xf0] }
 0x130   :  { %v756_v50 = vadd.f32 %v748_v40, %v658_v39 }
 0x132   :  { %v671_v44 = vpop.f32.mrf.mxu2  ;;  %v685_v45 = vpop.f32.mrf.mxu3  ;;  %v764_v60 = vmul.f32 0.2, %v756_v50 }
 0x133   :  { %v672_v46 = vadd.f32 %v671_v44, %v5333_v47  ;;  %v645_v48 = vpop.f32.mrf.mxu0  ;;  %v659_v49 = vpop.f32.mrf.mxu1  ;;  %v4737_v47 = vld [vmem:[#allocation8 + $0xf4] sm:$0xf0]  ;;  %v3719_v44 = vor.u32 %v4765_v38, %v3718_v37  ;;  %v3814_v38 = vld [vmem:[#allocation8 + $0x288] sm:$0xf] }
 0x134   :  { %v646_v51 = vadd.f32 %v645_v48, %v269_v9  ;;  %v772_v53 = vmax.f32 %v756_v50, %v764_v60  ;;  %v3607_v11 = vor.u32 %v4737_v47, %v3606_v1  ;;  %v3542_v50 = vld [vmem:[#allocation8 + $0x68] sm:$0xf]  ;;  %v4757_v1 = vld [vmem:[#allocation8 + $0x194] sm:$0xf0] }
 0x135   :  { %v686_v58 = vadd.f32 %v685_v45, %v672_v46  ;;  %v4709_v37 = vld [vmem:[#allocation8 + $0x14] sm:$0xf0] }
 0x136   :  { %v660_v57 = vadd.f32 %v659_v49, %v646_v51  ;;  %v4761_v49 = vld [vmem:[#allocation8 + $0x1b4] sm:$0xf0] }
 0x137   :  { %v757_v2 = vadd.f32 %v749_v59, %v686_v58  ;;  %v4721_v51 = vld [vmem:[#allocation8 + $0x74] sm:$0xf0] }
 0x138   :  { %v760_v61 = vadd.f32 %v748_v40, %v660_v57  ;;  %v3558_v40 = vld [vmem:[#allocation8 + $0x88] sm:$0xf]  ;;  %v4801_v57 = vld [vmem:[#allocation8 + $0x2f4] sm:$0xf0] }
 0x139   :  { %v765_v15 = vmul.f32 0.2, %v757_v2  ;;  %v3559_v48 = vor.u32 %v4725_v41, %v3558_v40  ;;  %v4735_v40 = vld [vmem:[#allocation8 + $0xec] sm:$0xf]  ;;  %v3608_v41 = vld [vmem:[#allocation8 + $0xf8] sm:$0xf0] }
 0x13a   :  { %v768_v62 = vmul.f32 0.2, %v760_v61  ;;  %v673_v63 = vpop.f32.mrf.mxu2  ;;  %v687_v0 = vpop.f32.mrf.mxu3 }
 0x13b   :  { %v674_v52 = vadd.f32 %v673_v63, %v5339_v10  ;;  %v3543_v63 = vor.u32 %v4721_v51, %v3542_v50  ;;  %v3798_v50 = vld [vmem:[#allocation8 + $0x268] sm:$0xf]  ;;  %v4785_v51 = vld [vmem:[#allocation8 + $0x274] sm:$0xf0] }
 0x13c   :  { %v776_v3 = vmax.f32 %v760_v61, %v768_v62  ;;  %v699_v6 = vpop.f32.mrf.mxu0  ;;  %v713_v7 = vpop.f32.mrf.mxu1 }
 0x13d   :  { %v688_v8 = vadd.f32 %v687_v0, %v674_v52  ;;  %v700_v9 = vadd.f32 %v699_v6, %v5335_v4  ;;  %v773_v4 = vmax.f32 %v757_v2, %v765_v15  ;;  %v3686_v0 = vld [vmem:[#allocation8 + $0x188] sm:$0xf]  ;;  %v3863_v2 = vor.u32 %v4801_v57, %v3862_v56 }
 0x13e   :  { %v5356_v12 = vpack.c.bf16 %v776_v3, %v772_v53  ;;  %v3526_v52 = vld [vmem:[#allocation8 + $0x48] sm:$0xf]  ;;  %v4717_v53 = vld [vmem:[#allocation8 + $0x54] sm:$0xf0] }
 0x13f   :  { %v761_v16 = vadd.f32 %v749_v59, %v688_v8  ;;  %v714_v10 = vadd.f32 %v713_v7, %v700_v9  ;;  %v3846_v6 = vld [vmem:[#allocation8 + $0x2c8] sm:$0xf]  ;;  %v4797_v7 = vld [vmem:[#allocation8 + $0x2d4] sm:$0xf0]  ;;  %v3527_v13 = vor.u32 %v4717_v53, %v3526_v52  ;;  %v3576_v52 = vld [vmem:[#allocation8 + $0xb8] sm:$0xf0] }
 0x140   :  { %1570 = vmatmul.bf16.vlgmr.msrb.gmra.mxu0 %v5356_v12  ;;  %v3990_v15 = vld [vmem:[#allocation8 + $0x3e8] sm:$0xf] }
 0x141   :  { %v769_v18 = vmul.f32 0.2, %v761_v16  ;;  %1674 = vmatpush.bf16.msrb.mxu0 %v3607_v11  ;;  %v758_v33 = vadd.f32 %v750_v17, %v714_v10  ;;  %v3670_v11 = vld [vmem:[#allocation8 + $0x168] sm:$0xf] }
 0x142   :  { %v3510_v10 = vld [vmem:[#allocation8 + $0x28] sm:$0xf] }
 0x143   :  { %v777_v26 = vmax.f32 %v761_v16, %v769_v18  ;;  %v766_v45 = vmul.f32 0.2, %v758_v33  ;;  %v4833_v16 = vld [vmem:[#allocation8 + $0x3f4] sm:$0xf0]  ;;  %v3847_v18 = vor.u32 %v4797_v7, %v3846_v6  ;;  %v3622_v57 = vld [vmem:[#allocation8 + $0x108] sm:$0xf] }
 0x144   :  { %v727_v27 = vpop.f32.mrf.mxu2  ;;  %v741_v28 = vpop.f32.mrf.mxu3 }
 0x145   :  { %v728_v29 = vadd.f32 %v727_v27, %v5337_v5  ;;  %v701_v30 = vpop.f32.mrf.mxu0  ;;  %v5361_v32 = vpack.c.bf16 %v777_v26, %v773_v4  ;;  %1675 = vmatpush.bf16.msrb.mxu0 %v3591_v19  ;;  %v715_v39 = vpop.f32.mrf.mxu1  ;;  %v751_v5 = vperm.slane %v5349_v34, 3  ;;  %v774_v34 = vmax.f32 %v758_v33, %v766_v45  ;;  %v4713_v19 = vld [vmem:[#allocation8 + $0x34] sm:$0xf0]  ;;  %v3654_v26 = vld [vmem:[#allocation8 + $0x148] sm:$0xf] }
 0x146   :  { %v702_v35 = vadd.f32 %v701_v30, %v5341_v24  ;;  %v3702_v24 = vld [vmem:[#allocation8 + $0x1a8] sm:$0xf]  ;;  %v3671_v4 = vor.u32 %v4753_v14, %v3670_v11  ;;  %v3991_v27 = vor.u32 %v4833_v16, %v3990_v15  ;;  %v4745_v45 = vld [vmem:[#allocation8 + $0x134] sm:$0xf0]  ;;  %v3720_v14 = vld [vmem:[#allocation8 + $0x1d8] sm:$0xf0] }
 0x147   :  { %1584 = vmatmul.bf16.vlgmr.msrb.gmra.mxu1 %v5361_v32  ;;  %v742_v43 = vadd.f32 %v741_v28, %v728_v29  ;;  %v3703_v60 = vor.u32 %v4761_v49, %v3702_v24  ;;  %v3511_v28 = vor.u32 %v4713_v19, %v3510_v10  ;;  %v4749_v29 = vld [vmem:[#allocation8 + $0x154] sm:$0xf0]  ;;  %v3974_v30 = vld [vmem:[#allocation8 + $0x3c8] sm:$0xf] }
 0x148   :  { %v716_v42 = vadd.f32 %v715_v39, %v702_v35  ;;  %1688 = vmatpush.bf16.msrb.mxu1 %v3735_v31  ;;  %v4829_v31 = vld [vmem:[#allocation8 + $0x3d4] sm:$0xf0]  ;;  %v3831_v35 = vor.u32 %v4793_v21, %v3830_v20  ;;  %v3958_v24 = vld [vmem:[#allocation8 + $0x3a8] sm:$0xf] }
 0x149   :  { %1676 = vmatpush.bf16.msrb.mxu0 %v3575_v36  ;;  %v759_v58 = vadd.f32 %v751_v5, %v742_v43  ;;  %v3494_v36 = vld [vmem:[#allocation8 + $0x8] sm:$0xf]  ;;  %v4789_v39 = vld [vmem:[#allocation8 + $0x294] sm:$0xf0]  ;;  %v3975_v43 = vor.u32 %v4829_v31, %v3974_v30  ;;  %v3544_v30 = vld [vmem:[#allocation8 + $0x78] sm:$0xf0] }
 0x14a   :  { %v762_v46 = vadd.f32 %v750_v17, %v716_v42  ;;  %v3655_v42 = vor.u32 %v4749_v29, %v3654_v26  ;;  %v4825_v49 = vld [vmem:[#allocation8 + $0x3b4] sm:$0xf0]  ;;  %v3766_v15 = vld [vmem:[#allocation8 + $0x228] sm:$0xf]  ;;  %v3704_v26 = vld [vmem:[#allocation8 + $0x1b8] sm:$0xf0] }
 0x14b   :  { %v767_v8 = vmul.f32 0.2, %v759_v58  ;;  %v4777_v16 = vld [vmem:[#allocation8 + $0x234] sm:$0xf0]  ;;  %v3910_v20 = vld [vmem:[#allocation8 + $0x348] sm:$0xf] }
 0x14c   :  { %v770_v54 = vmul.f32 0.2, %v762_v46  ;;  %v729_v55 = vpop.f32.mrf.mxu2  ;;  %1689 = vmatpush.bf16.msrb.mxu1 %v3719_v44  ;;  %v743_v62 = vpop.f32.mrf.mxu3  ;;  %v3638_v44 = vld [vmem:[#allocation8 + $0x128] sm:$0xf]  ;;  %v4813_v21 = vld [vmem:[#allocation8 + $0x354] sm:$0xf0] }
 0x14d   :  { %v730_v59 = vadd.f32 %v729_v55, %v5343_v25  ;;  %1677 = vmatpush.bf16.msrb.mxu0 %v3559_v48  ;;  %v3687_v25 = vor.u32 %v4757_v1, %v3686_v0  ;;  %v775_v22 = vmax.f32 %v759_v58, %v767_v8  ;;  %v3611_v48 = vor.u32 %v4735_v40, %v3608_v41  ;;  %v3592_v55 = vld [vmem:[#allocation8 + $0xd8] sm:$0xf0]  ;;  %v3782_v1 = vld [vmem:[#allocation8 + $0x248] sm:$0xf]  ;;  %v4719_v29 = vld [vmem:[#allocation8 + $0x6c] sm:$0xf] }
 0x14e   :  { %v778_v61 = vmax.f32 %v762_v46, %v770_v54  ;;  %v3815_v46 = vor.u32 %v4789_v39, %v3814_v38  ;;  %v4731_v54 = vld [vmem:[#allocation8 + $0xcc] sm:$0xf]  ;;  %v3639_v56 = vor.u32 %v4745_v45, %v3638_v44  ;;  %v3959_v58 = vor.u32 %v4825_v49, %v3958_v24  ;;  %v3736_v0 = vld [vmem:[#allocation8 + $0x1f8] sm:$0xf0]  ;;  %v3926_v8 = vld [vmem:[#allocation8 + $0x368] sm:$0xf] }
 0x14f   :  { %v744_v47 = vadd.f32 %v743_v62, %v730_v59  ;;  %v4741_v59 = vld [vmem:[#allocation8 + $0x114] sm:$0xf0]  ;;  %v3595_v62 = vor.u32 %v4731_v54, %v3592_v55  ;;  %v4799_v31 = vld [vmem:[#allocation8 + $0x2ec] sm:$0xf]  ;;  %v3894_v38 = vld [vmem:[#allocation8 + $0x328] sm:$0xf]  ;;  %v3547_v40 = vor.u32 %v4719_v29, %v3544_v30 }
 0x150   :  { %v5367_v3 = vpack.c.bf16 %v778_v61, %v774_v34  ;;  %1690 = vmatpush.bf16.msrb.mxu1 %v3703_v60  ;;  %1626 = vmatmul.bf16.vlgmr.msra.gmra.mxu0 %v5356_v12  ;;  %v3942_v60 = vld [vmem:[#allocation8 + $0x388] sm:$0xf]  ;;  %v4821_v34 = vld [vmem:[#allocation8 + $0x394] sm:$0xf0]  ;;  %v3799_v61 = vor.u32 %v4785_v51, %v3798_v50  ;;  %v3623_v53 = vor.u32 %v4741_v59, %v3622_v57  ;;  %v4715_v44 = vld [vmem:[#allocation8 + $0x4c] sm:$0xf] }
 0x151   :  { %v763_v9 = vadd.f32 %v751_v5, %v744_v47  ;;  %1678 = vmatpush.bf16.msrb.mxu0 %v3543_v63  ;;  %v3495_v5 = vor.u32 %v4709_v37, %v3494_v36  ;;  %v4767_v63 = vld [vmem:[#allocation8 + $0x1ec] sm:$0xf]  ;;  %v4781_v47 = vld [vmem:[#allocation8 + $0x254] sm:$0xf0]  ;;  %v3943_v6 = vor.u32 %v4821_v34, %v3942_v60  ;;  %v3911_v36 = vor.u32 %v4813_v21, %v3910_v20  ;;  %v3528_v45 = vld [vmem:[#allocation8 + $0x58] sm:$0xf0] }
 0x152   :  { %1598 = vmatmul.bf16.vlgmr.msrb.gmra.mxu2 %v5367_v3  ;;  %v3739_v7 = vor.u32 %v4767_v63, %v3736_v0  ;;  %v4809_v41 = vld [vmem:[#allocation8 + $0x334] sm:$0xf0]  ;;  %v3878_v50 = vld [vmem:[#allocation8 + $0x308] sm:$0xf]  ;;  %v3531_v54 = vor.u32 %v4715_v44, %v3528_v45  ;;  %v4751_v55 = vld [vmem:[#allocation8 + $0x16c] sm:$0xf] }
 0x153   :  { %v771_v17 = vmul.f32 0.2, %v763_v9  ;;  %1702 = vmatpush.bf16.msrb.mxu2 %v3863_v2  ;;  %v4727_v2 = vld [vmem:[#allocation8 + $0xac] sm:$0xf]  ;;  %v3895_v24 = vor.u32 %v4809_v41, %v3894_v38  ;;  %v4805_v51 = vld [vmem:[#allocation8 + $0x314] sm:$0xf0] }
 0x154   :  { %1691 = vmatpush.bf16.msrb.mxu1 %v3687_v25  ;;  %v3783_v25 = vor.u32 %v4781_v47, %v3782_v1  ;;  %v3579_v11 = vor.u32 %v4727_v2, %v3576_v52  ;;  %v4831_v57 = vld [vmem:[#allocation8 + $0x3ec] sm:$0xf]  ;;  %v3992_v59 = vld [vmem:[#allocation8 + $0x3f8] sm:$0xf0]  ;;  %v3879_v63 = vor.u32 %v4805_v51, %v3878_v50  ;;  %v4078_v41 = vld [vmem:[#allocation10 + $0xa0] sm:$0xf] }
 0x155   :  { %v779_v23 = vmax.f32 %v763_v9, %v771_v17  ;;  %1679 = vmatpush.bf16.msrb.mxu0 %v3527_v13  ;;  %v4817_v9 = vld [vmem:[#allocation8 + $0x374] sm:$0xf0]  ;;  %v4763_v13 = vld [vmem:[#allocation8 + $0x1cc] sm:$0xf]  ;;  %v3512_v34 = vld [vmem:[#allocation8 + $0x38] sm:$0xf0]  ;;  %v3995_v1 = vor.u32 %v4831_v57, %v3992_v59 }
 0x156   :  { %v4723_v17 = vld [vmem:[#allocation8 + $0x8c] sm:$0xf]  ;;  %v3927_v10 = vor.u32 %v4817_v9, %v3926_v8  ;;  %v3723_v19 = vor.u32 %v4763_v13, %v3720_v14  ;;  %v3656_v52 = vld [vmem:[#allocation8 + $0x158] sm:$0xf0]  ;;  %v4110_v14 = vld [vmem:[#allocation10 + $0xe0] sm:$0xf] }
 0x157   :  { %v5371_v33 = vpack.c.bf16 %v779_v23, %v775_v22  ;;  %1703 = vmatpush.bf16.msrb.mxu2 %v3847_v18  ;;  %1640 = vmatmul.bf16.vlgmr.msra.gmra.mxu1 %v5361_v32  ;;  %v3560_v18 = vld [vmem:[#allocation8 + $0x98] sm:$0xf0]  ;;  %v3767_v22 = vor.u32 %v4777_v16, %v3766_v15  ;;  %v4711_v60 = vld [vmem:[#allocation8 + $0x2c] sm:$0xf]  ;;  %v4864_v15 = vld [vmem:[#allocation10 + $0xec] sm:$0xf0] }
 0x158   :  { %1692 = vmatpush.bf16.msrb.mxu1 %v3671_v4  ;;  %v3563_v23 = vor.u32 %v4723_v17, %v3560_v18  ;;  %v4759_v4 = vld [vmem:[#allocation8 + $0x1ac] sm:$0xf]  ;;  %v3515_v47 = vor.u32 %v4711_v60, %v3512_v34  ;;  %v3496_v9 = vld [vmem:[#allocation8 + $0x18] sm:$0xf0]  ;;  %v4062_v50 = vld [vmem:[#allocation10 + $0x80] sm:$0xf] }
 0x159   :  { %1612 = vmatmul.bf16.vlgmr.msrb.gmra.mxu3 %v5371_v33  ;;  %1680 = vmatpush.bf16.msrb.mxu0 %v3511_v28  ;;  %v4773_v28 = vld [vmem:[#allocation8 + $0x214] sm:$0xf0]  ;;  %v3707_v37 = vor.u32 %v4759_v4, %v3704_v26  ;;  %v4747_v2 = vld [vmem:[#allocation8 + $0x14c] sm:$0xf]  ;;  %v3960_v21 = vld [vmem:[#allocation8 + $0x3b8] sm:$0xf0] }
 0x15a   :  { %1716 = vmatpush.bf16.msrb.mxu3 %v3991_v27  ;;  %v3750_v27 = vld [vmem:[#allocation8 + $0x208] sm:$0xf]  ;;  %v4707_v8 = vld [vmem:[#allocation8 + $0xc] sm:$0xf]  ;;  %v3659_v13 = vor.u32 %v4747_v2, %v3656_v52  ;;  %v3800_v4 = vld [vmem:[#allocation8 + $0x278] sm:$0xf0] }
 0x15b   :  { %1704 = vmatpush.bf16.msrb.mxu2 %v3831_v35  ;;  %v3864_v35 = vld [vmem:[#allocation8 + $0x2f8] sm:$0xf0]  ;;  %v3751_v39 = vor.u32 %v4773_v28, %v3750_v27  ;;  %v3499_v17 = vor.u32 %v4707_v8, %v3496_v9  ;;  %v4743_v18 = vld [vmem:[#allocation8 + $0x12c] sm:$0xf]  ;;  %v4094_v26 = vld [vmem:[#allocation10 + $0xc0] sm:$0xf] }
 0x15c   :  { %1693 = vmatpush.bf16.msrb.mxu1 %v3655_v42  ;;  %v4755_v42 = vld [vmem:[#allocation8 + $0x18c] sm:$0xf]  ;;  %v4860_v27 = vld [vmem:[#allocation10 + $0xcc] sm:$0xf0]  ;;  %v3752_v59 = vld [vmem:[#allocation8 + $0x218] sm:$0xf0] }
 0x15d   :  { %1681 = vmatpush.bf16.msrb.mxu0 %v3495_v5  ;;  %v3867_v5 = vor.u32 %v4799_v31, %v3864_v35  ;;  %v4823_v20 = vld [vmem:[#allocation8 + $0x3ac] sm:$0xf]  ;;  %v3624_v31 = vld [vmem:[#allocation8 + $0x118] sm:$0xf0]  ;;  %v4852_v51 = vld [vmem:[#allocation10 + $0x8c] sm:$0xf0] }
 0x15e   :  { %1717 = vmatpush.bf16.msrb.mxu3 %v3975_v43  ;;  %v3688_v43 = vld [vmem:[#allocation8 + $0x198] sm:$0xf0]  ;;  %v3963_v29 = vor.u32 %v4823_v20, %v3960_v21  ;;  %v4739_v30 = vld [vmem:[#allocation8 + $0x10c] sm:$0xf]  ;;  %v4063_v57 = vor.u32 %v4852_v51, %v4062_v50  ;;  %v4848_v2 = vld [vmem:[#allocation10 + $0x6c] sm:$0xf0] }
 0x15f   :  { %1705 = vmatpush.bf16.msrb.mxu2 %v3815_v46  ;;  %v4795_v46 = vld [vmem:[#allocation8 + $0x2cc] sm:$0xf]  ;;  %v3691_v49 = vor.u32 %v4755_v42, %v3688_v43  ;;  %v4856_v42 = vld [vmem:[#allocation10 + $0xac] sm:$0xf0]  ;;  %v3627_v43 = vor.u32 %v4739_v30, %v3624_v31  ;;  %v4238_v52 = vld [vmem:[#allocation10 + $0x1e0] sm:$0xf] }
 0x160   :  { %1694 = vmatpush.bf16.msrb.mxu1 %v3639_v56  ;;  %1682 = vmatmul.bf16.vlgmr.msrb.gmra.mxu0 %v5356_v12  ;;  %v3672_v56 = vld [vmem:[#allocation8 + $0x178] sm:$0xf0]  ;;  %v4779_v38 = vld [vmem:[#allocation8 + $0x24c] sm:$0xf]  ;;  %v4030_v8 = vld [vmem:[#allocation10 + $0x40] sm:$0xf] }
 0x161   :  { %1730 = vmatpush.bf16.msra.mxu0 %v3611_v48  ;;  %v3848_v48 = vld [vmem:[#allocation8 + $0x2d8] sm:$0xf0]  ;;  %v3675_v0 = vor.u32 %v4751_v55, %v3672_v56  ;;  %v4815_v45 = vld [vmem:[#allocation8 + $0x36c] sm:$0xf]  ;;  %v4844_v9 = vld [vmem:[#allocation10 + $0x4c] sm:$0xf0] }
 0x162   :  { %1718 = vmatpush.bf16.msrb.mxu3 %v3959_v58  ;;  %1654 = vmatmul.bf16.vlgmr.msra.gmra.mxu2 %v5367_v3  ;;  %v3851_v58 = vor.u32 %v4795_v46, %v3848_v48  ;;  %v3928_v46 = vld [vmem:[#allocation8 + $0x378] sm:$0xf0]  ;;  %v4775_v48 = vld [vmem:[#allocation8 + $0x22c] sm:$0xf]  ;;  %v4190_v20 = vld [vmem:[#allocation10 + $0x180] sm:$0xf] }
 0x163   :  { %1706 = vmatpush.bf16.msrb.mxu2 %v3799_v61  ;;  %v4791_v61 = vld [vmem:[#allocation8 + $0x2ac] sm:$0xf]  ;;  %v4366_v30 = vld [vmem:[#allocation10 + $0x2e0] sm:$0xf]  ;;  %v4928_v31 = vld [vmem:[#allocation10 + $0x2ec] sm:$0xf0] }
 0x164   :  { %1695 = vmatpush.bf16.msrb.mxu1 %v3623_v53  ;;  %v4827_v53 = vld [vmem:[#allocation8 + $0x3cc] sm:$0xf]  ;;  %v4334_v50 = vld [vmem:[#allocation10 + $0x2a0] sm:$0xf]  ;;  %v4920_v51 = vld [vmem:[#allocation10 + $0x2ac] sm:$0xf0] }
 0x165   :  { %1731 = vmatpush.bf16.msra.mxu0 %v3595_v62  ;;  %v3832_v62 = vld [vmem:[#allocation8 + $0x2b8] sm:$0xf0]  ;;  %v4811_v56 = vld [vmem:[#allocation8 + $0x34c] sm:$0xf] }
 0x166   :  { %1719 = vmatpush.bf16.msrb.mxu3 %v3943_v6  ;;  %v3835_v6 = vor.u32 %v4791_v61, %v3832_v62  ;;  %v4807_v61 = vld [vmem:[#allocation8 + $0x32c] sm:$0xf]  ;;  %v3896_v62 = vld [vmem:[#allocation8 + $0x338] sm:$0xf0] }
 0x167   :  { %1707 = vmatpush.bf16.msrb.mxu2 %v3783_v25  ;;  %1696 = vmatmul.bf16.vlgmr.msrb.gmra.mxu1 %v5361_v32  ;;  %v4787_v25 = vld [vmem:[#allocation8 + $0x28c] sm:$0xf] }
 0x168   :  { %1744 = vmatpush.bf16.msra.mxu1 %v3739_v7  ;;  %v3976_v7 = vld [vmem:[#allocation8 + $0x3d8] sm:$0xf0] }
 0x169   :  { %1732 = vmatpush.bf16.msra.mxu0 %v3579_v11  ;;  %1668 = vmatmul.bf16.vlgmr.msra.gmra.mxu3 %v5371_v33  ;;  %v3816_v11 = vld [vmem:[#allocation8 + $0x298] sm:$0xf0]  ;;  %v3979_v16 = vor.u32 %v4827_v53, %v3976_v7 }
 0x16a   :  { %1720 = vmatpush.bf16.msrb.mxu3 %v3927_v10  ;;  %v3640_v10 = vld [vmem:[#allocation8 + $0x138] sm:$0xf0] }
 0x16b   :  { %1708 = vmatpush.bf16.msrb.mxu2 %v3767_v22  ;;  %v4783_v22 = vld [vmem:[#allocation8 + $0x26c] sm:$0xf]  ;;  %v3643_v28 = vor.u32 %v4743_v18, %v3640_v10  ;;  %v3998_v10 = vld [vmem:[#allocation10] sm:$0xf] }
 0x16c   :  { %1745 = vmatpush.bf16.msra.mxu1 %v3723_v19  ;;  %v3819_v19 = vor.u32 %v4787_v25, %v3816_v11  ;;  %v3803_v35 = vor.u32 %v4783_v22, %v3800_v4  ;;  %v4222_v25 = vld [vmem:[#allocation10 + $0x1c0] sm:$0xf]  ;;  %v4031_v11 = vor.u32 %v4844_v9, %v4030_v8  ;;  %v4884_v22 = vld [vmem:[#allocation10 + $0x18c] sm:$0xf0]  ;;  %v4032_v8 = vld [vmem:[#allocation10 + $0x50] sm:$0xf0] }
 0x16d   :  { %1733 = vmatpush.bf16.msra.mxu0 %v3563_v23  ;;  %v4111_v23 = vor.u32 %v4864_v15, %v4110_v14  ;;  %v4014_v15 = vld [vmem:[#allocation10 + $0x20] sm:$0xf]  ;;  %v4191_v4 = vor.u32 %v4884_v22, %v4190_v20  ;;  %v4890_v9 = vld [vmem:[#allocation10 + $0x1c4] sm:$0xf] }
 0x16e   :  { %1721 = vmatpush.bf16.msrb.mxu3 %v3911_v36  ;;  %v4819_v36 = vld [vmem:[#allocation8 + $0x38c] sm:$0xf]  ;;  %v4270_v20 = vld [vmem:[#allocation10 + $0x220] sm:$0xf] }
 0x16f   :  { %1709 = vmatpush.bf16.msrb.mxu2 %v3751_v39  ;;  %v4095_v39 = vor.u32 %v4860_v27, %v4094_v26  ;;  %v4112_v26 = vld [vmem:[#allocation10 + $0xf0] sm:$0xf0]  ;;  %v4174_v27 = vld [vmem:[#allocation10 + $0x160] sm:$0xf] }
 0x170   :  { %1746 = vmatpush.bf16.msra.mxu1 %v3707_v37  ;;  %v3944_v37 = vld [vmem:[#allocation8 + $0x398] sm:$0xf0] }
 0x171   :  { %1734 = vmatpush.bf16.msra.mxu0 %v3547_v40  ;;  %v3784_v40 = vld [vmem:[#allocation8 + $0x258] sm:$0xf0] }
 0x172   :  { %1722 = vmatpush.bf16.msrb.mxu3 %v3895_v24  ;;  %1710 = vmatmul.bf16.vlgmr.msrb.gmra.mxu2 %v5367_v3  ;;  %v3787_v44 = vor.u32 %v4779_v38, %v3784_v40  ;;  %v4079_v24 = vor.u32 %v4856_v42, %v4078_v41  ;;  %v4096_v38 = vld [vmem:[#allocation10 + $0xd0] sm:$0xf0]  ;;  %v4158_v40 = vld [vmem:[#allocation10 + $0x140] sm:$0xf]  ;;  %v4876_v41 = vld [vmem:[#allocation10 + $0x14c] sm:$0xf0] }
 0x173   :  { %1758 = vmatpush.bf16.msra.mxu2 %v3867_v5  ;;  %v3947_v5 = vor.u32 %v4819_v36, %v3944_v37  ;;  %v4367_v37 = vor.u32 %v4928_v31, %v4366_v30  ;;  %v4350_v42 = vld [vmem:[#allocation10 + $0x2c0] sm:$0xf] }
 0x174   :  { %1747 = vmatpush.bf16.msra.mxu1 %v3691_v49  ;;  %v3768_v49 = vld [vmem:[#allocation8 + $0x238] sm:$0xf0] }
 0x175   :  { %1735 = vmatpush.bf16.msra.mxu0 %v3531_v54  ;;  %v3931_v54 = vor.u32 %v4815_v45, %v3928_v46  ;;  %v3771_v55 = vor.u32 %v4775_v48, %v3768_v49  ;;  %v4080_v45 = vld [vmem:[#allocation10 + $0xb0] sm:$0xf0]  ;;  %v4872_v49 = vld [vmem:[#allocation10 + $0x12c] sm:$0xf0] }
 0x176   :  { %1723 = vmatpush.bf16.msrb.mxu3 %v3879_v63  ;;  %v3899_v63 = vor.u32 %v4807_v61, %v3896_v62  ;;  %v4916_v61 = vld [vmem:[#allocation10 + $0x28c] sm:$0xf0]  ;;  %v4846_v62 = vld [vmem:[#allocation10 + $0x64] sm:$0xf] }
 0x177   :  { %1759 = vmatpush.bf16.msra.mxu2 %v3851_v58  ;;  %v4771_v58 = vld [vmem:[#allocation8 + $0x20c] sm:$0xf] }
 0x178   :  { %1748 = vmatpush.bf16.msra.mxu1 %v3675_v0  ;;  %v3755_v34 = vor.u32 %v4771_v58, %v3752_v59  ;;  %v4803_v0 = vld [vmem:[#allocation8 + $0x30c] sm:$0xf]  ;;  %v4126_v58 = vld [vmem:[#allocation10 + $0x100] sm:$0xf]  ;;  %v4868_v59 = vld [vmem:[#allocation10 + $0x10c] sm:$0xf0] }
 0x179   :  { %1736 = vmatpush.bf16.msra.mxu0 %v3515_v47  ;;  %1724 = vmatmul.bf16.vlgmr.msrb.gmra.mxu3 %v5371_v33 }
 0x17a   :  { %1772 = vmatpush.bf16.msra.mxu3 %v3995_v1  ;;  %v3880_v1 = vld [vmem:[#allocation8 + $0x318] sm:$0xf0] }
 0x17b   :  { %1760 = vmatpush.bf16.msra.mxu2 %v3835_v6  ;;  %v3883_v47 = vor.u32 %v4803_v0, %v3880_v1  ;;  %v4896_v6 = vld [vmem:[#allocation10 + $0x1ec] sm:$0xf0] }
 0x17c   :  { %1749 = vmatpush.bf16.msra.mxu1 %v3659_v13  ;;  %v4239_v7 = vor.u32 %v4896_v6, %v4238_v52  ;;  %v4892_v13 = vld [vmem:[#allocation10 + $0x1cc] sm:$0xf0]  ;;  %v4302_v52 = vld [vmem:[#allocation10 + $0x260] sm:$0xf] }
 0x17d   :  { %1737 = vmatpush.bf16.msra.mxu0 %v3499_v17  ;;  %v4223_v14 = vor.u32 %v4892_v13, %v4222_v25 }
 0x17e   :  { %1773 = vmatpush.bf16.msra.mxu3 %v3979_v16  ;;  %v4206_v16 = vld [vmem:[#allocation10 + $0x1a0] sm:$0xf] }
 0x17f   :  { %1761 = vmatpush.bf16.msra.mxu2 %v3819_v19  ;;  %v4836_v19 = vld [vmem:[#allocation10 + $0xc] sm:$0xf0] }
 0x180   :  { %1750 = vmatpush.bf16.msra.mxu1 %v3643_v28  ;;  %1738 = vmatmul.bf16.vlgmr.msra.gmra.mxu0 %v5356_v12  ;;  %v3912_v12 = vld [vmem:[#allocation8 + $0x358] sm:$0xf0]  ;;  %v3999_v21 = vor.u32 %v4836_v19, %v3998_v10  ;;  %v4880_v28 = vld [vmem:[#allocation10 + $0x16c] sm:$0xf0]  ;;  %v4208_v10 = vld [vmem:[#allocation10 + $0x1b0] sm:$0xf0] }
 0x181   :  { %2584 = vmatpush.bf16.msrb.mxu0 %v4111_v23  ;;  %v3915_v60 = vor.u32 %v4811_v56, %v3912_v12  ;;  %v4862_v23 = vld [vmem:[#allocation10 + $0xe4] sm:$0xf]  ;;  %v4175_v36 = vor.u32 %v4880_v28, %v4174_v27  ;;  %v4064_v12 = vld [vmem:[#allocation10 + $0x90] sm:$0xf0] }
 0x182   :  { %1774 = vmatpush.bf16.msra.mxu3 %v3963_v29  ;;  %v4115_v29 = vor.u32 %v4862_v23, %v4112_v26  ;;  %v4850_v56 = vld [vmem:[#allocation10 + $0x84] sm:$0xf]  ;;  %v4000_v26 = vld [vmem:[#allocation10 + $0x10] sm:$0xf0] }
 0x183   :  { %1762 = vmatpush.bf16.msra.mxu2 %v3803_v35  ;;  %v4858_v35 = vld [vmem:[#allocation10 + $0xc4] sm:$0xf] }
 0x184   :  { %1751 = vmatpush.bf16.msra.mxu1 %v3627_v43  ;;  %v4159_v43 = vor.u32 %v4876_v41, %v4158_v40  ;;  %v4882_v27 = vld [vmem:[#allocation10 + $0x184] sm:$0xf]  ;;  %v4176_v41 = vld [vmem:[#allocation10 + $0x170] sm:$0xf0] }
 0x185   :  { %2585 = vmatpush.bf16.msrb.mxu0 %v4095_v39  ;;  %v4099_v39 = vor.u32 %v4858_v35, %v4096_v38  ;;  %v4254_v35 = vld [vmem:[#allocation10 + $0x200] sm:$0xf]  ;;  %v4878_v40 = vld [vmem:[#allocation10 + $0x164] sm:$0xf] }
 0x186   :  { %1775 = vmatpush.bf16.msra.mxu3 %v3947_v5  ;;  %v4924_v5 = vld [vmem:[#allocation10 + $0x2cc] sm:$0xf0] }
 0x187   :  { %1763 = vmatpush.bf16.msra.mxu2 %v3787_v44  ;;  %1752 = vmatmul.bf16.vlgmr.msra.gmra.mxu1 %v5361_v32  ;;  %v4046_v32 = vld [vmem:[#allocation10 + $0x60] sm:$0xf]  ;;  %v4854_v44 = vld [vmem:[#allocation10 + $0xa4] sm:$0xf]  ;;  %v4351_v46 = vor.u32 %v4924_v5, %v4350_v42 }
 0x188   :  { %v4047_v53 = vor.u32 %v4848_v2, %v4046_v32  ;;  %2598 = vmatpush.bf16.msrb.mxu1 %v4239_v7  ;;  %v4083_v48 = vor.u32 %v4854_v44, %v4080_v45  ;;  %v4240_v32 = vld [vmem:[#allocation10 + $0x1f0] sm:$0xf0]  ;;  %v4842_v7 = vld [vmem:[#allocation10 + $0x44] sm:$0xf] }
 0x189   :  { %2586 = vmatpush.bf16.msrb.mxu0 %v4079_v24  ;;  %v4142_v24 = vld [vmem:[#allocation10 + $0x120] sm:$0xf]  ;;  %v4035_v25 = vor.u32 %v4842_v7, %v4032_v8  ;;  %v4926_v5 = vld [vmem:[#allocation10 + $0x2e4] sm:$0xf]  ;;  %v4368_v44 = vld [vmem:[#allocation10 + $0x2f0] sm:$0xf0] }
 0x18a   :  { %1776 = vmatpush.bf16.msra.mxu3 %v3931_v54  ;;  %v4143_v54 = vor.u32 %v4872_v49, %v4142_v24  ;;  %v4371_v45 = vor.u32 %v4926_v5, %v4368_v44  ;;  %v4874_v49 = vld [vmem:[#allocation10 + $0x144] sm:$0xf]  ;;  %v4128_v8 = vld [vmem:[#allocation10 + $0x110] sm:$0xf0] }
 0x18b   :  { %1764 = vmatpush.bf16.msra.mxu2 %v3771_v55  ;;  %v4335_v55 = vor.u32 %v4920_v51, %v4334_v50  ;;  %v4160_v50 = vld [vmem:[#allocation10 + $0x150] sm:$0xf0]  ;;  %v4922_v51 = vld [vmem:[#allocation10 + $0x2c4] sm:$0xf] }
 0x18c   :  { %2599 = vmatpush.bf16.msrb.mxu1 %v4223_v14  ;;  %v4286_v14 = vld [vmem:[#allocation10 + $0x240] sm:$0xf]  ;;  %v4866_v7 = vld [vmem:[#allocation10 + $0x104] sm:$0xf] }
 0x18d   :  { %2587 = vmatpush.bf16.msrb.mxu0 %v4063_v57  ;;  %v4067_v57 = vor.u32 %v4850_v56, %v4064_v12  ;;  %v5390_v56 = vld [vmem:[%s5442_s6] sm:$0xf] }
 0x18e   :  { %1777 = vmatpush.bf16.msra.mxu3 %v3915_v60  ;;  %v4318_v60 = vld [vmem:[#allocation10 + $0x280] sm:$0xf]  ;;  %v915_v5 = vperm.slane %v5390_v56, 1 }
 0x18f   :  { %1765 = vmatpush.bf16.msra.mxu2 %v3755_v34  ;;  %v4127_v34 = vor.u32 %v4868_v59, %v4126_v58  ;;  %v4319_v0 = vor.u32 %v4916_v61, %v4318_v60  ;;  %v4462_v59 = vld [vmem:[#allocation10 + $0x3a0] sm:$0xf]  ;;  %v4952_v60 = vld [vmem:[#allocation10 + $0x3ac] sm:$0xf0] }
 0x190   :  { %v4463_v61 = vor.u32 %v4952_v60, %v4462_v59 }
 0x191   :  { %2588 = vmatpush.bf16.msrb.mxu0 %v4047_v53  ;;  %v4912_v53 = vld [vmem:[#allocation10 + $0x26c] sm:$0xf0] }
 0x192   :  { %1778 = vmatpush.bf16.msra.mxu3 %v3899_v63  ;;  %1766 = vmatmul.bf16.vlgmr.msra.gmra.mxu2 %v5367_v3  ;;  %v4840_v3 = vld [vmem:[#allocation10 + $0x2c] sm:$0xf0]  ;;  %v4048_v63 = vld [vmem:[#allocation10 + $0x70] sm:$0xf0]  ;;  %v4303_v6 = vor.u32 %v4912_v53, %v4302_v52  ;;  %v4446_v52 = vld [vmem:[#allocation10 + $0x380] sm:$0xf] }
 0x193   :  { %v4015_v17 = vor.u32 %v4840_v3, %v4014_v15  ;;  %2612 = vmatpush.bf16.msrb.mxu2 %v4367_v37  ;;  %v4051_v1 = vor.u32 %v4846_v62, %v4048_v63  ;;  %v4908_v15 = vld [vmem:[#allocation10 + $0x24c] sm:$0xf0]  ;;  %v4494_v37 = vld [vmem:[#allocation10 + $0x3e0] sm:$0xf]  ;;  %v4870_v62 = vld [vmem:[#allocation10 + $0x124] sm:$0xf] }
 0x194   :  { %v4287_v3 = vor.u32 %v4908_v15, %v4286_v14  ;;  %v4144_v63 = vld [vmem:[#allocation10 + $0x130] sm:$0xf0]  ;;  %v4948_v53 = vld [vmem:[#allocation10 + $0x38c] sm:$0xf0] }
 0x195   :  { %2589 = vmatpush.bf16.msrb.mxu0 %v4031_v11  ;;  %v4224_v11 = vld [vmem:[#allocation10 + $0x1d0] sm:$0xf0] }
 0x196   :  { %1779 = vmatpush.bf16.msra.mxu3 %v3883_v47  ;;  %v4894_v47 = vld [vmem:[#allocation10 + $0x1e4] sm:$0xf]  ;;  %v4227_v13 = vor.u32 %v4890_v9, %v4224_v11  ;;  %v4131_v11 = vor.u32 %v4866_v7, %v4128_v8 }
 0x197   :  { %2613 = vmatpush.bf16.msrb.mxu2 %v4351_v46  ;;  %v4243_v2 = vor.u32 %v4894_v47, %v4240_v32  ;;  %v4478_v46 = vld [vmem:[#allocation10 + $0x3c0] sm:$0xf]  ;;  %v4147_v47 = vor.u32 %v4870_v62, %v4144_v63  ;;  %v4336_v32 = vld [vmem:[#allocation10 + $0x2b0] sm:$0xf0]  ;;  %v4914_v9 = vld [vmem:[#allocation10 + $0x284] sm:$0xf] }
 0x198   :  { %v4958_v62 = vld [vmem:[#allocation10 + $0x3e4] sm:$0xf] }
 0x199   :  { %1780 = vmatmul.bf16.vlgmr.msra.gmra.mxu3 %v5371_v33  ;;  %v4888_v33 = vld [vmem:[#allocation10 + $0x1ac] sm:$0xf0]  ;;  %2590 = vmatpush.bf16.msrb.mxu0 %v4015_v17  ;;  %v4016_v17 = vld [vmem:[#allocation10 + $0x30] sm:$0xf0] }
 0x19a   :  { %v4207_v18 = vor.u32 %v4888_v33, %v4206_v16  ;;  %v4838_v16 = vld [vmem:[#allocation10 + $0x24] sm:$0xf] }
 0x19b   :  { %2614 = vmatpush.bf16.msrb.mxu2 %v4335_v55  ;;  %v4886_v33 = vld [vmem:[#allocation10 + $0x1a4] sm:$0xf]  ;;  %v4352_v55 = vld [vmem:[#allocation10 + $0x2d0] sm:$0xf0] }
 0x19c   :  { %2600 = vmatpush.bf16.msrb.mxu1 %v4207_v18  ;;  %v4019_v18 = vor.u32 %v4838_v16, %v4016_v17  ;;  %v4211_v19 = vor.u32 %v4886_v33, %v4208_v10  ;;  %v4430_v17 = vld [vmem:[#allocation10 + $0x360] sm:$0xf]  ;;  %v4944_v33 = vld [vmem:[#allocation10 + $0x36c] sm:$0xf0] }
 0x19d   :  { %2591 = vmatpush.bf16.msrb.mxu0 %v3999_v21  ;;  %v4904_v21 = vld [vmem:[#allocation10 + $0x22c] sm:$0xf0]  ;;  %v4431_v10 = vor.u32 %v4944_v33, %v4430_v17 }
 0x19e   :  { %v4271_v23 = vor.u32 %v4904_v21, %v4270_v20  ;;  %v4304_v20 = vld [vmem:[#allocation10 + $0x270] sm:$0xf0] }
 0x19f   :  { %2615 = vmatpush.bf16.msrb.mxu2 %v4319_v0  ;;  %v4918_v0 = vld [vmem:[#allocation10 + $0x2a4] sm:$0xf] }
 0x1a0   :  { %2601 = vmatpush.bf16.msrb.mxu1 %v4191_v4  ;;  %v4834_v4 = vld [vmem:[#allocation10 + $0x4] sm:$0xf] }
 0x1a1   :  { %2640 = vmatpush.bf16.msra.mxu0 %v4115_v29  ;;  %v4003_v28 = vor.u32 %v4834_v4, %v4000_v26  ;;  %v4192_v29 = vld [vmem:[#allocation10 + $0x190] sm:$0xf0] }
 0x1a2   :  { %v4195_v31 = vor.u32 %v4882_v27, %v4192_v29  ;;  %v4940_v29 = vld [vmem:[#allocation10 + $0x34c] sm:$0xf0] }
 0x1a3   :  { %2616 = vmatpush.bf16.msrb.mxu2 %v4303_v6  ;;  %v4447_v6 = vor.u32 %v4948_v53, %v4446_v52 }
 0x1a4   :  { %2602 = vmatpush.bf16.msrb.mxu1 %v4175_v36  ;;  %v4900_v36 = vld [vmem:[#allocation10 + $0x20c] sm:$0xf0] }
 0x1a5   :  { %2641 = vmatpush.bf16.msra.mxu0 %v4099_v39  ;;  %v4255_v38 = vor.u32 %v4900_v36, %v4254_v35  ;;  %v4960_v39 = vld [vmem:[#allocation10 + $0x3ec] sm:$0xf0]  ;;  %v4288_v35 = vld [vmem:[#allocation10 + $0x250] sm:$0xf0] }
 0x1a6   :  { %v4495_v42 = vor.u32 %v4960_v39, %v4494_v37 }
 0x1a7   :  { %2617 = vmatpush.bf16.msrb.mxu2 %v4287_v3 }
 0x1a8   :  { %2603 = vmatpush.bf16.msrb.mxu1 %v4159_v43  ;;  %v4179_v43 = vor.u32 %v4878_v40, %v4176_v41  ;;  %2626 = vmatpush.bf16.msrb.mxu3 %v4495_v42  ;;  %v4398_v42 = vld [vmem:[#allocation10 + $0x320] sm:$0xf] }
 0x1a9   :  { %2642 = vmatpush.bf16.msra.mxu0 %v4083_v48  ;;  %v4956_v48 = vld [vmem:[#allocation10 + $0x3cc] sm:$0xf0] }
 0x1aa   :  { %v4479_v24 = vor.u32 %v4956_v48, %v4478_v46  ;;  %v4272_v46 = vld [vmem:[#allocation10 + $0x230] sm:$0xf0] }
 0x1ab   :  { %2618 = vmatpush.bf16.msrb.mxu2 %v4271_v23 }
 0x1ac   :  { %2604 = vmatpush.bf16.msrb.mxu1 %v4143_v54  ;;  %v4163_v54 = vor.u32 %v4874_v49, %v4160_v50  ;;  %2627 = vmatpush.bf16.msrb.mxu3 %v4479_v24  ;;  %v4118_v24 = vld [vmem:[#allocation10 + $0xe8] sm:$0xf]  ;;  %v4865_v49 = vld [vmem:[#allocation10 + $0xf4] sm:$0xf0] }
 0x1ad   :  { %2643 = vmatpush.bf16.msra.mxu0 %v4067_v57  ;;  %v4355_v57 = vor.u32 %v4922_v51, %v4352_v55  ;;  %v4119_v59 = vor.u32 %v4865_v49, %v4118_v24  ;;  %v4230_v24 = vld [vmem:[#allocation10 + $0x1c8] sm:$0xf] }
 0x1af   :  { %2619 = vmatpush.bf16.msrb.mxu2 %v4255_v38 }
 0x1b0   :  { %2605 = vmatpush.bf16.msrb.mxu1 %v4127_v34  ;;  %2628 = vmatpush.bf16.msrb.mxu3 %v4463_v61  ;;  %v4256_v61 = vld [vmem:[#allocation10 + $0x210] sm:$0xf0] }
 0x1b1   :  { %2644 = vmatpush.bf16.msra.mxu0 %v4051_v1  ;;  %v914_v1 = vperm.slane %v5390_v56, 0 }
 0x1b3   :  { %2668 = vmatpush.bf16.msra.mxu2 %v4371_v45  ;;  %v4902_v45 = vld [vmem:[#allocation10 + $0x224] sm:$0xf] }
 0x1b4   :  { %2654 = vmatpush.bf16.msra.mxu1 %v4243_v2  ;;  %v4339_v2 = vor.u32 %v4918_v0, %v4336_v32  ;;  %2629 = vmatpush.bf16.msrb.mxu3 %v4447_v6  ;;  %v4275_v50 = vor.u32 %v4902_v45, %v4272_v46  ;;  %v4038_v46 = vld [vmem:[#allocation10 + $0x48] sm:$0xf] }
 0x1b5   :  { %2645 = vmatpush.bf16.msra.mxu0 %v4035_v25 }
 0x1b7   :  { %2669 = vmatpush.bf16.msra.mxu2 %v4355_v57  ;;  %v4932_v57 = vld [vmem:[#allocation10 + $0x30c] sm:$0xf0] }
 0x1b8   :  { %2655 = vmatpush.bf16.msra.mxu1 %v4227_v13  ;;  %v4320_v13 = vld [vmem:[#allocation10 + $0x290] sm:$0xf0]  ;;  %2630 = vmatpush.bf16.msrb.mxu3 %v4431_v10  ;;  %v4070_v10 = vld [vmem:[#allocation10 + $0x88] sm:$0xf] }
 0x1b9   :  { %2646 = vmatpush.bf16.msra.mxu0 %v4019_v18  ;;  %v4323_v15 = vor.u32 %v4914_v9, %v4320_v13  ;;  %v4086_v9 = vld [vmem:[#allocation10 + $0xa8] sm:$0xf]  ;;  %v4857_v13 = vld [vmem:[#allocation10 + $0xb4] sm:$0xf0] }
 0x1bb   :  { %2670 = vmatpush.bf16.msra.mxu2 %v4339_v2  ;;  %v4496_v2 = vld [vmem:[#allocation10 + $0x3f0] sm:$0xf0] }
 0x1bc   :  { %2656 = vmatpush.bf16.msra.mxu1 %v4211_v19  ;;  %v4910_v19 = vld [vmem:[#allocation10 + $0x264] sm:$0xf]  ;;  %v4499_v53 = vor.u32 %v4958_v62, %v4496_v2  ;;  %v4022_v62 = vld [vmem:[#allocation10 + $0x28] sm:$0xf]  ;;  %v4889_v2 = vld [vmem:[#allocation10 + $0x1b4] sm:$0xf0] }
 0x1bd   :  { %v5385_v22 = vpop.f32.mrf.mxu0  ;;  %2647 = vmatpush.bf16.msra.mxu0 %v4003_v28  ;;  %v4307_v4 = vor.u32 %v4910_v19, %v4304_v20  ;;  %v4414_v28 = vld [vmem:[#allocation10 + $0x340] sm:$0xf]  ;;  %v4853_v20 = vld [vmem:[#allocation10 + $0x94] sm:$0xf0] }
 0x1be   :  { %v1572_v25 = vadd.f32 %v5385_v22, %v914_v1 }
 0x1bf   :  { %2671 = vmatpush.bf16.msra.mxu2 %v4323_v15  ;;  %v4480_v15 = vld [vmem:[#allocation10 + $0x3d0] sm:$0xf0] }
 0x1c0   :  { %2657 = vmatpush.bf16.msra.mxu1 %v4195_v31  ;;  %v4906_v31 = vld [vmem:[#allocation10 + $0x244] sm:$0xf] }
 0x1c1   :  { %v4291_v37 = vor.u32 %v4906_v31, %v4288_v35  ;;  %v4071_v35 = vor.u32 %v4853_v20, %v4070_v10  ;;  %v4863_v10 = vld [vmem:[#allocation10 + $0xec] sm:$0xf] }
 0x1c3   :  { %2672 = vmatpush.bf16.msra.mxu2 %v4307_v4 }
 0x1c4   :  { %v1585_v30 = vpop.f32.mrf.mxu1  ;;  %2658 = vmatpush.bf16.msra.mxu1 %v4179_v43  ;;  %v4936_v43 = vld [vmem:[#allocation10 + $0x32c] sm:$0xf0] }
 0x1c5   :  { %v1573_v12 = vpop.f32.mrf.mxu0  ;;  %v1586_v3 = vadd.f32 %v1585_v30, %v1572_v25  ;;  %v4415_v30 = vor.u32 %v4940_v29, %v4414_v28  ;;  %v4399_v44 = vor.u32 %v4936_v43, %v4398_v42 }
 0x1c6   :  { %v1574_v21 = vadd.f32 %v1573_v12, %v914_v1  ;;  %v4382_v12 = vld [vmem:[#allocation10 + $0x300] sm:$0xf]  ;;  %v4102_v1 = vld [vmem:[#allocation10 + $0xc8] sm:$0xf] }
 0x1c7   :  { %2631 = vmatpush.bf16.msrb.mxu3 %v4415_v30  ;;  %2673 = vmatpush.bf16.msra.mxu2 %v4291_v37  ;;  %v4383_v60 = vor.u32 %v4932_v57, %v4382_v12  ;;  %v4054_v30 = vld [vmem:[#allocation10 + $0x68] sm:$0xf] }
 0x1c8   :  { %2659 = vmatpush.bf16.msra.mxu1 %v4163_v54  ;;  %v4246_v37 = vld [vmem:[#allocation10 + $0x1e8] sm:$0xf] }
 0x1cb   :  { %2632 = vmatpush.bf16.msrb.mxu3 %v4399_v44  ;;  %2674 = vmatpush.bf16.msra.mxu2 %v4275_v50 }
 0x1cc   :  { %v1587_v34 = vpop.f32.mrf.mxu1  ;;  %2660 = vmatpush.bf16.msra.mxu1 %v4147_v47  ;;  %v4861_v47 = vld [vmem:[#allocation10 + $0xd4] sm:$0xf0] }
 0x1cd   :  { %v1627_v18 = vpop.f32.mrf.mxu0  ;;  %v1588_v22 = vadd.f32 %v1587_v34, %v1574_v21  ;;  %v4898_v34 = vld [vmem:[#allocation10 + $0x204] sm:$0xf]  ;;  %v4103_v8 = vor.u32 %v4861_v47, %v4102_v1  ;;  %v4214_v1 = vld [vmem:[#allocation10 + $0x1a8] sm:$0xf] }
 0x1ce   :  { %v1628_v63 = vadd.f32 %v1627_v18, %v915_v5  ;;  %v4259_v32 = vor.u32 %v4898_v34, %v4256_v61  ;;  %v4087_v18 = vor.u32 %v4857_v13, %v4086_v9  ;;  %v4950_v21 = vld [vmem:[#allocation10 + $0x3a4] sm:$0xf]  ;;  %v4006_v13 = vld [vmem:[#allocation10 + $0x8] sm:$0xf] }
 0x1cf   :  { %2633 = vmatpush.bf16.msrb.mxu3 %v4383_v60 }
 0x1d0   :  { %2661 = vmatpush.bf16.msra.mxu1 %v4131_v11  ;;  %2675 = vmatpush.bf16.msra.mxu2 %v4259_v32 }
 0x1d3   :  { %2682 = vmatpush.bf16.msra.mxu3 %v4499_v53  ;;  %v4416_v53 = vld [vmem:[#allocation10 + $0x350] sm:$0xf0] }
 0x1d4   :  { %v1641_v26 = vpop.f32.mrf.mxu1 }
 0x1d5   :  { %v1599_v58 = vpop.f32.mrf.mxu2  ;;  %v1629_v51 = vpop.f32.mrf.mxu0  ;;  %v1642_v6 = vadd.f32 %v1641_v26, %v1628_v63  ;;  %v4841_v63 = vld [vmem:[#allocation10 + $0x34] sm:$0xf0] }
 0x1d6   :  { %v1600_v23 = vadd.f32 %v1599_v58, %v1586_v3  ;;  %v1630_v25 = vadd.f32 %v1629_v51, %v915_v5  ;;  %v4893_v51 = vld [vmem:[#allocation10 + $0x1d4] sm:$0xf0] }
 0x1d7   :  { %v4231_v61 = vor.u32 %v4893_v51, %v4230_v24  ;;  %v4925_v24 = vld [vmem:[#allocation10 + $0x2d4] sm:$0xf0]  ;;  %v4088_v51 = vld [vmem:[#allocation10 + $0xb8] sm:$0xf0] }
 0x1dc   :  { %v1613_v14 = vpop.f32.mrf.mxu3  ;;  %v1643_v58 = vpop.f32.mrf.mxu1 }
 0x1dd   :  { %v1601_v16 = vpop.f32.mrf.mxu2  ;;  %v1614_v27 = vadd.f32 %v1613_v14, %v1600_v23  ;;  %v4954_v14 = vld [vmem:[#allocation10 + $0x3c4] sm:$0xf]  ;;  %v1683_v33 = vpop.f32.mrf.mxu0  ;;  %v4464_v23 = vld [vmem:[#allocation10 + $0x3b0] sm:$0xf0] }
 0x1de   :  { %v1602_v36 = vadd.f32 %v1601_v16, %v1588_v22  ;;  %v4483_v3 = vor.u32 %v4954_v14, %v4480_v15  ;;  %v1644_v16 = vadd.f32 %v1643_v58, %v1630_v25  ;;  %v4467_v22 = vor.u32 %v4950_v21, %v4464_v23  ;;  %v4837_v14 = vld [vmem:[#allocation10 + $0x14] sm:$0xf0]  ;;  %v4198_v15 = vld [vmem:[#allocation10 + $0x188] sm:$0xf] }
 0x1df   :  { %v1786_v39 = vmul.f32 0.2, %v1614_v27  ;;  %v4023_v25 = vor.u32 %v4841_v63, %v4022_v62  ;;  %v4072_v62 = vld [vmem:[#allocation10 + $0x98] sm:$0xf0] }
 0x1e0   :  { %2683 = vmatpush.bf16.msra.mxu3 %v4483_v3 }
 0x1e1   :  { %v1794_v54 = vmax.f32 %v1614_v27, %v1786_v39  ;;  %v916_v27 = vperm.slane %v5390_v56, 2 }
 0x1e3   :  { %v1684_v49 = vadd.f32 %v1683_v33, %v916_v27  ;;  %v4400_v33 = vld [vmem:[#allocation10 + $0x330] sm:$0xf0] }
 0x1e4   :  { %v1615_v38 = vpop.f32.mrf.mxu3  ;;  %v1697_v4 = vpop.f32.mrf.mxu1  ;;  %2684 = vmatpush.bf16.msra.mxu3 %v4467_v22  ;;  %v4182_v22 = vld [vmem:[#allocation10 + $0x168] sm:$0xf] }
 0x1e5   :  { %v1616_v40 = vadd.f32 %v1615_v38, %v1602_v36  ;;  %v1655_v41 = vpop.f32.mrf.mxu2  ;;  %v4849_v36 = vld [vmem:[#allocation10 + $0x74] sm:$0xf0]  ;;  %v1685_v12 = vpop.f32.mrf.mxu0 }
 0x1e6   :  { %v1656_v11 = vadd.f32 %v1655_v41, %v1642_v6  ;;  %v4897_v38 = vld [vmem:[#allocation10 + $0x1f4] sm:$0xf0]  ;;  %v4448_v41 = vld [vmem:[#allocation10 + $0x390] sm:$0xf0]  ;;  %v4055_v44 = vor.u32 %v4849_v36, %v4054_v30  ;;  %v1686_v47 = vadd.f32 %v1685_v12, %v916_v27 }
 0x1e7   :  { %v1790_v48 = vmul.f32 0.2, %v1616_v40  ;;  %v4247_v45 = vor.u32 %v4897_v38, %v4246_v37  ;;  %v4881_v27 = vld [vmem:[#allocation10 + $0x174] sm:$0xf0]  ;;  %v4859_v37 = vld [vmem:[#allocation10 + $0xcc] sm:$0xf] }
 0x1e8   :  { %v4929_v36 = vld [vmem:[#allocation10 + $0x2f4] sm:$0xf0]  ;;  %v4104_v38 = vld [vmem:[#allocation10 + $0xd8] sm:$0xf0] }
 0x1e9   :  { %v1798_v55 = vmax.f32 %v1616_v40, %v1790_v48  ;;  %v4946_v40 = vld [vmem:[#allocation10 + $0x384] sm:$0xf]  ;;  %v4845_v48 = vld [vmem:[#allocation10 + $0x54] sm:$0xf0] }
 0x1ea   :  { %v4451_v42 = vor.u32 %v4946_v40, %v4448_v41  ;;  %v4039_v34 = vor.u32 %v4845_v48, %v4038_v46  ;;  %v4877_v46 = vld [vmem:[#allocation10 + $0x154] sm:$0xf0]  ;;  %v4358_v48 = vld [vmem:[#allocation10 + $0x2c8] sm:$0xf] }
 0x1eb   :  { %v5395_v0 = vpack.c.bf16 %v1798_v55, %v1794_v54  ;;  %v4942_v54 = vld [vmem:[#allocation10 + $0x364] sm:$0xf]  ;;  %v4432_v55 = vld [vmem:[#allocation10 + $0x370] sm:$0xf0]  ;;  %v4359_v12 = vor.u32 %v4925_v24, %v4358_v48  ;;  %v4905_v24 = vld [vmem:[#allocation10 + $0x234] sm:$0xf0] }
 0x1ec   :  { %v1669_v52 = vpop.f32.mrf.mxu3  ;;  %2685 = vmatpush.bf16.msra.mxu3 %v4451_v42  ;;  %v4435_v58 = vor.u32 %v4942_v54, %v4432_v55  ;;  %v1699_v60 = vpop.f32.mrf.mxu1  ;;  %v4183_v42 = vor.u32 %v4881_v27, %v4182_v22 }
 0x1ed   :  { %2592 = vmatmul.bf16.vlgmr.msrb.gmra.mxu0 %v5395_v0  ;;  %v1657_v7 = vpop.f32.mrf.mxu2  ;;  %v1670_v17 = vadd.f32 %v1669_v52, %v1656_v11  ;;  %v4938_v52 = vld [vmem:[#allocation10 + $0x344] sm:$0xf]  ;;  %v4215_v11 = vor.u32 %v4889_v2, %v4214_v1  ;;  %v917_v1 = vperm.slane %v5390_v56, 3 }
 0x1ee   :  { %2696 = vmatpush.bf16.msrb.mxu0 %v4119_v59  ;;  %v1658_v19 = vadd.f32 %v1657_v7, %v1644_v16  ;;  %v1698_v59 = vadd.f32 %v1697_v4, %v1684_v49  ;;  %v4419_v7 = vor.u32 %v4938_v52, %v4416_v53  ;;  %v4885_v16 = vld [vmem:[#allocation10 + $0x194] sm:$0xf0]  ;;  %v4007_v4 = vor.u32 %v4837_v14, %v4006_v13  ;;  %v4855_v49 = vld [vmem:[#allocation10 + $0xac] sm:$0xf]  ;;  %v4134_v53 = vld [vmem:[#allocation10 + $0x108] sm:$0xf] }
 0x1ef   :  { %v1787_v28 = vmul.f32 0.2, %v1670_v17  ;;  %v4248_v13 = vld [vmem:[#allocation10 + $0x1f8] sm:$0xf0] }
 0x1f0   :  { %2686 = vmatpush.bf16.msra.mxu3 %v4435_v58  ;;  %v4150_v58 = vld [vmem:[#allocation10 + $0x128] sm:$0xf] }
 0x1f1   :  { %v1795_v43 = vmax.f32 %v1670_v17, %v1787_v28  ;;  %v4934_v17 = vld [vmem:[#allocation10 + $0x324] sm:$0xf]  ;;  %v4374_v28 = vld [vmem:[#allocation10 + $0x2e8] sm:$0xf] }
 0x1f2   :  { %2697 = vmatpush.bf16.msrb.mxu0 %v4103_v8  ;;  %v1700_v8 = vadd.f32 %v1699_v60, %v1686_v47  ;;  %v4403_v20 = vor.u32 %v4934_v17, %v4400_v33  ;;  %v4342_v60 = vld [vmem:[#allocation10 + $0x2a8] sm:$0xf]  ;;  %v4913_v33 = vld [vmem:[#allocation10 + $0x274] sm:$0xf0] }
 0x1f4   :  { %v1671_v26 = vpop.f32.mrf.mxu3  ;;  %2687 = vmatpush.bf16.msra.mxu3 %v4419_v7  ;;  %v4326_v7 = vld [vmem:[#allocation10 + $0x288] sm:$0xf] }
 0x1f5   :  { %v1672_v29 = vadd.f32 %v1671_v26, %v1658_v19  ;;  %v1711_v31 = vpop.f32.mrf.mxu2  ;;  %v4120_v19 = vld [vmem:[#allocation10 + $0xf8] sm:$0xf0]  ;;  %v4199_v26 = vor.u32 %v4885_v16, %v4198_v15 }
 0x1f6   :  { %2698 = vmatpush.bf16.msrb.mxu0 %v4087_v18  ;;  %v1712_v32 = vadd.f32 %v1711_v31, %v1698_v59  ;;  %v4123_v30 = vor.u32 %v4863_v10, %v4120_v19  ;;  %v4930_v31 = vld [vmem:[#allocation10 + $0x304] sm:$0xf]  ;;  %v4873_v59 = vld [vmem:[#allocation10 + $0x134] sm:$0xf0]  ;;  %v4040_v10 = vld [vmem:[#allocation10 + $0x58] sm:$0xf0] }
 0x1f7   :  { %v1791_v39 = vmul.f32 0.2, %v1672_v29  ;;  %v4151_v47 = vor.u32 %v4873_v59, %v4150_v58 }
 0x1f8   :  { %2688 = vmatpush.bf16.msra.mxu3 %v4403_v20 }
 0x1f9   :  { %v1799_v5 = vmax.f32 %v1672_v29, %v1791_v39 }
 0x1fa   :  { %2699 = vmatpush.bf16.msrb.mxu0 %v4071_v35  ;;  %v4384_v35 = vld [vmem:[#allocation10 + $0x310] sm:$0xf0] }
 0x1fb   :  { %v5399_v50 = vpack.c.bf16 %v1799_v5, %v1795_v43  ;;  %v4387_v39 = vor.u32 %v4930_v31, %v4384_v35  ;;  %v4375_v5 = vor.u32 %v4929_v36, %v4374_v28  ;;  %v4294_v28 = vld [vmem:[#allocation10 + $0x248] sm:$0xf]  ;;  %v4909_v35 = vld [vmem:[#allocation10 + $0x254] sm:$0xf0]  ;;  %v4839_v36 = vld [vmem:[#allocation10 + $0x2c] sm:$0xf] }
 0x1fc   :  { %v1725_v57 = vpop.f32.mrf.mxu3 }
 0x1fd   :  { %2606 = vmatmul.bf16.vlgmr.msrb.gmra.mxu1 %v5399_v50  ;;  %2648 = vmatmul.bf16.vlgmr.msra.gmra.mxu0 %v5395_v0  ;;  %v1713_v6 = vpop.f32.mrf.mxu2  ;;  %v1726_v9 = vadd.f32 %v1725_v57, %v1712_v32  ;;  %v1739_v55 = vpop.f32.mrf.mxu0  ;;  %v4091_v57 = vor.u32 %v4855_v49, %v4088_v51  ;;  %v4835_v49 = vld [vmem:[#allocation10 + $0xc] sm:$0xf]  ;;  %v4008_v51 = vld [vmem:[#allocation10 + $0x18] sm:$0xf0] }
 0x1fe   :  { %2700 = vmatpush.bf16.msrb.mxu0 %v4055_v44  ;;  %2710 = vmatpush.bf16.msrb.mxu1 %v4247_v45  ;;  %v1714_v3 = vadd.f32 %v1713_v6, %v1700_v8  ;;  %v4107_v44 = vor.u32 %v4859_v37, %v4104_v38  ;;  %v4166_v45 = vld [vmem:[#allocation10 + $0x148] sm:$0xf]  ;;  %v4869_v6 = vld [vmem:[#allocation10 + $0x114] sm:$0xf0]  ;;  %v1740_v16 = vadd.f32 %v1739_v55, %v917_v1  ;;  %v4024_v37 = vld [vmem:[#allocation10 + $0x38] sm:$0xf0] }
 0x1ff   :  { %v1788_v21 = vmul.f32 0.2, %v1726_v9  ;;  %2689 = vmatpush.bf16.msra.mxu3 %v4387_v39  ;;  %v4167_v54 = vor.u32 %v4877_v46, %v4166_v45  ;;  %v4917_v8 = vld [vmem:[#allocation10 + $0x294] sm:$0xf0]  ;;  %v4135_v14 = vor.u32 %v4869_v6, %v4134_v53  ;;  %v4887_v39 = vld [vmem:[#allocation10 + $0x1ac] sm:$0xf] }
 0x200   :  { %v4327_v56 = vor.u32 %v4917_v8, %v4326_v7  ;;  %v4278_v45 = vld [vmem:[#allocation10 + $0x228] sm:$0xf]  ;;  %v4883_v55 = vld [vmem:[#allocation10 + $0x18c] sm:$0xf]  ;;  %v4376_v53 = vld [vmem:[#allocation10 + $0x2f8] sm:$0xf0] }
 0x201   :  { %v1796_v40 = vmax.f32 %v1726_v9, %v1788_v21  ;;  %v4847_v9 = vld [vmem:[#allocation10 + $0x6c] sm:$0xf]  ;;  %v4279_v59 = vor.u32 %v4905_v24, %v4278_v45 }
 0x202   :  { %2701 = vmatpush.bf16.msrb.mxu0 %v4039_v34  ;;  %2711 = vmatpush.bf16.msrb.mxu1 %v4231_v61  ;;  %v4921_v34 = vld [vmem:[#allocation10 + $0x2b4] sm:$0xf0]  ;;  %v4851_v61 = vld [vmem:[#allocation10 + $0x8c] sm:$0xf] }
 0x203   :  { %v4343_v2 = vor.u32 %v4921_v34, %v4342_v60  ;;  %v4075_v52 = vor.u32 %v4851_v61, %v4072_v62  ;;  %v4891_v21 = vld [vmem:[#allocation10 + $0x1cc] sm:$0xf]  ;;  %v4011_v60 = vor.u32 %v4835_v49, %v4008_v51  ;;  %v4262_v34 = vld [vmem:[#allocation10 + $0x208] sm:$0xf]  ;;  %v4901_v61 = vld [vmem:[#allocation10 + $0x214] sm:$0xf0] }
 0x204   :  { %v1727_v18 = vpop.f32.mrf.mxu3  ;;  %v1753_v63 = vpop.f32.mrf.mxu1  ;;  %v4502_v62 = vld [vmem:[#allocation10 + $0x3e8] sm:$0xf]  ;;  %v4263_v8 = vor.u32 %v4901_v61, %v4262_v34  ;;  %v4907_v24 = vld [vmem:[#allocation10 + $0x24c] sm:$0xf]  ;;  %v4296_v49 = vld [vmem:[#allocation10 + $0x258] sm:$0xf0] }
 0x205   :  { %v1728_v23 = vadd.f32 %v1727_v18, %v1714_v3  ;;  %v4310_v3 = vld [vmem:[#allocation10 + $0x268] sm:$0xf]  ;;  %v4843_v18 = vld [vmem:[#allocation10 + $0x4c] sm:$0xf]  ;;  %v1741_v19 = vpop.f32.mrf.mxu0  ;;  %v4933_v61 = vld [vmem:[#allocation10 + $0x314] sm:$0xf0] }
 0x206   :  { %2702 = vmatpush.bf16.msrb.mxu0 %v4023_v25  ;;  %2712 = vmatpush.bf16.msrb.mxu1 %v4215_v11  ;;  %v4056_v25 = vld [vmem:[#allocation10 + $0x78] sm:$0xf0]  ;;  %v4895_v11 = vld [vmem:[#allocation10 + $0x1ec] sm:$0xf]  ;;  %v4311_v22 = vor.u32 %v4913_v33, %v4310_v3  ;;  %v4043_v27 = vor.u32 %v4843_v18, %v4040_v10  ;;  %v4390_v34 = vld [vmem:[#allocation10 + $0x308] sm:$0xf] }
 0x207   :  { %v1792_v29 = vmul.f32 0.2, %v1728_v23  ;;  %v4059_v15 = vor.u32 %v4847_v9, %v4056_v25  ;;  %v4251_v17 = vor.u32 %v4895_v11, %v4248_v13  ;;  %v4168_v3 = vld [vmem:[#allocation10 + $0x158] sm:$0xf0] }
 0x209   :  { %v1800_v41 = vmax.f32 %v1728_v23, %v1792_v29  ;;  %v4232_v23 = vld [vmem:[#allocation10 + $0x1d8] sm:$0xf0]  ;;  %v1742_v29 = vadd.f32 %v1741_v19, %v917_v1  ;;  %v4470_v19 = vld [vmem:[#allocation10 + $0x3a8] sm:$0xf] }
 0x20a   :  { %2703 = vmatpush.bf16.msrb.mxu0 %v4007_v4  ;;  %2713 = vmatpush.bf16.msrb.mxu1 %v4199_v26  ;;  %v1754_v4 = vadd.f32 %v1753_v63, %v1740_v16  ;;  %v4235_v31 = vor.u32 %v4891_v21, %v4232_v23  ;;  %v4923_v16 = vld [vmem:[#allocation10 + $0x2cc] sm:$0xf]  ;;  %v4152_v23 = vld [vmem:[#allocation10 + $0x138] sm:$0xf0] }
 0x20b   :  { %v5403_v43 = vpack.c.bf16 %v1800_v41, %v1796_v40  ;;  %v4216_v40 = vld [vmem:[#allocation10 + $0x1b8] sm:$0xf0]  ;;  %v4871_v21 = vld [vmem:[#allocation10 + $0x12c] sm:$0xf] }
 0x20c   :  { %v1755_v26 = vpop.f32.mrf.mxu1  ;;  %v4219_v48 = vor.u32 %v4887_v39, %v4216_v40  ;;  %v4438_v40 = vld [vmem:[#allocation10 + $0x368] sm:$0xf] }
 0x20d   :  { %2620 = vmatmul.bf16.vlgmr.msrb.gmra.mxu2 %v5403_v43  ;;  %2662 = vmatmul.bf16.vlgmr.msra.gmra.mxu1 %v5399_v50  ;;  %v1756_v41 = vadd.f32 %v1755_v26, %v1742_v29  ;;  %v4344_v26 = vld [vmem:[#allocation10 + $0x2b8] sm:$0xf0]  ;;  %v4949_v29 = vld [vmem:[#allocation10 + $0x394] sm:$0xf0] }
 0x20e   :  { %2752 = vmatpush.bf16.msra.mxu0 %v4123_v30  ;;  %2714 = vmatpush.bf16.msrb.mxu1 %v4183_v42 }
 0x20f   :  { %2704 = vmatmul.bf16.vlgmr.msrb.gmra.mxu0 %v5395_v0  ;;  %2724 = vmatpush.bf16.msrb.mxu2 %v4375_v5  ;;  %v4295_v5 = vor.u32 %v4909_v35, %v4294_v28  ;;  %v4454_v28 = vld [vmem:[#allocation10 + $0x388] sm:$0xf]  ;;  %v4915_v35 = vld [vmem:[#allocation10 + $0x28c] sm:$0xf] }
 0x212   :  { %2753 = vmatpush.bf16.msra.mxu0 %v4107_v44  ;;  %2715 = vmatpush.bf16.msrb.mxu1 %v4167_v54  ;;  %v4027_v44 = vor.u32 %v4839_v36, %v4024_v37  ;;  %v4328_v36 = vld [vmem:[#allocation10 + $0x298] sm:$0xf0]  ;;  %v4455_v37 = vor.u32 %v4949_v29, %v4454_v28  ;;  %v4964_v28 = vld [vmem:[#allocation11 + $0x10] sm:$0xff] }
 0x213   :  { %2725 = vmatpush.bf16.msrb.mxu2 %v4359_v12  ;;  %v4200_v12 = vld [vmem:[#allocation10 + $0x198] sm:$0xf0]  ;;  %v4331_v39 = vor.u32 %v4915_v35, %v4328_v36  ;;  %v4976_v29 = vld [vmem:[#allocation11 + $0x70] sm:$0xff]  ;;  %v4974_v35 = vld [vmem:[#allocation11 + $0x60] sm:$0xff] }
 0x214   :  { %v4203_v1 = vor.u32 %v4883_v55, %v4200_v12  ;;  %v4406_v55 = vld [vmem:[#allocation10 + $0x328] sm:$0xf]  ;;  %v4937_v12 = vld [vmem:[#allocation10 + $0x334] sm:$0xf0] }
 0x215   :  { %v1767_v32 = vpop.f32.mrf.mxu2 }
 0x216   :  { %2754 = vmatpush.bf16.msra.mxu0 %v4091_v57  ;;  %2716 = vmatpush.bf16.msrb.mxu1 %v4151_v47  ;;  %v1768_v30 = vadd.f32 %v1767_v32, %v1754_v4  ;;  %v4961_v47 = vld [vmem:[#allocation10 + $0x3f4] sm:$0xf0]  ;;  %v4879_v32 = vld [vmem:[#allocation10 + $0x16c] sm:$0xf] }
 0x217   :  { %2726 = vmatpush.bf16.msrb.mxu2 %v4343_v2  ;;  %v4184_v2 = vld [vmem:[#allocation10 + $0x178] sm:$0xf0]  ;;  %v4503_v9 = vor.u32 %v4961_v47, %v4502_v62  ;;  %v4919_v4 = vld [vmem:[#allocation10 + $0x2ac] sm:$0xf] }
 0x218   :  { %v4187_v11 = vor.u32 %v4879_v32, %v4184_v2  ;;  %v4899_v62 = vld [vmem:[#allocation10 + $0x20c] sm:$0xf]  ;;  %v4504_v47 = vld [vmem:[#allocation10 + $0x3f8] sm:$0xf0]  ;;  %v4391_v32 = vor.u32 %v4933_v61, %v4390_v34 }
 0x21a   :  { %2755 = vmatpush.bf16.msra.mxu0 %v4075_v52  ;;  %2717 = vmatpush.bf16.msrb.mxu1 %v4135_v14  ;;  %v4927_v52 = vld [vmem:[#allocation10 + $0x2ec] sm:$0xf]  ;;  %v4486_v14 = vld [vmem:[#allocation10 + $0x3c8] sm:$0xf] }
 0x21b   :  { %2727 = vmatpush.bf16.msrb.mxu2 %v4327_v56  ;;  %v4379_v13 = vor.u32 %v4927_v52, %v4376_v53  ;;  %v4957_v56 = vld [vmem:[#allocation10 + $0x3d4] sm:$0xf0]  ;;  %v4955_v52 = vld [vmem:[#allocation10 + $0x3cc] sm:$0xf]  ;;  %v4488_v53 = vld [vmem:[#allocation10 + $0x3d8] sm:$0xf0] }
 0x21c   :  { %v1781_v20 = vpop.f32.mrf.mxu3  ;;  %v4487_v33 = vor.u32 %v4957_v56, %v4486_v14  ;;  %v4943_v56 = vld [vmem:[#allocation10 + $0x36c] sm:$0xf] }
 0x21d   :  { %v1769_v38 = vpop.f32.mrf.mxu2  ;;  %2676 = vmatmul.bf16.vlgmr.msra.gmra.mxu2 %v5403_v43  ;;  %2718 = vmatmul.bf16.vlgmr.msrb.gmra.mxu1 %v5399_v50  ;;  %v1782_v42 = vadd.f32 %v1781_v20, %v1768_v30  ;;  %v4953_v20 = vld [vmem:[#allocation10 + $0x3b4] sm:$0xf0]  ;;  %v4867_v30 = vld [vmem:[#allocation10 + $0x10c] sm:$0xf] }
 0x21e   :  { %2756 = vmatpush.bf16.msra.mxu0 %v4059_v15  ;;  %2766 = vmatpush.bf16.msra.mxu1 %v4251_v17  ;;  %v1770_v46 = vadd.f32 %v1769_v38, %v1756_v41  ;;  %v4875_v15 = vld [vmem:[#allocation10 + $0x14c] sm:$0xf]  ;;  %v4360_v17 = vld [vmem:[#allocation10 + $0x2d8] sm:$0xf0]  ;;  %v4945_v41 = vld [vmem:[#allocation10 + $0x374] sm:$0xf0] }
 0x21f   :  { %2728 = vmatpush.bf16.msrb.mxu2 %v4311_v22  ;;  %v1789_v57 = vmul.f32 0.2, %v1782_v42  ;;  %v4171_v18 = vor.u32 %v4875_v15, %v4168_v3  ;;  %v4363_v10 = vor.u32 %v4923_v16, %v4360_v17  ;;  %v4471_v22 = vor.u32 %v4953_v20, %v4470_v19  ;;  %v4440_v15 = vld [vmem:[#allocation10 + $0x378] sm:$0xf0]  ;;  %v4939_v16 = vld [vmem:[#allocation10 + $0x34c] sm:$0xf] }
 0x220   :  { %v4443_v3 = vor.u32 %v4943_v56, %v4440_v15  ;;  %v4424_v17 = vld [vmem:[#allocation10 + $0x358] sm:$0xf0]  ;;  %v4931_v20 = vld [vmem:[#allocation10 + $0x30c] sm:$0xf] }
 0x221   :  { %v1797_v6 = vmax.f32 %v1782_v42, %v1789_v57  ;;  %v4911_v42 = vld [vmem:[#allocation10 + $0x26c] sm:$0xf] }
 0x222   :  { %2757 = vmatpush.bf16.msra.mxu0 %v4043_v27  ;;  %2767 = vmatpush.bf16.msra.mxu1 %v4235_v31  ;;  %v4347_v27 = vor.u32 %v4919_v4, %v4344_v26  ;;  %v4136_v31 = vld [vmem:[#allocation10 + $0x118] sm:$0xf0]  ;;  %v4903_v57 = vld [vmem:[#allocation10 + $0x22c] sm:$0xf]  ;;  %v4968_v4 = vld [vmem:[#allocation11 + $0x30] sm:$0xff] }
 0x223   :  { %2729 = vmatpush.bf16.msrb.mxu2 %v4295_v5  ;;  %v4139_v38 = vor.u32 %v4867_v30, %v4136_v31  ;;  %v4312_v5 = vld [vmem:[#allocation10 + $0x278] sm:$0xf0]  ;;  %v4967_v26 = vld [vmem:[#allocation11 + $0x28] sm:$0xff] }
 0x224   :  { %v1783_v54 = vpop.f32.mrf.mxu3  ;;  %v4315_v45 = vor.u32 %v4911_v42, %v4312_v5  ;;  %v4963_v30 = vld [vmem:[#allocation11 + $0x8] sm:$0xff]  ;;  %v4984_v42 = vld [vmem:[#allocation11 + $0xb0] sm:$0xff]  ;;  %v5424_v5 = vld [vmem:[%s5444_s8] sm:$0xf] }
 0x225   :  { %v1784_v58 = vadd.f32 %v1783_v54, %v1770_v46  ;;  %v4422_v46 = vld [vmem:[#allocation10 + $0x348] sm:$0xf]  ;;  %v4299_v54 = vor.u32 %v4907_v24, %v4296_v49  ;;  %v1936_v24 = vperm.slane %v5424_v5, 0 }
 0x226   :  { %2758 = vmatpush.bf16.msra.mxu0 %v4027_v44  ;;  %2768 = vmatpush.bf16.msra.mxu1 %v4219_v48  ;;  %v4439_v44 = vor.u32 %v4945_v41, %v4438_v40  ;;  %v4941_v48 = vld [vmem:[#allocation10 + $0x354] sm:$0xf0]  ;;  %v4975_v31 = vld [vmem:[#allocation11 + $0x68] sm:$0xff]  ;;  %v4972_v41 = vld [vmem:[#allocation11 + $0x50] sm:$0xff] }
 0x227   :  { %v1793_v63 = vmul.f32 0.2, %v1784_v58  ;;  %2730 = vmatpush.bf16.msrb.mxu2 %v4279_v59  ;;  %v4423_v51 = vor.u32 %v4941_v48, %v4422_v46  ;;  %v4407_v59 = vor.u32 %v4937_v12, %v4406_v55  ;;  %v4983_v46 = vld [vmem:[#allocation11 + $0xa8] sm:$0xff] }
 0x229   :  { %v1801_v7 = vmax.f32 %v1784_v58, %v1793_v63  ;;  %v4280_v58 = vld [vmem:[#allocation10 + $0x238] sm:$0xf0] }
 0x22a   :  { %2759 = vmatpush.bf16.msra.mxu0 %v4011_v60  ;;  %2769 = vmatpush.bf16.msra.mxu1 %v4203_v1  ;;  %v4283_v60 = vor.u32 %v4903_v57, %v4280_v58  ;;  %v4264_v63 = vld [vmem:[#allocation10 + $0x218] sm:$0xf0]  ;;  %v4959_v1 = vld [vmem:[#allocation10 + $0x3ec] sm:$0xf] }
 0x22b   :  { %v5411_v25 = vpack.c.bf16 %v1801_v7, %v1797_v6  ;;  %2731 = vmatpush.bf16.msrb.mxu2 %v4263_v8  ;;  %v4507_v2 = vor.u32 %v4959_v1, %v4504_v47  ;;  %v4491_v6 = vor.u32 %v4955_v52, %v4488_v53  ;;  %v4951_v7 = vld [vmem:[#allocation10 + $0x3ac] sm:$0xf]  ;;  %v4472_v8 = vld [vmem:[#allocation10 + $0x3b8] sm:$0xf0]  ;;  %v4980_v1 = vld [vmem:[#allocation11 + $0x90] sm:$0xff] }
 0x22c   :  { %v4981_v58 = vld [vmem:[#allocation11 + $0x98] sm:$0xff]  ;;  %v4979_v53 = vld [vmem:[#allocation11 + $0x88] sm:$0xff] }
 0x22d   :  { %2634 = vmatmul.bf16.vlgmr.msrb.gmra.mxu3 %v5411_v25  ;;  %2760 = vmatmul.bf16.vlgmr.msra.gmra.mxu0 %v5395_v0  ;;  %v4155_v0 = vor.u32 %v4871_v21, %v4152_v23  ;;  %v4969_v23 = vld [vmem:[#allocation11 + $0x38] sm:$0xff] }
 0x22e   :  { %2738 = vmatpush.bf16.msrb.mxu3 %v4503_v9  ;;  %2770 = vmatpush.bf16.msra.mxu1 %v4187_v11  ;;  %v4475_v9 = vor.u32 %v4951_v7, %v4472_v8  ;;  %v4947_v11 = vld [vmem:[#allocation10 + $0x38c] sm:$0xf] }
 0x22f   :  { %2780 = vmatpush.bf16.msra.mxu2 %v4379_v13  ;;  %v4456_v13 = vld [vmem:[#allocation10 + $0x398] sm:$0xf0]  ;;  %3088 = vmatpush.bf16.msrb.mxu0 %v4969_v23 }
 0x230   :  { %2732 = vmatmul.bf16.vlgmr.msrb.gmra.mxu2 %v5403_v43  ;;  %v4459_v14 = vor.u32 %v4947_v11, %v4456_v13  ;;  %v4978_v13 = vld [vmem:[#allocation11 + $0x80] sm:$0xff] }
 0x232   :  { %2739 = vmatpush.bf16.msrb.mxu3 %v4487_v33  ;;  %2771 = vmatpush.bf16.msra.mxu1 %v4171_v18  ;;  %v4427_v33 = vor.u32 %v4939_v16, %v4424_v17  ;;  %v4935_v18 = vld [vmem:[#allocation10 + $0x32c] sm:$0xf] }
 0x233   :  { %2781 = vmatpush.bf16.msra.mxu2 %v4363_v10  ;;  %v4408_v10 = vld [vmem:[#allocation10 + $0x338] sm:$0xf0]  ;;  %3089 = vmatpush.bf16.msrb.mxu0 %v4968_v4 }
 0x234   :  { %v4411_v19 = vor.u32 %v4935_v18, %v4408_v10  ;;  %v4992_v18 = vld [vmem:[#allocation11 + $0xf0] sm:$0xff] }
 0x236   :  { %2740 = vmatpush.bf16.msrb.mxu3 %v4471_v22  ;;  %2772 = vmatpush.bf16.msra.mxu1 %v4155_v0  ;;  %v4966_v22 = vld [vmem:[#allocation11 + $0x20] sm:$0xff]  ;;  %v4965_v0 = vld [vmem:[#allocation11 + $0x18] sm:$0xff] }
 0x237   :  { %2782 = vmatpush.bf16.msra.mxu2 %v4347_v27  ;;  %3090 = vmatpush.bf16.msrb.mxu0 %v4967_v26  ;;  %v4977_v27 = vld [vmem:[#allocation11 + $0x78] sm:$0xff]  ;;  %v4990_v26 = vld [vmem:[#allocation11 + $0xe0] sm:$0xff] }
 0x23a   :  { %2741 = vmatpush.bf16.msrb.mxu3 %v4455_v37  ;;  %2773 = vmatpush.bf16.msra.mxu1 %v4139_v38  ;;  %v4973_v38 = vld [vmem:[#allocation11 + $0x58] sm:$0xff] }
 0x23b   :  { %2783 = vmatpush.bf16.msra.mxu2 %v4331_v39  ;;  %3091 = vmatpush.bf16.msrb.mxu0 %v4966_v22  ;;  %v4985_v39 = vld [vmem:[#allocation11 + $0xb8] sm:$0xff] }
 0x23d   :  { %2690 = vmatmul.bf16.vlgmr.msra.gmra.mxu3 %v5411_v25  ;;  %2774 = vmatmul.bf16.vlgmr.msra.gmra.mxu1 %v5399_v50  ;;  %v4267_v50 = vor.u32 %v4899_v62, %v4264_v63 }
 0x23e   :  { %2742 = vmatpush.bf16.msrb.mxu3 %v4439_v44  ;;  %3102 = vmatpush.bf16.msrb.mxu1 %v4977_v27 }
 0x23f   :  { %2784 = vmatpush.bf16.msra.mxu2 %v4315_v45  ;;  %3092 = vmatpush.bf16.msrb.mxu0 %v4965_v0  ;;  %v4971_v45 = vld [vmem:[#allocation11 + $0x48] sm:$0xff] }
 0x242   :  { %2743 = vmatpush.bf16.msrb.mxu3 %v4423_v51  ;;  %3103 = vmatpush.bf16.msrb.mxu1 %v4976_v29  ;;  %v4970_v51 = vld [vmem:[#allocation11 + $0x40] sm:$0xff] }
 0x243   :  { %2785 = vmatpush.bf16.msra.mxu2 %v4299_v54  ;;  %3093 = vmatpush.bf16.msrb.mxu0 %v4964_v28  ;;  %v4982_v54 = vld [vmem:[#allocation11 + $0xa0] sm:$0xff] }
 0x246   :  { %2744 = vmatpush.bf16.msrb.mxu3 %v4407_v59  ;;  %3104 = vmatpush.bf16.msrb.mxu1 %v4975_v31 }
 0x247   :  { %2786 = vmatpush.bf16.msra.mxu2 %v4283_v60  ;;  %3094 = vmatpush.bf16.msrb.mxu0 %v4963_v30  ;;  %v1938_v30 = vperm.slane %v5424_v5, 2 }
 0x24a   :  { %2745 = vmatpush.bf16.msrb.mxu3 %v4391_v32  ;;  %3105 = vmatpush.bf16.msrb.mxu1 %v4974_v35 }
 0x24b   :  { %2787 = vmatpush.bf16.msra.mxu2 %v4267_v50 }
 0x24d   :  { %2746 = vmatmul.bf16.vlgmr.msrb.gmra.mxu3 %v5411_v25 }
 0x24e   :  { %2794 = vmatpush.bf16.msra.mxu3 %v4507_v2  ;;  %2788 = vmatmul.bf16.vlgmr.msra.gmra.mxu2 %v5403_v43  ;;  %v4392_v43 = vld [vmem:[#allocation10 + $0x318] sm:$0xf0] }
 0x24f   :  { %v4395_v21 = vor.u32 %v4931_v20, %v4392_v43  ;;  %3106 = vmatpush.bf16.msrb.mxu1 %v4973_v38  ;;  %3116 = vmatpush.bf16.msrb.mxu2 %v4985_v39  ;;  %v4991_v20 = vld [vmem:[#allocation11 + $0xe8] sm:$0xff] }
 0x252   :  { %2795 = vmatpush.bf16.msra.mxu3 %v4491_v6  ;;  %v1937_v6 = vperm.slane %v5424_v5, 1 }
 0x253   :  { %3107 = vmatpush.bf16.msrb.mxu1 %v4972_v41  ;;  %3117 = vmatpush.bf16.msrb.mxu2 %v4984_v42  ;;  %v4988_v42 = vld [vmem:[#allocation11 + $0xd0] sm:$0xff] }
 0x256   :  { %2796 = vmatpush.bf16.msra.mxu3 %v4475_v9 }
 0x257   :  { %3108 = vmatpush.bf16.msrb.mxu1 %v4971_v45  ;;  %3118 = vmatpush.bf16.msrb.mxu2 %v4983_v46 }
 0x25a   :  { %2797 = vmatpush.bf16.msra.mxu3 %v4459_v14  ;;  %v4993_v14 = vld [vmem:[#allocation11 + $0xf8] sm:$0xff] }
 0x25b   :  { %3109 = vmatpush.bf16.msrb.mxu1 %v4970_v51  ;;  %3119 = vmatpush.bf16.msrb.mxu2 %v4982_v54  ;;  %v4987_v51 = vld [vmem:[#allocation11 + $0xc8] sm:$0xff] }
 0x25e   :  { %2798 = vmatpush.bf16.msra.mxu3 %v4443_v3 }
 0x25f   :  { %3120 = vmatpush.bf16.msrb.mxu2 %v4981_v58  ;;  %v4986_v58 = vld [vmem:[#allocation11 + $0xc0] sm:$0xff] }
 0x262   :  { %2799 = vmatpush.bf16.msra.mxu3 %v4427_v33 }
 0x263   :  { %3121 = vmatpush.bf16.msrb.mxu2 %v4980_v1 }
 0x266   :  { %2800 = vmatpush.bf16.msra.mxu3 %v4411_v19 }
 0x267   :  { %3122 = vmatpush.bf16.msrb.mxu2 %v4979_v53 }
 0x26a   :  { %2801 = vmatpush.bf16.msra.mxu3 %v4395_v21  ;;  %v2593_v36 = vpop.f32.mrf.mxu0 }
 0x26b   :  { %v2594_v55 = vadd.f32 %v2593_v36, %v1936_v24  ;;  %3123 = vmatpush.bf16.msrb.mxu2 %v4978_v13  ;;  %v4989_v36 = vld [vmem:[#allocation11 + $0xd8] sm:$0xff] }
 0x26d   :  { %2802 = vmatmul.bf16.vlgmr.msra.gmra.mxu3 %v5411_v25  ;;  %v4962_v25 = vld [vmem:[#allocation11] sm:$0xff] }
 0x26e   :  { %3095 = vmatpush.bf16.msrb.mxu0 %v4962_v25  ;;  %3130 = vmatpush.bf16.msrb.mxu3 %v4993_v14 }
 0x272   :  { %v2595_v44 = vpop.f32.mrf.mxu0  ;;  %3131 = vmatpush.bf16.msrb.mxu3 %v4992_v18  ;;  %v5010_v18 = vld [vmem:[%s5446_s10] ss:$0 sm:$0xff]  ;;  %s5209_s10 = smov [#allocation13]  }
 0x273   :  { %v2596_v60 = vadd.f32 %v2595_v44, %v1936_v24  ;;  %s3188_s13 = sshll.u32 %s5209_s10, 4  ;;  %s3189_s13 = int_to_ptr.vmem [resolvable:$true] %s3188_s13 }
 0x276   :  { %3132 = vmatpush.bf16.msrb.mxu3 %v4991_v20 }
 0x27a   :  { %v2607_v37 = vpop.f32.mrf.mxu1  ;;  %v2649_v59 = vpop.f32.mrf.mxu0  ;;  %3133 = vmatpush.bf16.msrb.mxu3 %v4990_v26 }
 0x27b   :  { %v2608_v57 = vadd.f32 %v2607_v37, %v2594_v55  ;;  %v2650_v15 = vadd.f32 %v2649_v59, %v1937_v6 }
 0x27e   :  { %3134 = vmatpush.bf16.msrb.mxu3 %v4989_v36 }
 0x282   :  { %v2609_v48 = vpop.f32.mrf.mxu1  ;;  %v2651_v8 = vpop.f32.mrf.mxu0  ;;  %3135 = vmatpush.bf16.msrb.mxu3 %v4988_v42 }
 0x283   :  { %v2610_v62 = vadd.f32 %v2609_v48, %v2596_v60  ;;  %v2652_v10 = vadd.f32 %v2651_v8, %v1937_v6 }
 0x286   :  { %3136 = vmatpush.bf16.msrb.mxu3 %v4987_v51 }
 0x28a   :  { %v2663_v61 = vpop.f32.mrf.mxu1  ;;  %3137 = vmatpush.bf16.msrb.mxu3 %v4986_v58 }
 0x28b   :  { %v2664_v33 = vadd.f32 %v2663_v61, %v2650_v15 }
 0x28c   :  { %v2705_v23 = vpop.f32.mrf.mxu0 }
 0x28d   :  { %v2706_v37 = vadd.f32 %v2705_v23, %v1938_v30 }
 0x290   :  { %v2621_v40 = vpop.f32.mrf.mxu2 }
 0x291   :  { %v2622_v34 = vadd.f32 %v2621_v40, %v2608_v57 }
 0x292   :  { %v2665_v56 = vpop.f32.mrf.mxu1 }
 0x293   :  { %v2666_v43 = vadd.f32 %v2665_v56, %v2652_v10 }
 0x294   :  { %v2707_v39 = vpop.f32.mrf.mxu0 }
 0x295   :  { %v2708_v45 = vadd.f32 %v2707_v39, %v1938_v30 }
 0x298   :  { %v2623_v49 = vpop.f32.mrf.mxu2 }
 0x299   :  { %v2624_v32 = vadd.f32 %v2623_v49, %v2610_v62 }
 0x29a   :  { %v2719_v22 = vpop.f32.mrf.mxu1 }
 0x29b   :  { %v2720_v41 = vadd.f32 %v2719_v22, %v2706_v37 }
 0x2a0   :  { %v2677_v47 = vpop.f32.mrf.mxu2 }
 0x2a1   :  { %v2678_v19 = vadd.f32 %v2677_v47, %v2664_v33  ;;  %v1939_v47 = vperm.slane %v5424_v5, 3 }
 0x2a2   :  { %v2721_v44 = vpop.f32.mrf.mxu1 }
 0x2a3   :  { %v2722_v24 = vadd.f32 %v2721_v44, %v2708_v45 }
 0x2a8   :  { %v2679_v16 = vpop.f32.mrf.mxu2 }
 0x2a9   :  { %v2680_v4 = vadd.f32 %v2679_v16, %v2666_v43 }
 0x2aa   :  { %v2761_v62 = vpop.f32.mrf.mxu0 }
 0x2b0   :  { %v2635_v12 = vpop.f32.mrf.mxu3 }
 0x2b1   :  { %v2636_v63 = vadd.f32 %v2635_v12, %v2622_v34 }
 0x2b3   :  { %v2808_v2 = vmul.f32 0.2, %v2636_v63  ;;  %v2733_v29 = vpop.f32.mrf.mxu2 }
 0x2b4   :  { %v2734_v46 = vadd.f32 %v2733_v29, %v2720_v41 }
 0x2b5   :  { %v2816_v9 = vmax.f32 %v2636_v63, %v2808_v2 }
 0x2b8   :  { %v2637_v50 = vpop.f32.mrf.mxu3 }
 0x2b9   :  { %v2638_v52 = vadd.f32 %v2637_v50, %v2624_v32  ;;  %v2762_v32 = vadd.f32 %v2761_v62, %v1939_v47  ;;  %v2763_v50 = vpop.f32.mrf.mxu0 }
 0x2ba   :  { %v2775_v63 = vpop.f32.mrf.mxu1  ;;  %v2764_v6 = vadd.f32 %v2763_v50, %v1939_v47 }
 0x2bb   :  { %v2812_v7 = vmul.f32 0.2, %v2638_v52  ;;  %v2735_v48 = vpop.f32.mrf.mxu2 }
 0x2bc   :  { %v2736_v54 = vadd.f32 %v2735_v48, %v2722_v24 }
 0x2bd   :  { %v2820_v11 = vmax.f32 %v2638_v52, %v2812_v7  ;;  %v2776_v52 = vadd.f32 %v2775_v63, %v2762_v32 }
 0x2bf   :  { %v2824_v3 = vpack.c.bf16 %v2820_v11, %v2816_v9 }
 0x2c0   :  { %v2691_v17 = vpop.f32.mrf.mxu3 }
 0x2c1   :  { %3096 = vmatmul.bf16.vlgmr.msrb.gmra.mxu0 %v2824_v3  ;;  %v2692_v21 = vadd.f32 %v2691_v17, %v2678_v19 }
 0x2c2   :  { %v2777_v53 = vpop.f32.mrf.mxu1 }
 0x2c3   :  { %v2809_v27 = vmul.f32 0.2, %v2692_v21  ;;  %v2778_v9 = vadd.f32 %v2777_v53, %v2764_v6 }
 0x2c5   :  { %v2817_v25 = vmax.f32 %v2692_v21, %v2809_v27 }
 0x2c8   :  { %v2693_v0 = vpop.f32.mrf.mxu3 }
 0x2c9   :  { %v2694_v28 = vadd.f32 %v2693_v0, %v2680_v4 }
 0x2cb   :  { %v2813_v31 = vmul.f32 0.2, %v2694_v28 }
 0x2cd   :  { %v2821_v35 = vmax.f32 %v2694_v28, %v2813_v31 }
 0x2cf   :  { %v2825_v38 = vpack.c.bf16 %v2821_v35, %v2817_v25 }
 0x2d0   :  { %v2747_v40 = vpop.f32.mrf.mxu3 }
 0x2d1   :  { %3110 = vmatmul.bf16.vlgmr.msrb.gmra.mxu1 %v2825_v38  ;;  %v2748_v49 = vadd.f32 %v2747_v40, %v2734_v46  ;;  %v2789_v1 = vpop.f32.mrf.mxu2 }
 0x2d2   :  { %v2790_v7 = vadd.f32 %v2789_v1, %v2776_v52 }
 0x2d3   :  { %v2810_v12 = vmul.f32 0.2, %v2748_v49 }
 0x2d5   :  { %v2818_v60 = vmax.f32 %v2748_v49, %v2810_v12 }
 0x2d8   :  { %v2749_v55 = vpop.f32.mrf.mxu3 }
 0x2d9   :  { %v2750_v57 = vadd.f32 %v2749_v55, %v2736_v54  ;;  %v2791_v8 = vpop.f32.mrf.mxu2 }
 0x2da   :  { %v2792_v13 = vadd.f32 %v2791_v8, %v2778_v9 }
 0x2db   :  { %v2814_v59 = vmul.f32 0.2, %v2750_v57 }
 0x2dd   :  { %v2822_v34 = vmax.f32 %v2750_v57, %v2814_v59 }
 0x2df   :  { %v2826_v61 = vpack.c.bf16 %v2822_v34, %v2818_v60 }
 0x2e1   :  { %3124 = vmatmul.bf16.vlgmr.msrb.gmra.mxu2 %v2826_v61 }
 0x2f0   :  { %v2803_v2 = vpop.f32.mrf.mxu3 }
 0x2f1   :  { %v2804_v11 = vadd.f32 %v2803_v2, %v2790_v7 }
 0x2f3   :  { %v2811_v56 = vmul.f32 0.2, %v2804_v11 }
 0x2f5   :  { %v2819_v16 = vmax.f32 %v2804_v11, %v2811_v56 }
 0x2f8   :  { %v2805_v14 = vpop.f32.mrf.mxu3 }
 0x2f9   :  { %v2806_v15 = vadd.f32 %v2805_v14, %v2792_v13 }
 0x2fb   :  { %v2815_v3 = vmul.f32 0.2, %v2806_v15 }
 0x2fd   :  { %v2823_v17 = vmax.f32 %v2806_v15, %v2815_v3 }
 0x2ff   :  { %v2827_v33 = vpack.c.bf16 %v2823_v17, %v2819_v16 }
 0x301   :  { %3138 = vmatmul.bf16.vlgmr.msrb.gmra.mxu3 %v2827_v33 }
 0x33e   :  { %v3097_v5 = vpop.f32.mrf.mxu0 }
 0x33f   :  { %v3098_v20 = vadd.f32 %v5010_v18, %v3097_v5 }
 0x346   :  { %v3099_v23 = vpop.f32.mrf.mxu0 }
 0x347   :  { %v3100_v0 = vadd.f32 %v5010_v18, %v3099_v23 }
 0x34e   :  { %v3111_v10 = vpop.f32.mrf.mxu1 }
 0x34f   :  { %v3112_v43 = vadd.f32 %v3111_v10, %v3098_v20 }
 0x356   :  { %v3113_v22 = vpop.f32.mrf.mxu1 }
 0x357   :  { %v3114_v29 = vadd.f32 %v3113_v22, %v3100_v0 }
 0x364   :  { %v3125_v19 = vpop.f32.mrf.mxu2 }
 0x365   :  { %v3126_v21 = vadd.f32 %v3125_v19, %v3112_v43 }
 0x36c   :  { %v3127_v28 = vpop.f32.mrf.mxu2 }
 0x36d   :  { %v3128_v30 = vadd.f32 %v3127_v28, %v3114_v29 }
 0x384   :  { %v3139_v4 = vpop.f32.mrf.mxu3 }
 0x385   :  { %v3140_v26 = vadd.f32 %v3139_v4, %v3126_v21 }
 0x387   :  { %v4636_v27 = vmul.f32 -1.442695, %v3140_v26 }
 0x389   :  { %5011 = vpow2.f32 %v4636_v27 }
 0x38c   :  { %v3141_v31 = vpop.f32.mrf.mxu3 }
 0x38d   :  { %v3142_v25 = vadd.f32 %v3141_v31, %v3128_v30 }
 0x38f   :  { %v5012_v35 = vpop.eup %5011  ;;  %v4637_v36 = vmul.f32 -1.442695, %v3142_v25 }
 0x390   :  { %v3150_v37 = vadd.f32 1.0, %v5012_v35 }
 0x391   :  { %5013 = vpow2.f32 %v4637_v36 }
 0x392   :  { %5015 = vrcp.f32 %v3150_v37  ;;  %v3163_v44 = vand.u32 2147483648, %v3150_v37  ;;  %v3161_v46 = vand.u32 2147483647, %v3150_v37  ;;  %vm3157_vm5 = vweird.f32 %v3150_v37 }
 0x394   :  { %v3164_v49 = vor.u32 1.1754944e-38, %v3163_v44  ;;  %vm3162_vm7 = vcmp.eq.f32.partialorder %v3161_v46, 8.507059e+37 }
 0x397   :  { %v5014_v38 = vpop.eup %5013 }
 0x398   :  { %v5016_v39 = vpop.eup %5015  ;;  %v3151_v40 = vadd.f32 1.0, %v5014_v38 }
 0x399   :  { %v3153_v41 = vmul.f32 %v5016_v39, %v3150_v37  ;;  %vm3158_vm4 = vweird.f32 %v5016_v39 }
 0x39a   :  { %5017 = vrcp.f32 %v3151_v40  ;;  %vm3159_vm6 = vmor %vm3157_vm5, %vm3158_vm4  ;;  %v3178_v57 = vand.u32 2147483648, %v3151_v40  ;;  %v3176_v59 = vand.u32 2147483647, %v3151_v40  ;;  %vm3172_vm9 = vweird.f32 %v3151_v40 }
 0x39b   :  { %v3154_v42 = vsub.f32 1.0, %v3153_v41 }
 0x39c   :  { %v3179_v34 = vor.u32 1.1754944e-38, %v3178_v57  ;;  %vm3177_vm11 = vcmp.eq.f32.partialorder %v3176_v59, 8.507059e+37 }
 0x39d   :  { %v3155_v45 = vmul.f32 %v5016_v39, %v3154_v42 }
 0x39f   :  { %v3156_v48 = vadd.f32 %v5016_v39, %v3155_v45 }
 0x3a0   :  { %v5018_v24 = vpop.eup %5017 }
 0x3a1   :  { %v3168_v51 = vmul.f32 %v5018_v24, %v3151_v40  ;;  %v3160_v54 = vsel %vm3159_vm6, %v5016_v39, %v3156_v48  ;;  %vm3173_vm8 = vweird.f32 %v5018_v24 }
 0x3a2   :  { %v3165_v55 = vsel %vm3162_vm7, %v3164_v49, %v3160_v54  ;;  %vm3174_vm10 = vmor %vm3172_vm9, %vm3173_vm8 }
 0x3a3   :  { %v3169_v12 = vsub.f32 1.0, %v3168_v51  ;;  %3182 = vst [vmem:[#allocation13] sm:$0xff] %v3165_v55 }
 0x3a5   :  { %v3170_v58 = vmul.f32 %v5018_v24, %v3169_v12 }
 0x3a7   :  { %v3171_v60 = vadd.f32 %v5018_v24, %v3170_v58 }
 0x3a9   :  { %v3175_v61 = vsel %vm3174_vm10, %v5018_v24, %v3171_v60 }
 0x3aa   :  { %v3180_v62 = vsel %vm3177_vm11, %v3179_v34, %v3175_v61 }
 0x3ab   :  { %3183 = vst [vmem:[#allocation13 + $0x8] sm:$0xff] %v3180_v62 }
 0x3ac   :  { %3196 = dma.vmem_to_hbm [thread:$0]  %s3189_s13, 256, %s3191_s16, [#allocation4], %s5210_s0, %s5210_s0, %s5211_s17  }
 0x3ad   :  { %5195 = dma.done.wait [#allocation4], 256  }
 0x3ae   :  { %5196 = vsyncadd [#allocation4], 4294967040 }
 0x3af   :  { %3201 = vsyncpa [#allocation3], 1 }
 0x3b0   :  { %3202 = vsyncpa [#allocation6], 1 }
 0x3b1   :  { %3203 = vsyncpa [#allocation9], 1 }
 0x3b2   :  { %3204 = vsyncpa [#allocation12], 1 }
 0x3b3   :  { %3205 = vsyncpa [#allocation4], 1 }

// kernel: tpu_custom_call.1
= control target key start
LH: loop header
LB: loop body
LE: loop exit
PB: predicated region body
PF: predicated region fallthrough
CT: control target
= control target key end

     0   :  { %16 = vsyncpa [#allocation3], 0  ;;  %s5436_s0 = inlined_call_operand.hbm [shape: f32[16,256], index: 0, kind: input, shape index: {}]   ;;  %s5437_s1 = inlined_call_operand.vmem [shape: s32[16,1], index: 1, kind: input, shape index: {}]   ;;  %s5438_s2 = inlined_call_operand.hbm [shape: bf16[256,512], index: 2, kind: input, shape index: {}]   ;;  %s5439_s3 = inlined_call_operand.hbm [shape: bf16[10,512], index: 3, kind: input, shape index: {}]   ;;  %s5440_s4 = inlined_call_operand.vmem [shape: f32[1,512], index: 4, kind: input, shape index: {}]   ;;  %s5441_s5 = inlined_call_operand.hbm [shape: bf16[512,512], index: 5, kind: input, shape index: {}]   ;;  %s5442_s6 = inlined_call_operand.vmem [shape: f32[1,512], index: 6, kind: input, shape index: {}]   ;;  %s5443_s7 = inlined_call_operand.hbm [shape: bf16[512,512], index: 7, kind: input, shape index: {}]   ;;  %s5444_s8 = inlined_call_operand.vmem [shape: f32[1,512], index: 8, kind: input, shape index: {}]   ;;  %s5445_s9 = inlined_call_operand.hbm [shape: bf16[512,128], index: 9, kind: input, shape index: {}]   ;;  %s5446_s10 = inlined_call_operand.vmem [shape: f32[1,128], index: 10, kind: input, shape index: {}]   ;;  %s5447_s11 = inlined_call_operand.hbm [shape: f32[16,128], index: 11, kind: output, shape index: {}]  }
   0x1   :  { %17 = vsyncpa [#allocation6], 0 }
   0x2   :  { %18 = vsyncpa [#allocation9], 0 }
   0x3   :  { %19 = vsyncpa [#allocation12], 0 }
   0x4   :  { %20 = vsyncpa [#allocation4], 0  ;;  %s40_s19 = sshll.u32 %s5438_s2, 4  ;;  %s5197_s20 = smov [#allocation5]   ;;  %s41_s19 = int_to_ptr.hbm [resolvable:$true] %s40_s19 }
   0x5   :  { %s42_s21 = sshll.u32 %s5197_s20, 4  ;;  %s68_s24 = sshll.u32 %s5441_s5, 4  ;;  %s43_s21 = int_to_ptr.vmem [resolvable:$true] %s42_s21  ;;  %s69_s24 = int_to_ptr.hbm [resolvable:$true] %s68_s24 }
   0x6   :  { %s5198_s25 = smov 256   ;;  %s5199_s26 = smov 16  }
   0x7   :  { %48 = dma.hbm_to_vmem [thread:$0]  %s41_s19, 8192, %s43_s21, [#allocation6], %s5198_s25, %s5198_s25, %s5199_s26  }
   0x8   :  { %s5200_s27 = smov [#allocation8]   ;;  %s25_s2 = sshll.u32 %s5436_s0, 4  ;;  %s26_s2 = int_to_ptr.hbm [resolvable:$true] %s25_s2 }
   0x9   :  { %s70_s28 = sshll.u32 %s5200_s27, 4  ;;  %s53_s13 = sshll.u32 %s5439_s3, 4  ;;  %s71_s28 = int_to_ptr.vmem [resolvable:$true] %s70_s28  ;;  %s54_s13 = int_to_ptr.hbm [resolvable:$true] %s53_s13 }
   0xa   :  { %76 = dma.hbm_to_vmem [thread:$0]  %s69_s24, 16384, %s71_s28, [#allocation9], %s5198_s25, %s5198_s25, %s5199_s26  }
   0xb   :  { %s5201_s14 = smov [#allocation2]   ;;  %s5202_s16 = smov [#allocation7]  }
   0xc   :  { %s27_s15 = sshll.u32 %s5201_s14, 4  ;;  %s55_s0 = sshll.u32 %s5202_s16, 4  ;;  %s28_s15 = int_to_ptr.vmem [resolvable:$true] %s27_s15  ;;  %s56_s0 = int_to_ptr.vmem [resolvable:$true] %s55_s0 }
   0xd   :  { %33 = dma.hbm_to_vmem [thread:$0]  %s26_s2, 512, %s28_s15, [#allocation3], %s5198_s25, %s5198_s25, %s5199_s26  }
   0xe   :  { %s83_s19 = sshll.u32 %s5443_s7, 4  ;;  %s98_s21 = sshll.u32 %s5445_s9, 4  ;;  %s84_s19 = int_to_ptr.hbm [resolvable:$true] %s83_s19  ;;  %s99_s21 = int_to_ptr.hbm [resolvable:$true] %s98_s21 }
   0xf   :  { %61 = dma.hbm_to_vmem [thread:$0]  %s54_s13, 512, %s56_s0, [#allocation6], %s5198_s25, %s5198_s25, %s5199_s26  }
  0x10   :  { %s5203_s22 = smov [#allocation10]   ;;  %s5204_s24 = smov [#allocation11]  }
  0x11   :  { %s85_s23 = sshll.u32 %s5203_s22, 4  ;;  %s100_s7 = sshll.u32 %s5204_s24, 4  ;;  %s86_s23 = int_to_ptr.vmem [resolvable:$true] %s85_s23  ;;  %s101_s7 = int_to_ptr.vmem [resolvable:$true] %s100_s7 }
  0x12   :  { %91 = dma.hbm_to_vmem [thread:$0]  %s84_s19, 16384, %s86_s23, [#allocation9], %s5198_s25, %s5198_s25, %s5199_s26  }
  0x13   :  { %s5205_s27 = smov 64   ;;  %s5206_s28 = smov 4  }
  0x14   :  { %106 = dma.hbm_to_vmem [thread:$0]  %s99_s21, 4096, %s101_s7, [#allocation12], %s5205_s27, %s5205_s27, %s5206_s28  }
  0x15   :  { %5187 = dma.done.wait [#allocation3], 512  }
  0x16   :  { %5188 = vsyncadd [#allocation3], 4294966784 }
  0x17   :  { %5189 = dma.done.wait [#allocation6], 8704  }
  0x18   :  { %5190 = vsyncadd [#allocation6], 4294958592 }
  0x19   :  { %5191 = dma.done.wait [#allocation9], 32768  }
  0x1a   :  { %5192 = vsyncadd [#allocation9], 4294934528 }
  0x1b   :  { %5193 = dma.done.wait [#allocation12], 4096  }
  0x1c   :  { %5194 = vsyncadd [#allocation12], 4294963200  ;;  %v5207_v0 = vmov 0   ;;  %v140_v1 = vld [vmem:[%s5437_s1] sm:$0xff]  ;;  %vm245_vm0 = vcmask 1044480   ;;  %v141_v25 = vld [vmem:[%s5437_s1 + $0x8] sm:$0xff] }
  0x1d   :  { %5009 = vset.pattern.permute.xlu0 %v5207_v0  ;;  %v3210_v2 = vld [vmem:[#allocation7] sm:$0xf]  ;;  %v4704_v3 = vld [vmem:[#allocation7 + $0xc] sm:$0x10]  ;;  %v4702_v4 = vld [vmem:[#allocation7 + $0x4] sm:$0xf] }
  0x1e   :  { %145 = vperm.xlu0 %5009, %v140_v1   ;;  %v3212_v5 = vld [vmem:[#allocation7 + $0x10] sm:$0x10]  ;;  %v3211_v6 = vor.u32 %v4704_v3, %v3210_v2  ;;  %v3218_v8 = vld [vmem:[#allocation7 + $0x8] sm:$0xf]  ;;  %v4705_v9 = vld [vmem:[#allocation7 + $0x14] sm:$0x10] }
  0x1f   :  { %v3215_v7 = vor.u32 %v4702_v4, %v3212_v5  ;;  %v4703_v10 = vld [vmem:[#allocation7 + $0xc] sm:$0xf]  ;;  %v3219_v11 = vor.u32 %v4705_v9, %v3218_v8  ;;  %v3220_v12 = vld [vmem:[#allocation7 + $0x18] sm:$0x10]  ;;  %v3342_v13 = vld [vmem:[#allocation5 + $0xe0] sm:$0xf] }
  0x20   :  { %v4668_v14 = vld [vmem:[#allocation5 + $0xec] sm:$0xf0]  ;;  %v247_v15 = vsel %vm245_vm0, %v3211_v6, 0  ;;  %v3223_v17 = vor.u32 %v4703_v10, %v3220_v12  ;;  %v3470_v19 = vld [vmem:[#allocation5 + $0x1e0] sm:$0xf]  ;;  %vm241_vm3 = vcmask 80896  }
  0x21   :  { %v250_v16 = vsel %vm245_vm0, %v3215_v7, 0  ;;  %v3343_v18 = vor.u32 %v4668_v14, %v3342_v13  ;;  %v4700_v20 = vld [vmem:[#allocation5 + $0x1ec] sm:$0xf0]  ;;  %265 = vmatpush.bf16.msra.mxu0 %v247_v15  ;;  %v253_v21 = vsel %vm245_vm0, %v3219_v11, 0  ;;  %v4666_v23 = vld [vmem:[#allocation5 + $0xe4] sm:$0xf] }
  0x22   :  { %279 = vmatpush.bf16.msra.mxu1 %v250_v16  ;;  %v3471_v22 = vor.u32 %v4700_v20, %v3470_v19  ;;  %v3344_v24 = vld [vmem:[#allocation5 + $0xf0] sm:$0xf0]  ;;  %293 = vmatpush.bf16.msra.mxu2 %v253_v21  ;;  %v256_v26 = vsel %vm245_vm0, %v3223_v17, 0  ;;  %v4698_v28 = vld [vmem:[#allocation5 + $0x1e4] sm:$0xf]  ;;  %s3190_s16 = sshll.u32 %s5447_s11, 4  ;;  %s3191_s16 = int_to_ptr.hbm [resolvable:$true] %s3190_s16 }
  0x23   :  { %v3347_v27 = vor.u32 %v4666_v23, %v3344_v24  ;;  %v3472_v29 = vld [vmem:[#allocation5 + $0x1f0] sm:$0xf0]  ;;  %307 = vmatpush.bf16.msra.mxu3 %v256_v26  ;;  %v3326_v31 = vld [vmem:[#allocation5 + $0xc0] sm:$0xf]  ;;  %v4664_v32 = vld [vmem:[#allocation5 + $0xcc] sm:$0xf0] }
  0x24   :  { %v3475_v30 = vor.u32 %v4698_v28, %v3472_v29  ;;  %v3454_v33 = vld [vmem:[#allocation5 + $0x1c0] sm:$0xf]  ;;  %v3327_v34 = vor.u32 %v4664_v32, %v3326_v31  ;;  %v4696_v35 = vld [vmem:[#allocation5 + $0x1cc] sm:$0xf0]  ;;  %v4662_v36 = vld [vmem:[#allocation5 + $0xc4] sm:$0xf] }
  0x25   :  { %634 = vmatpush.bf16.msrb.mxu0 %v3343_v18  ;;  %v3328_v37 = vld [vmem:[#allocation5 + $0xd0] sm:$0xf0]  ;;  %v3455_v38 = vor.u32 %v4696_v35, %v3454_v33  ;;  %v4694_v40 = vld [vmem:[#allocation5 + $0x1c4] sm:$0xf]  ;;  %v3310_v42 = vld [vmem:[#allocation5 + $0xa0] sm:$0xf] }
  0x26   :  { %648 = vmatpush.bf16.msrb.mxu1 %v3471_v22  ;;  %662 = vmatpush.bf16.msrb.mxu2 %v3347_v27  ;;  %v3331_v39 = vor.u32 %v4662_v36, %v3328_v37  ;;  %v3456_v41 = vld [vmem:[#allocation5 + $0x1d0] sm:$0xf0]  ;;  %v4660_v44 = vld [vmem:[#allocation5 + $0xac] sm:$0xf0]  ;;  %v3438_v45 = vld [vmem:[#allocation5 + $0x1a0] sm:$0xf] }
  0x27   :  { %148 = vperm.xlu0 %5009, %v141_v25   ;;  %676 = vmatpush.bf16.msrb.mxu3 %v3475_v30  ;;  %v3459_v43 = vor.u32 %v4694_v40, %v3456_v41  ;;  %v4692_v46 = vld [vmem:[#allocation5 + $0x1ac] sm:$0xf0]  ;;  %v3311_v47 = vor.u32 %v4660_v44, %v3310_v42  ;;  %v4658_v49 = vld [vmem:[#allocation5 + $0xa4] sm:$0xf]  ;;  %v3312_v50 = vld [vmem:[#allocation5 + $0xb0] sm:$0xf0] }
  0x28   :  { %v3439_v48 = vor.u32 %v4692_v46, %v3438_v45  ;;  %v4690_v51 = vld [vmem:[#allocation5 + $0x1a4] sm:$0xf]  ;;  %v3315_v52 = vor.u32 %v4658_v49, %v3312_v50  ;;  %v3440_v53 = vld [vmem:[#allocation5 + $0x1b0] sm:$0xf0]  ;;  %v3294_v54 = vld [vmem:[#allocation5 + $0x80] sm:$0xf] }
  0x29   :  { %635 = vmatpush.bf16.msrb.mxu0 %v3327_v34  ;;  %v4656_v55 = vld [vmem:[#allocation5 + $0x8c] sm:$0xf0]  ;;  %v3443_v56 = vor.u32 %v4690_v51, %v3440_v53  ;;  %v3422_v57 = vld [vmem:[#allocation5 + $0x180] sm:$0xf]  ;;  %v4654_v59 = vld [vmem:[#allocation5 + $0x84] sm:$0xf]  ;;  %v142_v51 = vlaneseq }
  0x2a   :  { %649 = vmatpush.bf16.msrb.mxu1 %v3455_v38  ;;  %663 = vmatpush.bf16.msrb.mxu2 %v3331_v39  ;;  %v4688_v58 = vld [vmem:[#allocation5 + $0x18c] sm:$0xf0]  ;;  %v3295_v60 = vor.u32 %v4656_v55, %v3294_v54  ;;  %v3296_v61 = vld [vmem:[#allocation5 + $0x90] sm:$0xf0]  ;;  %v4686_v62 = vld [vmem:[#allocation5 + $0x184] sm:$0xf] }
  0x2b   :  { %677 = vmatpush.bf16.msrb.mxu3 %v3459_v43  ;;  %v3424_v63 = vld [vmem:[#allocation5 + $0x190] sm:$0xf0]  ;;  %v3423_v0 = vor.u32 %v4688_v58, %v3422_v57  ;;  %v3299_v1 = vor.u32 %v4654_v59, %v3296_v61  ;;  %v3278_v3 = vld [vmem:[#allocation5 + $0x60] sm:$0xf]  ;;  %v4652_v4 = vld [vmem:[#allocation5 + $0x6c] sm:$0xf0] }
  0x2c   :  { %v3427_v2 = vor.u32 %v4686_v62, %v3424_v63  ;;  %v3406_v5 = vld [vmem:[#allocation5 + $0x160] sm:$0xf]  ;;  %v3279_v6 = vor.u32 %v4652_v4, %v3278_v3  ;;  %v4684_v7 = vld [vmem:[#allocation5 + $0x16c] sm:$0xf0]  ;;  %v4650_v8 = vld [vmem:[#allocation5 + $0x64] sm:$0xf] }
  0x2d   :  { %636 = vmatpush.bf16.msrb.mxu0 %v3311_v47  ;;  %v3280_v9 = vld [vmem:[#allocation5 + $0x70] sm:$0xf0]  ;;  %v3407_v10 = vor.u32 %v4684_v7, %v3406_v5  ;;  %v4682_v12 = vld [vmem:[#allocation5 + $0x164] sm:$0xf]  ;;  %v3262_v15 = vld [vmem:[#allocation5 + $0x40] sm:$0xf] }
  0x2e   :  { %650 = vmatpush.bf16.msrb.mxu1 %v3439_v48  ;;  %664 = vmatpush.bf16.msrb.mxu2 %v3315_v52  ;;  %v3283_v11 = vor.u32 %v4650_v8, %v3280_v9  ;;  %v3408_v13 = vld [vmem:[#allocation5 + $0x170] sm:$0xf0]  ;;  %v4648_v16 = vld [vmem:[#allocation5 + $0x4c] sm:$0xf0]  ;;  %v3390_v17 = vld [vmem:[#allocation5 + $0x140] sm:$0xf] }
  0x2f   :  { %678 = vmatpush.bf16.msrb.mxu3 %v3443_v56  ;;  %v3411_v14 = vor.u32 %v4682_v12, %v3408_v13  ;;  %v3263_v18 = vor.u32 %v4648_v16, %v3262_v15  ;;  %v4680_v19 = vld [vmem:[#allocation5 + $0x14c] sm:$0xf0]  ;;  %v4646_v20 = vld [vmem:[#allocation5 + $0x44] sm:$0xf]  ;;  %v3264_v21 = vld [vmem:[#allocation5 + $0x50] sm:$0xf0] }
  0x30   :  { %v3391_v22 = vor.u32 %v4680_v19, %v3390_v17  ;;  %v3267_v23 = vor.u32 %v4646_v20, %v3264_v21  ;;  %v4678_v24 = vld [vmem:[#allocation5 + $0x144] sm:$0xf]  ;;  %v3392_v25 = vld [vmem:[#allocation5 + $0x150] sm:$0xf0]  ;;  %v3246_v27 = vld [vmem:[#allocation5 + $0x20] sm:$0xf] }
  0x31   :  { %637 = vmatpush.bf16.msrb.mxu0 %v3295_v60  ;;  %v3395_v26 = vor.u32 %v4678_v24, %v3392_v25  ;;  %v4644_v28 = vld [vmem:[#allocation5 + $0x2c] sm:$0xf0]  ;;  %v3374_v29 = vld [vmem:[#allocation5 + $0x120] sm:$0xf]  ;;  %v4642_v32 = vld [vmem:[#allocation5 + $0x24] sm:$0xf] }
  0x32   :  { %651 = vmatpush.bf16.msrb.mxu1 %v3423_v0  ;;  %665 = vmatpush.bf16.msrb.mxu2 %v3299_v1  ;;  %v3247_v30 = vor.u32 %v4644_v28, %v3246_v27  ;;  %v4676_v31 = vld [vmem:[#allocation5 + $0x12c] sm:$0xf0]  ;;  %v3248_v33 = vld [vmem:[#allocation5 + $0x30] sm:$0xf0]  ;;  %v4674_v36 = vld [vmem:[#allocation5 + $0x124] sm:$0xf] }
  0x33   :  { %679 = vmatpush.bf16.msrb.mxu3 %v3427_v2  ;;  %v3375_v34 = vor.u32 %v4676_v31, %v3374_v29  ;;  %v3251_v35 = vor.u32 %v4642_v32, %v3248_v33  ;;  %v3376_v37 = vld [vmem:[#allocation5 + $0x130] sm:$0xf0]  ;;  %v3230_v39 = vld [vmem:[#allocation5] sm:$0xf]  ;;  %v4640_v40 = vld [vmem:[#allocation5 + $0xc] sm:$0xf0] }
  0x34   :  { %v3379_v38 = vor.u32 %v4674_v36, %v3376_v37  ;;  %v3231_v41 = vor.u32 %v4640_v40, %v3230_v39  ;;  %v3358_v42 = vld [vmem:[#allocation5 + $0x100] sm:$0xf]  ;;  %v4672_v43 = vld [vmem:[#allocation5 + $0x10c] sm:$0xf0]  ;;  %v4638_v44 = vld [vmem:[#allocation5 + $0x4] sm:$0xf] }
  0x35   :  { %638 = vmatpush.bf16.msrb.mxu0 %v3279_v6  ;;  %v3359_v45 = vor.u32 %v4672_v43, %v3358_v42  ;;  %v3232_v46 = vld [vmem:[#allocation5 + $0x10] sm:$0xf0]  ;;  %v4670_v47 = vld [vmem:[#allocation5 + $0x104] sm:$0xf]  ;;  %v143_v53 = vand.u32 127, %v142_v51  ;;  %v5208_v63 = vmov 0.0  }
  0x36   :  { %652 = vmatpush.bf16.msrb.mxu1 %v3407_v10  ;;  %666 = vmatpush.bf16.msrb.mxu2 %v3283_v11  ;;  %v3360_v48 = vld [vmem:[#allocation5 + $0x110] sm:$0xf0]  ;;  %v3235_v49 = vor.u32 %v4638_v44, %v3232_v46  ;;  %v3350_v54 = vld [vmem:[#allocation5 + $0xe8] sm:$0xf]  ;;  %v4669_v55 = vld [vmem:[#allocation5 + $0xf4] sm:$0xf0] }
  0x37   :  { %680 = vmatpush.bf16.msrb.mxu3 %v3411_v14  ;;  %v3363_v50 = vor.u32 %v4670_v47, %v3360_v48  ;;  %v3478_v57 = vld [vmem:[#allocation5 + $0x1e8] sm:$0xf]  ;;  %v4701_v58 = vld [vmem:[#allocation5 + $0x1f4] sm:$0xf0]  ;;  %v4667_v59 = vld [vmem:[#allocation5 + $0xec] sm:$0xf]  ;;  %v3351_v3 = vor.u32 %v4669_v55, %v3350_v54 }
  0x38   :  { %v3352_v60 = vld [vmem:[#allocation5 + $0xf8] sm:$0xf0]  ;;  %v4699_v61 = vld [vmem:[#allocation5 + $0x1ec] sm:$0xf]  ;;  %v3479_v4 = vor.u32 %v4701_v58, %v3478_v57  ;;  %v3334_v5 = vld [vmem:[#allocation5 + $0xc8] sm:$0xf] }
  0x39   :  { %639 = vmatpush.bf16.msrb.mxu0 %v3263_v18  ;;  %v3480_v62 = vld [vmem:[#allocation5 + $0x1f8] sm:$0xf0]  ;;  %v4665_v6 = vld [vmem:[#allocation5 + $0xd4] sm:$0xf0]  ;;  %v3355_v7 = vor.u32 %v4667_v59, %v3352_v60  ;;  %v3462_v9 = vld [vmem:[#allocation5 + $0x1c8] sm:$0xf] }
  0x3a   :  { %653 = vmatpush.bf16.msrb.mxu1 %v3391_v22  ;;  %667 = vmatpush.bf16.msrb.mxu2 %v3267_v23  ;;  %v3483_v8 = vor.u32 %v4699_v61, %v3480_v62  ;;  %v4697_v10 = vld [vmem:[#allocation5 + $0x1d4] sm:$0xf0]  ;;  %v4663_v11 = vld [vmem:[#allocation5 + $0xcc] sm:$0xf]  ;;  %v3336_v12 = vld [vmem:[#allocation5 + $0xd8] sm:$0xf0]  ;;  %v3335_v15 = vor.u32 %v4665_v6, %v3334_v5 }
  0x3b   :  { %681 = vmatpush.bf16.msrb.mxu3 %v3395_v26  ;;  %v4695_v13 = vld [vmem:[#allocation5 + $0x1cc] sm:$0xf]  ;;  %v3464_v14 = vld [vmem:[#allocation5 + $0x1d8] sm:$0xf0]  ;;  %v3463_v16 = vor.u32 %v4697_v10, %v3462_v9  ;;  %v3318_v17 = vld [vmem:[#allocation5 + $0xa8] sm:$0xf]  ;;  %v3339_v19 = vor.u32 %v4663_v11, %v3336_v12 }
  0x3c   :  { %v4661_v18 = vld [vmem:[#allocation5 + $0xb4] sm:$0xf0]  ;;  %v3467_v20 = vor.u32 %v4695_v13, %v3464_v14  ;;  %v3446_v21 = vld [vmem:[#allocation5 + $0x1a8] sm:$0xf]  ;;  %v4659_v23 = vld [vmem:[#allocation5 + $0xac] sm:$0xf] }
  0x3d   :  { %640 = vmatpush.bf16.msrb.mxu0 %v3247_v30  ;;  %v4693_v22 = vld [vmem:[#allocation5 + $0x1b4] sm:$0xf0]  ;;  %v3320_v24 = vld [vmem:[#allocation5 + $0xb8] sm:$0xf0]  ;;  %v4691_v25 = vld [vmem:[#allocation5 + $0x1ac] sm:$0xf]  ;;  %v3319_v27 = vor.u32 %v4661_v18, %v3318_v17 }
  0x3e   :  { %654 = vmatpush.bf16.msrb.mxu1 %v3375_v34  ;;  %668 = vmatpush.bf16.msrb.mxu2 %v3251_v35  ;;  %v3448_v26 = vld [vmem:[#allocation5 + $0x1b8] sm:$0xf0]  ;;  %v3447_v28 = vor.u32 %v4693_v22, %v3446_v21  ;;  %v3302_v29 = vld [vmem:[#allocation5 + $0x88] sm:$0xf]  ;;  %v4657_v30 = vld [vmem:[#allocation5 + $0x94] sm:$0xf0]  ;;  %v3323_v32 = vor.u32 %v4659_v23, %v3320_v24 }
  0x3f   :  { %682 = vmatpush.bf16.msrb.mxu3 %v3379_v38  ;;  %v3430_v31 = vld [vmem:[#allocation5 + $0x188] sm:$0xf]  ;;  %v3451_v33 = vor.u32 %v4691_v25, %v3448_v26  ;;  %v4689_v34 = vld [vmem:[#allocation5 + $0x194] sm:$0xf0]  ;;  %v4655_v35 = vld [vmem:[#allocation5 + $0x8c] sm:$0xf]  ;;  %v3303_v43 = vor.u32 %v4657_v30, %v3302_v29 }
  0x40   :  { %v3304_v36 = vld [vmem:[#allocation5 + $0x98] sm:$0xf0]  ;;  %v4687_v37 = vld [vmem:[#allocation5 + $0x18c] sm:$0xf]  ;;  %v134_v39 = vld [vmem:[#allocation2] sm:$0xff]  ;;  %v3431_v44 = vor.u32 %v4689_v34, %v3430_v31  ;;  %s5210_s0 = smov 128  }
  0x41   :  { %641 = vmatpush.bf16.msrb.mxu0 %v3231_v41  ;;  %v3432_v38 = vld [vmem:[#allocation5 + $0x198] sm:$0xf0]  ;;  %v136_v40 = vld [vmem:[#allocation2 + $0x10] sm:$0xff]  ;;  %v135_v41 = vld [vmem:[#allocation2 + $0x8] sm:$0xff]  ;;  %v3307_v47 = vor.u32 %v4655_v35, %v3304_v36  ;;  %s5211_s17 = smov 8  }
  0x42   :  { %655 = vmatpush.bf16.msrb.mxu1 %v3359_v45  ;;  %669 = vmatpush.bf16.msrb.mxu2 %v3235_v49  ;;  %v137_v42 = vld [vmem:[#allocation2 + $0x18] sm:$0xff]  ;;  %v3286_v45 = vld [vmem:[#allocation5 + $0x68] sm:$0xf]  ;;  %v3435_v48 = vor.u32 %v4687_v37, %v3432_v38  ;;  %v4651_v51 = vld [vmem:[#allocation5 + $0x6c] sm:$0xf] }
  0x43   :  { %683 = vmatpush.bf16.msrb.mxu3 %v3363_v50  ;;  %v4653_v46 = vld [vmem:[#allocation5 + $0x74] sm:$0xf0]  ;;  %v3414_v49 = vld [vmem:[#allocation5 + $0x168] sm:$0xf]  ;;  %v3288_v54 = vld [vmem:[#allocation5 + $0x78] sm:$0xf0] }
  0x44   :  { %v4685_v50 = vld [vmem:[#allocation5 + $0x174] sm:$0xf0]  ;;  %v4683_v55 = vld [vmem:[#allocation5 + $0x16c] sm:$0xf]  ;;  %v3287_v57 = vor.u32 %v4653_v46, %v3286_v45  ;;  %v3270_v59 = vld [vmem:[#allocation5 + $0x48] sm:$0xf]  ;;  %v3291_v61 = vor.u32 %v4651_v51, %v3288_v54 }
  0x45   :  { %v3415_v58 = vor.u32 %v4685_v50, %v3414_v49  ;;  %v4649_v60 = vld [vmem:[#allocation5 + $0x54] sm:$0xf0]  ;;  %v3382_v11 = vld [vmem:[#allocation5 + $0x128] sm:$0xf]  ;;  %v4643_v13 = vld [vmem:[#allocation5 + $0x2c] sm:$0xf] }
  0x46   :  { %v3271_v5 = vor.u32 %v4649_v60, %v3270_v59  ;;  %v4677_v12 = vld [vmem:[#allocation5 + $0x134] sm:$0xf0]  ;;  %v3256_v14 = vld [vmem:[#allocation5 + $0x38] sm:$0xf0]  ;;  %v3366_v21 = vld [vmem:[#allocation5 + $0x108] sm:$0xf] }
  0x47   :  { %v3383_v18 = vor.u32 %v4677_v12, %v3382_v11  ;;  %v3259_v22 = vor.u32 %v4643_v13, %v3256_v14  ;;  %v4673_v24 = vld [vmem:[#allocation5 + $0x114] sm:$0xf0]  ;;  %v4639_v25 = vld [vmem:[#allocation5 + $0xc] sm:$0xf]  ;;  %v3240_v26 = vld [vmem:[#allocation5 + $0x18] sm:$0xf0] }
  0x48   :  { %v3598_v29 = vld [vmem:[#allocation8 + $0xe0] sm:$0xf]  ;;  %v4736_v30 = vld [vmem:[#allocation8 + $0xec] sm:$0xf0]  ;;  %v3367_v34 = vor.u32 %v4673_v24, %v3366_v21  ;;  %v3243_v35 = vor.u32 %v4639_v25, %v3240_v26 }
  0x49   :  { %v3726_v31 = vld [vmem:[#allocation8 + $0x1e0] sm:$0xf]  ;;  %v3599_v37 = vor.u32 %v4736_v30, %v3598_v29  ;;  %v4796_v50 = vld [vmem:[#allocation8 + $0x2cc] sm:$0xf0]  ;;  %v3600_v29 = vld [vmem:[#allocation8 + $0xf0] sm:$0xf0] }
  0x4a   :  { %v3582_v38 = vld [vmem:[#allocation8 + $0xc0] sm:$0xf]  ;;  %v4728_v51 = vld [vmem:[#allocation8 + $0xac] sm:$0xf0] }
  0x4b   :  { %v3838_v49 = vld [vmem:[#allocation8 + $0x2c0] sm:$0xf]  ;;  %v4724_v60 = vld [vmem:[#allocation8 + $0x8c] sm:$0xf0] }
  0x4c   :  { %v3694_v54 = vld [vmem:[#allocation8 + $0x1a0] sm:$0xf]  ;;  %v4712_v11 = vld [vmem:[#allocation8 + $0x2c] sm:$0xf0] }
  0x4d   :  { %v3822_v14 = vld [vmem:[#allocation8 + $0x2a0] sm:$0xf]  ;;  %v4708_v24 = vld [vmem:[#allocation8 + $0xc] sm:$0xf0] }
  0x4e   :  { %v3806_v25 = vld [vmem:[#allocation8 + $0x280] sm:$0xf] }
  0x90   :  { %v146_v52 = vpop.permute.xlu0 %145 }
  0x91   :  { %vm150_vm1 = vcmp.eq.s32.totalorder %v146_v52, %v143_v53  ;;  %v5319_v52 = vpack.c.bf16 %v136_v40, %v134_v39  ;;  %v3854_v40 = vld [vmem:[#allocation8 + $0x2e0] sm:$0xf] }
  0x92   :  { %v3206_v0 = vsel %vm150_vm1, 1.0, %v5208_v63 }
  0x99   :  { %v149_v56 = vpop.permute.xlu0 %148 }
  0x9a   :  { %vm151_vm2 = vcmp.eq.s32.totalorder %v149_v56, %v143_v53  ;;  %v5321_v53 = vpack.c.bf16 %v137_v42, %v135_v41  ;;  %v3416_v56 = vld [vmem:[#allocation5 + $0x178] sm:$0xf0]  ;;  %v4800_v41 = vld [vmem:[#allocation8 + $0x2ec] sm:$0xf0] }
  0x9b   :  { %v3207_v1 = vsel %vm151_vm2, 1.0, %v5208_v63  ;;  %v3419_v62 = vor.u32 %v4683_v55, %v3416_v56  ;;  %v3398_v63 = vld [vmem:[#allocation5 + $0x148] sm:$0xf]  ;;  %v4732_v42 = vld [vmem:[#allocation8 + $0xcc] sm:$0xf0]  ;;  %v3855_v45 = vor.u32 %v4800_v41, %v3854_v40  ;;  %v3839_v56 = vor.u32 %v4796_v50, %v3838_v49 }
  0x9c   :  { %v156_v2 = vpack.c.bf16 %v3207_v1, %v3206_v0  ;;  %v4681_v0 = vld [vmem:[#allocation5 + $0x154] sm:$0xf0]  ;;  %v4647_v1 = vld [vmem:[#allocation5 + $0x4c] sm:$0xf]  ;;  %v3583_v46 = vor.u32 %v4732_v42, %v3582_v38  ;;  %v4760_v55 = vld [vmem:[#allocation8 + $0x1ac] sm:$0xf0] }
  0x9d   :  { %v3399_v6 = vor.u32 %v4681_v0, %v3398_v63  ;;  %v3695_v59 = vor.u32 %v4760_v55, %v3694_v54  ;;  %v4784_v38 = vld [vmem:[#allocation8 + $0x26c] sm:$0xf0]  ;;  %v4730_v41 = vld [vmem:[#allocation8 + $0xc4] sm:$0xf]  ;;  %v3584_v42 = vld [vmem:[#allocation8 + $0xd0] sm:$0xf0] }
  0x9e   :  { %3224 = vmatmul.msk.bf16.vlgmr.msra.gmra.mxu0 %vm241_vm3, %v156_v2  ;;  %3225 = vmatmul.msk.bf16.vlgmr.msra.gmra.mxu1 %vm241_vm3, %v156_v2  ;;  %v4766_v50 = vld [vmem:[#allocation8 + $0x1e4] sm:$0xf]  ;;  %v3774_v55 = vld [vmem:[#allocation8 + $0x240] sm:$0xf] }
  0x9f   :  { %3226 = vmatmul.msk.bf16.vlgmr.msra.gmra.mxu2 %vm241_vm3, %v156_v2  ;;  %3227 = vmatmul.msk.bf16.vlgmr.msra.gmra.mxu3 %vm241_vm3, %v156_v2  ;;  %v3272_v2 = vld [vmem:[#allocation5 + $0x58] sm:$0xf0] }
  0xa0   :  { %690 = vmatpush.bf16.msra.mxu0 %v3351_v3  ;;  %704 = vmatpush.bf16.msra.mxu1 %v3479_v4  ;;  %v4679_v3 = vld [vmem:[#allocation5 + $0x14c] sm:$0xf]  ;;  %v3400_v4 = vld [vmem:[#allocation5 + $0x158] sm:$0xf0]  ;;  %v3275_v9 = vor.u32 %v4647_v1, %v3272_v2  ;;  %v3534_v1 = vld [vmem:[#allocation8 + $0x60] sm:$0xf] }
  0xa1   :  { %718 = vmatpush.bf16.msra.mxu2 %v3355_v7  ;;  %732 = vmatpush.bf16.msra.mxu3 %v3483_v8  ;;  %v3254_v7 = vld [vmem:[#allocation5 + $0x28] sm:$0xf]  ;;  %v4645_v8 = vld [vmem:[#allocation5 + $0x34] sm:$0xf0]  ;;  %v3403_v10 = vor.u32 %v4679_v3, %v3400_v4  ;;  %v4720_v2 = vld [vmem:[#allocation8 + $0x6c] sm:$0xf0] }
  0xa2   :  { %v3255_v17 = vor.u32 %v4645_v8, %v3254_v7  ;;  %v4716_v3 = vld [vmem:[#allocation8 + $0x4c] sm:$0xf0]  ;;  %v3982_v7 = vld [vmem:[#allocation8 + $0x3e0] sm:$0xf] }
  0xa4   :  { %691 = vmatpush.bf16.msra.mxu0 %v3335_v15  ;;  %705 = vmatpush.bf16.msra.mxu1 %v3463_v16  ;;  %v4675_v15 = vld [vmem:[#allocation5 + $0x12c] sm:$0xf]  ;;  %v3384_v16 = vld [vmem:[#allocation5 + $0x138] sm:$0xf0] }
  0xa5   :  { %719 = vmatpush.bf16.msra.mxu2 %v3339_v19  ;;  %733 = vmatpush.bf16.msra.mxu3 %v3467_v20  ;;  %v3238_v19 = vld [vmem:[#allocation5 + $0x8] sm:$0xf]  ;;  %v4641_v20 = vld [vmem:[#allocation5 + $0x14] sm:$0xf0]  ;;  %v3387_v23 = vor.u32 %v4675_v15, %v3384_v16  ;;  %v4792_v15 = vld [vmem:[#allocation8 + $0x2ac] sm:$0xf0] }
  0xa6   :  { %v3646_v16 = vld [vmem:[#allocation8 + $0x140] sm:$0xf] }
  0xa8   :  { %692 = vmatpush.bf16.msra.mxu0 %v3319_v27  ;;  %706 = vmatpush.bf16.msra.mxu1 %v3447_v28  ;;  %v4671_v27 = vld [vmem:[#allocation5 + $0x10c] sm:$0xf]  ;;  %v3368_v28 = vld [vmem:[#allocation5 + $0x118] sm:$0xf0] }
  0xa9   :  { %720 = vmatpush.bf16.msra.mxu2 %v3323_v32  ;;  %734 = vmatpush.bf16.msra.mxu3 %v3451_v33  ;;  %v4768_v32 = vld [vmem:[#allocation8 + $0x1ec] sm:$0xf0]  ;;  %v3239_v33 = vor.u32 %v4641_v20, %v3238_v19  ;;  %v3371_v36 = vor.u32 %v4671_v27, %v3368_v28  ;;  %v3966_v19 = vld [vmem:[#allocation8 + $0x3c0] sm:$0xf]  ;;  %v4734_v28 = vld [vmem:[#allocation8 + $0xe4] sm:$0xf] }
  0xaa   :  { %v3727_v39 = vor.u32 %v4768_v32, %v3726_v31  ;;  %v4828_v20 = vld [vmem:[#allocation8 + $0x3cc] sm:$0xf0]  ;;  %v3603_v31 = vor.u32 %v4734_v28, %v3600_v29  ;;  %v3630_v32 = vld [vmem:[#allocation8 + $0x120] sm:$0xf]  ;;  %v4714_v28 = vld [vmem:[#allocation8 + $0x44] sm:$0xf] }
  0xab   :  { %v4788_v27 = vld [vmem:[#allocation8 + $0x28c] sm:$0xf0]  ;;  %v3520_v29 = vld [vmem:[#allocation8 + $0x50] sm:$0xf0] }
  0xac   :  { %693 = vmatpush.bf16.msra.mxu0 %v3303_v43  ;;  %707 = vmatpush.bf16.msra.mxu1 %v3431_v44  ;;  %v3710_v43 = vld [vmem:[#allocation8 + $0x1c0] sm:$0xf]  ;;  %v4764_v44 = vld [vmem:[#allocation8 + $0x1cc] sm:$0xf0]  ;;  %v3807_v30 = vor.u32 %v4788_v27, %v3806_v25  ;;  %v4754_v25 = vld [vmem:[#allocation8 + $0x184] sm:$0xf] }
  0xad   :  { %721 = vmatpush.bf16.msra.mxu2 %v3307_v47  ;;  %735 = vmatpush.bf16.msra.mxu3 %v3435_v48  ;;  %v3566_v47 = vld [vmem:[#allocation8 + $0xa0] sm:$0xf]  ;;  %v3711_v48 = vor.u32 %v4764_v44, %v3710_v43  ;;  %v3587_v44 = vor.u32 %v4730_v41, %v3584_v42  ;;  %v3984_v41 = vld [vmem:[#allocation8 + $0x3f0] sm:$0xf0] }
  0xae   :  { %642 = vmatmul.bf16.vlgmr.msrb.gmra.mxu0 %v5319_v52  ;;  %656 = vmatmul.bf16.vlgmr.msrb.gmra.mxu1 %v5321_v53  ;;  %v3614_v43 = vld [vmem:[#allocation8 + $0x100] sm:$0xf] }
  0xaf   :  { %670 = vmatmul.bf16.vlgmr.msrb.gmra.mxu2 %v5319_v52  ;;  %684 = vmatmul.bf16.vlgmr.msrb.gmra.mxu3 %v5321_v53 }
  0xb0   :  { %694 = vmatpush.bf16.msra.mxu0 %v3287_v57  ;;  %708 = vmatpush.bf16.msra.mxu1 %v3415_v58  ;;  %v3567_v57 = vor.u32 %v4728_v51, %v3566_v47  ;;  %v3550_v58 = vld [vmem:[#allocation8 + $0x80] sm:$0xf]  ;;  %v4820_v47 = vld [vmem:[#allocation8 + $0x38c] sm:$0xf0]  ;;  %v3728_v51 = vld [vmem:[#allocation8 + $0x1f0] sm:$0xf0] }
  0xb1   :  { %722 = vmatpush.bf16.msra.mxu2 %v3291_v61  ;;  %736 = vmatpush.bf16.msra.mxu3 %v3419_v62  ;;  %v3678_v61 = vld [vmem:[#allocation8 + $0x180] sm:$0xf]  ;;  %v4756_v62 = vld [vmem:[#allocation8 + $0x18c] sm:$0xf0]  ;;  %v3551_v63 = vor.u32 %v4724_v60, %v3550_v58  ;;  %v3731_v54 = vor.u32 %v4766_v50, %v3728_v51  ;;  %v4726_v58 = vld [vmem:[#allocation8 + $0xa4] sm:$0xf] }
  0xb2   :  { %v3679_v0 = vor.u32 %v4756_v62, %v3678_v61  ;;  %v3918_v61 = vld [vmem:[#allocation8 + $0x360] sm:$0xf]  ;;  %v4816_v62 = vld [vmem:[#allocation8 + $0x36c] sm:$0xf0]  ;;  %v4746_v51 = vld [vmem:[#allocation8 + $0x144] sm:$0xf] }
  0xb4   :  { %695 = vmatpush.bf16.msra.mxu0 %v3271_v5  ;;  %709 = vmatpush.bf16.msra.mxu1 %v3399_v6  ;;  %v3662_v5 = vld [vmem:[#allocation8 + $0x160] sm:$0xf]  ;;  %v4752_v6 = vld [vmem:[#allocation8 + $0x16c] sm:$0xf0] }
  0xb5   :  { %723 = vmatpush.bf16.msra.mxu2 %v3275_v9  ;;  %737 = vmatpush.bf16.msra.mxu3 %v3403_v10  ;;  %v3663_v8 = vor.u32 %v4752_v6, %v3662_v5  ;;  %v4832_v9 = vld [vmem:[#allocation8 + $0x3ec] sm:$0xf0]  ;;  %v3502_v10 = vld [vmem:[#allocation8 + $0x20] sm:$0xf]  ;;  %v3552_v5 = vld [vmem:[#allocation8 + $0x90] sm:$0xf0] }
  0xb6   :  { %v3983_v12 = vor.u32 %v4832_v9, %v3982_v7  ;;  %v3503_v13 = vor.u32 %v4712_v11, %v3502_v10  ;;  %v3902_v7 = vld [vmem:[#allocation8 + $0x340] sm:$0xf]  ;;  %v4758_v10 = vld [vmem:[#allocation8 + $0x1a4] sm:$0xf]  ;;  %v3696_v11 = vld [vmem:[#allocation8 + $0x1b0] sm:$0xf0] }
  0xb8   :  { %696 = vmatpush.bf16.msra.mxu0 %v3255_v17  ;;  %710 = vmatpush.bf16.msra.mxu1 %v3383_v18  ;;  %v3823_v17 = vor.u32 %v4792_v15, %v3822_v14  ;;  %v4748_v18 = vld [vmem:[#allocation8 + $0x14c] sm:$0xf0] }
  0xb9   :  { %724 = vmatpush.bf16.msra.mxu2 %v3259_v22  ;;  %738 = vmatpush.bf16.msra.mxu3 %v3387_v23  ;;  %v3647_v21 = vor.u32 %v4748_v18, %v3646_v16  ;;  %v3967_v22 = vor.u32 %v4828_v20, %v3966_v19  ;;  %v3486_v23 = vld [vmem:[#allocation8] sm:$0xf]  ;;  %v4772_v14 = vld [vmem:[#allocation8 + $0x20c] sm:$0xf0]  ;;  %v4718_v16 = vld [vmem:[#allocation8 + $0x64] sm:$0xf] }
  0xba   :  { %v3487_v26 = vor.u32 %v4708_v24, %v3486_v23  ;;  %v4798_v18 = vld [vmem:[#allocation8 + $0x2e4] sm:$0xf]  ;;  %v3856_v20 = vld [vmem:[#allocation8 + $0x2f0] sm:$0xf0] }
  0xbb   :  { %v3859_v23 = vor.u32 %v4798_v18, %v3856_v20  ;;  %v4778_v18 = vld [vmem:[#allocation8 + $0x244] sm:$0xf] }
  0xbc   :  { %697 = vmatpush.bf16.msra.mxu0 %v3239_v33  ;;  %711 = vmatpush.bf16.msra.mxu1 %v3367_v34  ;;  %v4744_v33 = vld [vmem:[#allocation8 + $0x12c] sm:$0xf0]  ;;  %v3950_v34 = vld [vmem:[#allocation8 + $0x3a0] sm:$0xf] }
  0xbd   :  { %725 = vmatpush.bf16.msra.mxu2 %v3243_v35  ;;  %739 = vmatpush.bf16.msra.mxu3 %v3371_v36  ;;  %v3631_v35 = vor.u32 %v4744_v33, %v3630_v32  ;;  %v4824_v36 = vld [vmem:[#allocation8 + $0x3ac] sm:$0xf0]  ;;  %v3840_v32 = vld [vmem:[#allocation8 + $0x2d0] sm:$0xf0]  ;;  %v3870_v33 = vld [vmem:[#allocation8 + $0x300] sm:$0xf] }
  0xbf   :  { %698 = vmatmul.bf16.vlgmr.msra.gmra.mxu0 %v5319_v52  ;;  %712 = vmatmul.bf16.vlgmr.msra.gmra.mxu1 %v5321_v53 }
  0xc0   :  { %1562 = vmatpush.bf16.msrb.mxu0 %v3599_v37  ;;  %1576 = vmatpush.bf16.msrb.mxu1 %v3727_v39  ;;  %v3790_v37 = vld [vmem:[#allocation8 + $0x260] sm:$0xf]  ;;  %v3951_v39 = vor.u32 %v4824_v36, %v3950_v34  ;;  %v4804_v34 = vld [vmem:[#allocation8 + $0x30c] sm:$0xf0] }
  0xc1   :  { %726 = vmatmul.bf16.vlgmr.msra.gmra.mxu2 %v5319_v52  ;;  %740 = vmatmul.bf16.vlgmr.msra.gmra.mxu3 %v5321_v53  ;;  %v3535_v52 = vor.u32 %v4720_v2, %v3534_v1  ;;  %v3518_v53 = vld [vmem:[#allocation8 + $0x40] sm:$0xf]  ;;  %v3791_v40 = vor.u32 %v4784_v38, %v3790_v37  ;;  %v3712_v1 = vld [vmem:[#allocation8 + $0x1d0] sm:$0xf0]  ;;  %v3871_v36 = vor.u32 %v4804_v34, %v3870_v33  ;;  %v4750_v37 = vld [vmem:[#allocation8 + $0x164] sm:$0xf] }
  0xc2   :  { %1590 = vmatpush.bf16.msrb.mxu2 %v3855_v45  ;;  %v3519_v4 = vor.u32 %v4716_v3, %v3518_v53  ;;  %1604 = vmatpush.bf16.msrb.mxu3 %v3983_v12  ;;  %v4740_v45 = vld [vmem:[#allocation8 + $0x10c] sm:$0xf0]  ;;  %v3699_v12 = vor.u32 %v4758_v10, %v3696_v11  ;;  %v3664_v38 = vld [vmem:[#allocation8 + $0x170] sm:$0xf0]  ;;  %v5349_v34 = vld [vmem:[%s5440_s4] sm:$0xf] }
  0xc3   :  { %v4776_v53 = vld [vmem:[#allocation8 + $0x22c] sm:$0xf0]  ;;  %v3904_v33 = vld [vmem:[#allocation8 + $0x350] sm:$0xf0] }
  0xc4   :  { %1563 = vmatpush.bf16.msrb.mxu0 %v3583_v46  ;;  %1577 = vmatpush.bf16.msrb.mxu1 %v3711_v48  ;;  %v3934_v46 = vld [vmem:[#allocation8 + $0x380] sm:$0xf]  ;;  %v3615_v48 = vor.u32 %v4740_v45, %v3614_v43  ;;  %v4710_v43 = vld [vmem:[#allocation8 + $0x24] sm:$0xf] }
  0xc5   :  { %v3935_v49 = vor.u32 %v4820_v47, %v3934_v46  ;;  %v4790_v45 = vld [vmem:[#allocation8 + $0x2a4] sm:$0xf] }
  0xc6   :  { %1591 = vmatpush.bf16.msrb.mxu2 %v3839_v56  ;;  %1605 = vmatpush.bf16.msrb.mxu3 %v3967_v22  ;;  %v4780_v56 = vld [vmem:[#allocation8 + $0x24c] sm:$0xf0] }
  0xc7   :  { %v4808_v22 = vld [vmem:[#allocation8 + $0x32c] sm:$0xf0] }
  0xc8   :  { %1564 = vmatpush.bf16.msrb.mxu0 %v3567_v57  ;;  %1578 = vmatpush.bf16.msrb.mxu1 %v3695_v59  ;;  %v3775_v57 = vor.u32 %v4780_v56, %v3774_v55  ;;  %v3568_v59 = vld [vmem:[#allocation8 + $0xb0] sm:$0xf0]  ;;  %v4826_v55 = vld [vmem:[#allocation8 + $0x3c4] sm:$0xf] }
  0xc9   :  { %v3571_v60 = vor.u32 %v4726_v58, %v3568_v59  ;;  %v4706_v59 = vld [vmem:[#allocation8 + $0x4] sm:$0xf] }
  0xca   :  { %1592 = vmatpush.bf16.msrb.mxu2 %v3823_v17  ;;  %1606 = vmatpush.bf16.msrb.mxu3 %v3951_v39  ;;  %v3536_v17 = vld [vmem:[#allocation8 + $0x70] sm:$0xf0]  ;;  %v4830_v39 = vld [vmem:[#allocation8 + $0x3e4] sm:$0xf] }
  0xcb   :  { %v3539_v19 = vor.u32 %v4718_v16, %v3536_v17  ;;  %v3987_v42 = vor.u32 %v4830_v39, %v3984_v41  ;;  %v3936_v16 = vld [vmem:[#allocation8 + $0x390] sm:$0xf0]  ;;  %v4806_v41 = vld [vmem:[#allocation8 + $0x324] sm:$0xf] }
  0xcc   :  { %1565 = vmatpush.bf16.msrb.mxu0 %v3551_v63  ;;  %1579 = vmatpush.bf16.msrb.mxu1 %v3679_v0  ;;  %v3919_v63 = vor.u32 %v4816_v62, %v3918_v61  ;;  %v4762_v0 = vld [vmem:[#allocation8 + $0x1c4] sm:$0xf] }
  0xcd   :  { %v3715_v2 = vor.u32 %v4762_v0, %v3712_v1  ;;  %v4786_v61 = vld [vmem:[#allocation8 + $0x284] sm:$0xf] }
  0xce   :  { %1593 = vmatpush.bf16.msrb.mxu2 %v3807_v30  ;;  %1607 = vmatpush.bf16.msrb.mxu3 %v3935_v49  ;;  %v4794_v30 = vld [vmem:[#allocation8 + $0x2c4] sm:$0xf]  ;;  %v3824_v49 = vld [vmem:[#allocation8 + $0x2b0] sm:$0xf0] }
  0xcf   :  { %v3827_v50 = vor.u32 %v4790_v45, %v3824_v49  ;;  %v4742_v1 = vld [vmem:[#allocation8 + $0x124] sm:$0xf] }
  0xd0   :  { %1566 = vmatpush.bf16.msrb.mxu0 %v3535_v52  ;;  %1580 = vmatpush.bf16.msrb.mxu1 %v3663_v8  ;;  %v3758_v52 = vld [vmem:[#allocation8 + $0x220] sm:$0xf]  ;;  %v4812_v8 = vld [vmem:[#allocation8 + $0x34c] sm:$0xf0] }
  0xd1   :  { %v3759_v3 = vor.u32 %v4776_v53, %v3758_v52  ;;  %v3903_v9 = vor.u32 %v4812_v8, %v3902_v7  ;;  %v4822_v53 = vld [vmem:[#allocation8 + $0x3a4] sm:$0xf]  ;;  %v3792_v8 = vld [vmem:[#allocation8 + $0x270] sm:$0xf0] }
  0xd2   :  { %1594 = vmatpush.bf16.msrb.mxu2 %v3791_v40  ;;  %1608 = vmatpush.bf16.msrb.mxu3 %v3919_v63  ;;  %v3667_v40 = vor.u32 %v4750_v37, %v3664_v38  ;;  %v3808_v63 = vld [vmem:[#allocation8 + $0x290] sm:$0xf0]  ;;  %v4782_v7 = vld [vmem:[#allocation8 + $0x264] sm:$0xf] }
  0xd3   :  { %v3811_v0 = vor.u32 %v4786_v61, %v3808_v63  ;;  %v3795_v11 = vor.u32 %v4782_v7, %v3792_v8  ;;  %v3744_v37 = vld [vmem:[#allocation8 + $0x210] sm:$0xf0] }
  0xd4   :  { %1567 = vmatpush.bf16.msrb.mxu0 %v3519_v4  ;;  %1581 = vmatpush.bf16.msrb.mxu1 %v3647_v21  ;;  %v4722_v4 = vld [vmem:[#allocation8 + $0x84] sm:$0xf]  ;;  %v3886_v21 = vld [vmem:[#allocation8 + $0x320] sm:$0xf] }
  0xd5   :  { %v3555_v6 = vor.u32 %v4722_v4, %v3552_v5  ;;  %v3887_v24 = vor.u32 %v4808_v22, %v3886_v21  ;;  %v4814_v21 = vld [vmem:[#allocation8 + $0x364] sm:$0xf]  ;;  %v3920_v22 = vld [vmem:[#allocation8 + $0x370] sm:$0xf0] }
  0xd6   :  { %1595 = vmatpush.bf16.msrb.mxu2 %v3775_v57  ;;  %1609 = vmatpush.bf16.msrb.mxu3 %v3903_v9  ;;  %v3968_v57 = vld [vmem:[#allocation8 + $0x3d0] sm:$0xf0] }
  0xd7   :  { %v3971_v58 = vor.u32 %v4826_v55, %v3968_v57  ;;  %v3872_v55 = vld [vmem:[#allocation8 + $0x310] sm:$0xf0] }
  0xd8   :  { %1568 = vmatpush.bf16.msrb.mxu0 %v3503_v13  ;;  %1582 = vmatpush.bf16.msrb.mxu1 %v3631_v35  ;;  %v3742_v13 = vld [vmem:[#allocation8 + $0x200] sm:$0xf]  ;;  %v3843_v35 = vor.u32 %v4794_v30, %v3840_v32  ;;  %v4810_v32 = vld [vmem:[#allocation8 + $0x344] sm:$0xf] }
  0xd9   :  { %v3743_v15 = vor.u32 %v4772_v14, %v3742_v13  ;;  %v3616_v13 = vld [vmem:[#allocation8 + $0x110] sm:$0xf0]  ;;  %v4818_v14 = vld [vmem:[#allocation8 + $0x384] sm:$0xf] }
  0xda   :  { %1596 = vmatpush.bf16.msrb.mxu2 %v3759_v3  ;;  %1610 = vmatpush.bf16.msrb.mxu3 %v3887_v24  ;;  %v3952_v3 = vld [vmem:[#allocation8 + $0x3b0] sm:$0xf0]  ;;  %v3939_v17 = vor.u32 %v4818_v14, %v3936_v16  ;;  %v4733_v14 = vld [vmem:[#allocation8 + $0xd4] sm:$0xf0] }
  0xdc   :  { %1569 = vmatpush.bf16.msrb.mxu0 %v3487_v26  ;;  %1583 = vmatpush.bf16.msrb.mxu1 %v3615_v48  ;;  %v3680_v26 = vld [vmem:[#allocation8 + $0x190] sm:$0xf0] }
  0xdd   :  { %v3683_v27 = vor.u32 %v4754_v25, %v3680_v26  ;;  %v4774_v26 = vld [vmem:[#allocation8 + $0x224] sm:$0xf] }
  0xde   :  { %1597 = vmatpush.bf16.msrb.mxu2 %v3743_v15  ;;  %1611 = vmatpush.bf16.msrb.mxu3 %v3871_v36  ;;  %v4770_v36 = vld [vmem:[#allocation8 + $0x204] sm:$0xf] }
  0xdf   :  { %v3747_v38 = vor.u32 %v4770_v36, %v3744_v37  ;;  %v3718_v37 = vld [vmem:[#allocation8 + $0x1c8] sm:$0xf] }
  0xe0   :  { %1618 = vmatpush.bf16.msra.mxu0 %v3603_v31  ;;  %1632 = vmatpush.bf16.msra.mxu1 %v3731_v54  ;;  %v3523_v31 = vor.u32 %v4714_v28, %v3520_v29  ;;  %v3648_v54 = vld [vmem:[#allocation8 + $0x150] sm:$0xf0] }
  0xe1   :  { %v3651_v56 = vor.u32 %v4746_v51, %v3648_v54  ;;  %v4802_v54 = vld [vmem:[#allocation8 + $0x304] sm:$0xf] }
  0xe2   :  { %1646 = vmatpush.bf16.msra.mxu2 %v3859_v23  ;;  %1660 = vmatpush.bf16.msra.mxu3 %v3987_v42  ;;  %v3923_v23 = vor.u32 %v4814_v21, %v3920_v22  ;;  %v3888_v42 = vld [vmem:[#allocation8 + $0x330] sm:$0xf0]  ;;  %v4769_v21 = vld [vmem:[#allocation8 + $0x1f4] sm:$0xf0]  ;;  %v3574_v22 = vld [vmem:[#allocation8 + $0xa8] sm:$0xf] }
  0xe4   :  { %1619 = vmatpush.bf16.msra.mxu0 %v3587_v44  ;;  %1633 = vmatpush.bf16.msra.mxu1 %v3715_v2  ;;  %v3504_v44 = vld [vmem:[#allocation8 + $0x30] sm:$0xf0] }
  0xe5   :  { %v3507_v48 = vor.u32 %v4710_v43, %v3504_v44  ;;  %v3632_v2 = vld [vmem:[#allocation8 + $0x130] sm:$0xf0]  ;;  %v3891_v43 = vor.u32 %v4806_v41, %v3888_v42  ;;  %v4725_v41 = vld [vmem:[#allocation8 + $0x94] sm:$0xf0] }
  0xe6   :  { %1647 = vmatpush.bf16.msra.mxu2 %v3843_v35  ;;  %1661 = vmatpush.bf16.msra.mxu3 %v3971_v58  ;;  %v3635_v52 = vor.u32 %v4742_v1, %v3632_v2  ;;  %v3907_v35 = vor.u32 %v4810_v32, %v3904_v33  ;;  %v3606_v1 = vld [vmem:[#allocation8 + $0xe8] sm:$0xf] }
  0xe8   :  { %1620 = vmatpush.bf16.msra.mxu0 %v3571_v60  ;;  %1634 = vmatpush.bf16.msra.mxu1 %v3699_v12  ;;  %v3488_v60 = vld [vmem:[#allocation8 + $0x10] sm:$0xf0]  ;;  %v4738_v12 = vld [vmem:[#allocation8 + $0x104] sm:$0xf] }
  0xe9   :  { %v3491_v62 = vor.u32 %v4706_v59, %v3488_v60  ;;  %v3619_v15 = vor.u32 %v4738_v12, %v3616_v13  ;;  %v749_v59 = vperm.slane %v5349_v34, 1  ;;  %v3590_v13 = vld [vmem:[#allocation8 + $0xc8] sm:$0xf] }
  0xea   :  { %1648 = vmatpush.bf16.msra.mxu2 %v3827_v50 }
  0xec   :  { %1621 = vmatpush.bf16.msra.mxu0 %v3555_v6  ;;  %1635 = vmatpush.bf16.msra.mxu1 %v3683_v27  ;;  %v3955_v6 = vor.u32 %v4822_v53, %v3952_v3  ;;  %v3760_v27 = vld [vmem:[#allocation8 + $0x230] sm:$0xf0] }
  0xed   :  { %v3763_v30 = vor.u32 %v4774_v26, %v3760_v27 }
  0xee   :  { %1649 = vmatpush.bf16.msra.mxu2 %v3811_v0  ;;  %1662 = vmatpush.bf16.msra.mxu3 %v3955_v6 }
  0xf0   :  { %1622 = vmatpush.bf16.msra.mxu0 %v3539_v19  ;;  %1636 = vmatpush.bf16.msra.mxu1 %v3667_v40  ;;  %v3776_v19 = vld [vmem:[#allocation8 + $0x250] sm:$0xf0]  ;;  %v748_v40 = vperm.slane %v5349_v34, 0 }
  0xf1   :  { %v3779_v20 = vor.u32 %v4778_v18, %v3776_v19  ;;  %v3591_v19 = vor.u32 %v4733_v14, %v3590_v13  ;;  %v4753_v14 = vld [vmem:[#allocation8 + $0x174] sm:$0xf0] }
  0xf2   :  { %1650 = vmatpush.bf16.msra.mxu2 %v3795_v11  ;;  %1663 = vmatpush.bf16.msra.mxu3 %v3939_v17  ;;  %v750_v17 = vperm.slane %v5349_v34, 2 }
  0xf4   :  { %1623 = vmatpush.bf16.msra.mxu0 %v3523_v31  ;;  %1637 = vmatpush.bf16.msra.mxu1 %v3651_v56  ;;  %v3875_v56 = vor.u32 %v4802_v54, %v3872_v55 }
  0xf6   :  { %1651 = vmatpush.bf16.msra.mxu2 %v3779_v20  ;;  %1664 = vmatpush.bf16.msra.mxu3 %v3923_v23  ;;  %v3734_v20 = vld [vmem:[#allocation8 + $0x1e8] sm:$0xf]  ;;  %v4729_v23 = vld [vmem:[#allocation8 + $0xb4] sm:$0xf0] }
  0xf7   :  { %v3575_v36 = vor.u32 %v4729_v23, %v3574_v22 }
  0xf8   :  { %1624 = vmatpush.bf16.msra.mxu0 %v3507_v48  ;;  %1638 = vmatpush.bf16.msra.mxu1 %v3635_v52 }
  0xfa   :  { %1652 = vmatpush.bf16.msra.mxu2 %v3763_v30  ;;  %1665 = vmatpush.bf16.msra.mxu3 %v3907_v35 }
  0xfc   :  { %1625 = vmatpush.bf16.msra.mxu0 %v3491_v62  ;;  %1639 = vmatpush.bf16.msra.mxu1 %v3619_v15 }
  0xfe   :  { %1653 = vmatpush.bf16.msra.mxu2 %v3747_v38  ;;  %1666 = vmatpush.bf16.msra.mxu3 %v3891_v43  ;;  %v4765_v38 = vld [vmem:[#allocation8 + $0x1d4] sm:$0xf0] }
 0x102   :  { %1667 = vmatpush.bf16.msra.mxu3 %v3875_v56  ;;  %v3862_v56 = vld [vmem:[#allocation8 + $0x2e8] sm:$0xf] }
 0x11b   :  { %v5331_v46 = vpop.f32.mrf.mxu0  ;;  %v5333_v47 = vpop.f32.mrf.mxu1 }
 0x122   :  { %v5335_v4 = vpop.f32.mrf.mxu2  ;;  %v5337_v5 = vpop.f32.mrf.mxu3 }
 0x123   :  { %v269_v9 = vpop.f32.mrf.mxu0  ;;  %v5339_v10 = vpop.f32.mrf.mxu1 }
 0x12a   :  { %v5341_v24 = vpop.f32.mrf.mxu2  ;;  %v5343_v25 = vpop.f32.mrf.mxu3 }
 0x12b   :  { %v643_v28 = vpop.f32.mrf.mxu0  ;;  %v657_v29 = vpop.f32.mrf.mxu1 }
 0x12c   :  { %v644_v31 = vadd.f32 %v643_v28, %v5331_v46 }
 0x12e   :  { %v658_v39 = vadd.f32 %v657_v29, %v644_v31  ;;  %v3735_v31 = vor.u32 %v4769_v21, %v3734_v20  ;;  %v3830_v20 = vld [vmem:[#allocation8 + $0x2a8] sm:$0xf]  ;;  %v4793_v21 = vld [vmem:[#allocation8 + $0x2b4] sm:$0xf0] }
 0x130   :  { %v756_v50 = vadd.f32 %v748_v40, %v658_v39 }
 0x132   :  { %v671_v44 = vpop.f32.mrf.mxu2  ;;  %v685_v45 = vpop.f32.mrf.mxu3  ;;  %v764_v60 = vmul.f32 0.2, %v756_v50 }
 0x133   :  { %v672_v46 = vadd.f32 %v671_v44, %v5333_v47  ;;  %v645_v48 = vpop.f32.mrf.mxu0  ;;  %v659_v49 = vpop.f32.mrf.mxu1  ;;  %v4737_v47 = vld [vmem:[#allocation8 + $0xf4] sm:$0xf0]  ;;  %v3719_v44 = vor.u32 %v4765_v38, %v3718_v37  ;;  %v3814_v38 = vld [vmem:[#allocation8 + $0x288] sm:$0xf] }
 0x134   :  { %v646_v51 = vadd.f32 %v645_v48, %v269_v9  ;;  %v772_v53 = vmax.f32 %v756_v50, %v764_v60  ;;  %v3607_v11 = vor.u32 %v4737_v47, %v3606_v1  ;;  %v3542_v50 = vld [vmem:[#allocation8 + $0x68] sm:$0xf]  ;;  %v4757_v1 = vld [vmem:[#allocation8 + $0x194] sm:$0xf0] }
 0x135   :  { %v686_v58 = vadd.f32 %v685_v45, %v672_v46  ;;  %v4709_v37 = vld [vmem:[#allocation8 + $0x14] sm:$0xf0] }
 0x136   :  { %v660_v57 = vadd.f32 %v659_v49, %v646_v51  ;;  %v4761_v49 = vld [vmem:[#allocation8 + $0x1b4] sm:$0xf0] }
 0x137   :  { %v757_v2 = vadd.f32 %v749_v59, %v686_v58  ;;  %v4721_v51 = vld [vmem:[#allocation8 + $0x74] sm:$0xf0] }
 0x138   :  { %v760_v61 = vadd.f32 %v748_v40, %v660_v57  ;;  %v3558_v40 = vld [vmem:[#allocation8 + $0x88] sm:$0xf]  ;;  %v4801_v57 = vld [vmem:[#allocation8 + $0x2f4] sm:$0xf0] }
 0x139   :  { %v765_v15 = vmul.f32 0.2, %v757_v2  ;;  %v3559_v48 = vor.u32 %v4725_v41, %v3558_v40  ;;  %v4735_v40 = vld [vmem:[#allocation8 + $0xec] sm:$0xf]  ;;  %v3608_v41 = vld [vmem:[#allocation8 + $0xf8] sm:$0xf0] }
 0x13a   :  { %v768_v62 = vmul.f32 0.2, %v760_v61  ;;  %v673_v63 = vpop.f32.mrf.mxu2  ;;  %v687_v0 = vpop.f32.mrf.mxu3 }
 0x13b   :  { %v674_v52 = vadd.f32 %v673_v63, %v5339_v10  ;;  %v3543_v63 = vor.u32 %v4721_v51, %v3542_v50  ;;  %v3798_v50 = vld [vmem:[#allocation8 + $0x268] sm:$0xf]  ;;  %v4785_v51 = vld [vmem:[#allocation8 + $0x274] sm:$0xf0] }
 0x13c   :  { %v776_v3 = vmax.f32 %v760_v61, %v768_v62  ;;  %v699_v6 = vpop.f32.mrf.mxu0  ;;  %v713_v7 = vpop.f32.mrf.mxu1 }
 0x13d   :  { %v688_v8 = vadd.f32 %v687_v0, %v674_v52  ;;  %v700_v9 = vadd.f32 %v699_v6, %v5335_v4  ;;  %v773_v4 = vmax.f32 %v757_v2, %v765_v15  ;;  %v3686_v0 = vld [vmem:[#allocation8 + $0x188] sm:$0xf]  ;;  %v3863_v2 = vor.u32 %v4801_v57, %v3862_v56 }
 0x13e   :  { %v5356_v12 = vpack.c.bf16 %v776_v3, %v772_v53  ;;  %v3526_v52 = vld [vmem:[#allocation8 + $0x48] sm:$0xf]  ;;  %v4717_v53 = vld [vmem:[#allocation8 + $0x54] sm:$0xf0] }
 0x13f   :  { %v761_v16 = vadd.f32 %v749_v59, %v688_v8  ;;  %v714_v10 = vadd.f32 %v713_v7, %v700_v9  ;;  %v3846_v6 = vld [vmem:[#allocation8 + $0x2c8] sm:$0xf]  ;;  %v4797_v7 = vld [vmem:[#allocation8 + $0x2d4] sm:$0xf0]  ;;  %v3527_v13 = vor.u32 %v4717_v53, %v3526_v52  ;;  %v3576_v52 = vld [vmem:[#allocation8 + $0xb8] sm:$0xf0] }
 0x140   :  { %1570 = vmatmul.bf16.vlgmr.msrb.gmra.mxu0 %v5356_v12  ;;  %v3990_v15 = vld [vmem:[#allocation8 + $0x3e8] sm:$0xf] }
 0x141   :  { %v769_v18 = vmul.f32 0.2, %v761_v16  ;;  %1674 = vmatpush.bf16.msrb.mxu0 %v3607_v11  ;;  %v758_v33 = vadd.f32 %v750_v17, %v714_v10  ;;  %v3670_v11 = vld [vmem:[#allocation8 + $0x168] sm:$0xf] }
 0x142   :  { %v3510_v10 = vld [vmem:[#allocation8 + $0x28] sm:$0xf] }
 0x143   :  { %v777_v26 = vmax.f32 %v761_v16, %v769_v18  ;;  %v766_v45 = vmul.f32 0.2, %v758_v33  ;;  %v4833_v16 = vld [vmem:[#allocation8 + $0x3f4] sm:$0xf0]  ;;  %v3847_v18 = vor.u32 %v4797_v7, %v3846_v6  ;;  %v3622_v57 = vld [vmem:[#allocation8 + $0x108] sm:$0xf] }
 0x144   :  { %v727_v27 = vpop.f32.mrf.mxu2  ;;  %v741_v28 = vpop.f32.mrf.mxu3 }
 0x145   :  { %v728_v29 = vadd.f32 %v727_v27, %v5337_v5  ;;  %v701_v30 = vpop.f32.mrf.mxu0  ;;  %v5361_v32 = vpack.c.bf16 %v777_v26, %v773_v4  ;;  %1675 = vmatpush.bf16.msrb.mxu0 %v3591_v19  ;;  %v715_v39 = vpop.f32.mrf.mxu1  ;;  %v751_v5 = vperm.slane %v5349_v34, 3  ;;  %v774_v34 = vmax.f32 %v758_v33, %v766_v45  ;;  %v4713_v19 = vld [vmem:[#allocation8 + $0x34] sm:$0xf0]  ;;  %v3654_v26 = vld [vmem:[#allocation8 + $0x148] sm:$0xf] }
 0x146   :  { %v702_v35 = vadd.f32 %v701_v30, %v5341_v24  ;;  %v3702_v24 = vld [vmem:[#allocation8 + $0x1a8] sm:$0xf]  ;;  %v3671_v4 = vor.u32 %v4753_v14, %v3670_v11  ;;  %v3991_v27 = vor.u32 %v4833_v16, %v3990_v15  ;;  %v4745_v45 = vld [vmem:[#allocation8 + $0x134] sm:$0xf0]  ;;  %v3720_v14 = vld [vmem:[#allocation8 + $0x1d8] sm:$0xf0] }
 0x147   :  { %1584 = vmatmul.bf16.vlgmr.msrb.gmra.mxu1 %v5361_v32  ;;  %v742_v43 = vadd.f32 %v741_v28, %v728_v29  ;;  %v3703_v60 = vor.u32 %v4761_v49, %v3702_v24  ;;  %v3511_v28 = vor.u32 %v4713_v19, %v3510_v10  ;;  %v4749_v29 = vld [vmem:[#allocation8 + $0x154] sm:$0xf0]  ;;  %v3974_v30 = vld [vmem:[#allocation8 + $0x3c8] sm:$0xf] }
 0x148   :  { %v716_v42 = vadd.f32 %v715_v39, %v702_v35  ;;  %1688 = vmatpush.bf16.msrb.mxu1 %v3735_v31  ;;  %v4829_v31 = vld [vmem:[#allocation8 + $0x3d4] sm:$0xf0]  ;;  %v3831_v35 = vor.u32 %v4793_v21, %v3830_v20  ;;  %v3958_v24 = vld [vmem:[#allocation8 + $0x3a8] sm:$0xf] }
 0x149   :  { %1676 = vmatpush.bf16.msrb.mxu0 %v3575_v36  ;;  %v759_v58 = vadd.f32 %v751_v5, %v742_v43  ;;  %v3494_v36 = vld [vmem:[#allocation8 + $0x8] sm:$0xf]  ;;  %v4789_v39 = vld [vmem:[#allocation8 + $0x294] sm:$0xf0]  ;;  %v3975_v43 = vor.u32 %v4829_v31, %v3974_v30  ;;  %v3544_v30 = vld [vmem:[#allocation8 + $0x78] sm:$0xf0] }
 0x14a   :  { %v762_v46 = vadd.f32 %v750_v17, %v716_v42  ;;  %v3655_v42 = vor.u32 %v4749_v29, %v3654_v26  ;;  %v4825_v49 = vld [vmem:[#allocation8 + $0x3b4] sm:$0xf0]  ;;  %v3766_v15 = vld [vmem:[#allocation8 + $0x228] sm:$0xf]  ;;  %v3704_v26 = vld [vmem:[#allocation8 + $0x1b8] sm:$0xf0] }
 0x14b   :  { %v767_v8 = vmul.f32 0.2, %v759_v58  ;;  %v4777_v16 = vld [vmem:[#allocation8 + $0x234] sm:$0xf0]  ;;  %v3910_v20 = vld [vmem:[#allocation8 + $0x348] sm:$0xf] }
 0x14c   :  { %v770_v54 = vmul.f32 0.2, %v762_v46  ;;  %v729_v55 = vpop.f32.mrf.mxu2  ;;  %1689 = vmatpush.bf16.msrb.mxu1 %v3719_v44  ;;  %v743_v62 = vpop.f32.mrf.mxu3  ;;  %v3638_v44 = vld [vmem:[#allocation8 + $0x128] sm:$0xf]  ;;  %v4813_v21 = vld [vmem:[#allocation8 + $0x354] sm:$0xf0] }
 0x14d   :  { %v730_v59 = vadd.f32 %v729_v55, %v5343_v25  ;;  %1677 = vmatpush.bf16.msrb.mxu0 %v3559_v48  ;;  %v3687_v25 = vor.u32 %v4757_v1, %v3686_v0  ;;  %v775_v22 = vmax.f32 %v759_v58, %v767_v8  ;;  %v3611_v48 = vor.u32 %v4735_v40, %v3608_v41  ;;  %v3592_v55 = vld [vmem:[#allocation8 + $0xd8] sm:$0xf0]  ;;  %v3782_v1 = vld [vmem:[#allocation8 + $0x248] sm:$0xf]  ;;  %v4719_v29 = vld [vmem:[#allocation8 + $0x6c] sm:$0xf] }
 0x14e   :  { %v778_v61 = vmax.f32 %v762_v46, %v770_v54  ;;  %v3815_v46 = vor.u32 %v4789_v39, %v3814_v38  ;;  %v4731_v54 = vld [vmem:[#allocation8 + $0xcc] sm:$0xf]  ;;  %v3639_v56 = vor.u32 %v4745_v45, %v3638_v44  ;;  %v3959_v58 = vor.u32 %v4825_v49, %v3958_v24  ;;  %v3736_v0 = vld [vmem:[#allocation8 + $0x1f8] sm:$0xf0]  ;;  %v3926_v8 = vld [vmem:[#allocation8 + $0x368] sm:$0xf] }
 0x14f   :  { %v744_v47 = vadd.f32 %v743_v62, %v730_v59  ;;  %v4741_v59 = vld [vmem:[#allocation8 + $0x114] sm:$0xf0]  ;;  %v3595_v62 = vor.u32 %v4731_v54, %v3592_v55  ;;  %v4799_v31 = vld [vmem:[#allocation8 + $0x2ec] sm:$0xf]  ;;  %v3894_v38 = vld [vmem:[#allocation8 + $0x328] sm:$0xf]  ;;  %v3547_v40 = vor.u32 %v4719_v29, %v3544_v30 }
 0x150   :  { %v5367_v3 = vpack.c.bf16 %v778_v61, %v774_v34  ;;  %1690 = vmatpush.bf16.msrb.mxu1 %v3703_v60  ;;  %1626 = vmatmul.bf16.vlgmr.msra.gmra.mxu0 %v5356_v12  ;;  %v3942_v60 = vld [vmem:[#allocation8 + $0x388] sm:$0xf]  ;;  %v4821_v34 = vld [vmem:[#allocation8 + $0x394] sm:$0xf0]  ;;  %v3799_v61 = vor.u32 %v4785_v51, %v3798_v50  ;;  %v3623_v53 = vor.u32 %v4741_v59, %v3622_v57  ;;  %v4715_v44 = vld [vmem:[#allocation8 + $0x4c] sm:$0xf] }
 0x151   :  { %v763_v9 = vadd.f32 %v751_v5, %v744_v47  ;;  %1678 = vmatpush.bf16.msrb.mxu0 %v3543_v63  ;;  %v3495_v5 = vor.u32 %v4709_v37, %v3494_v36  ;;  %v4767_v63 = vld [vmem:[#allocation8 + $0x1ec] sm:$0xf]  ;;  %v4781_v47 = vld [vmem:[#allocation8 + $0x254] sm:$0xf0]  ;;  %v3943_v6 = vor.u32 %v4821_v34, %v3942_v60  ;;  %v3911_v36 = vor.u32 %v4813_v21, %v3910_v20  ;;  %v3528_v45 = vld [vmem:[#allocation8 + $0x58] sm:$0xf0] }
 0x152   :  { %1598 = vmatmul.bf16.vlgmr.msrb.gmra.mxu2 %v5367_v3  ;;  %v3739_v7 = vor.u32 %v4767_v63, %v3736_v0  ;;  %v4809_v41 = vld [vmem:[#allocation8 + $0x334] sm:$0xf0]  ;;  %v3878_v50 = vld [vmem:[#allocation8 + $0x308] sm:$0xf]  ;;  %v3531_v54 = vor.u32 %v4715_v44, %v3528_v45  ;;  %v4751_v55 = vld [vmem:[#allocation8 + $0x16c] sm:$0xf] }
 0x153   :  { %v771_v17 = vmul.f32 0.2, %v763_v9  ;;  %1702 = vmatpush.bf16.msrb.mxu2 %v3863_v2  ;;  %v4727_v2 = vld [vmem:[#allocation8 + $0xac] sm:$0xf]  ;;  %v3895_v24 = vor.u32 %v4809_v41, %v3894_v38  ;;  %v4805_v51 = vld [vmem:[#allocation8 + $0x314] sm:$0xf0] }
 0x154   :  { %1691 = vmatpush.bf16.msrb.mxu1 %v3687_v25  ;;  %v3783_v25 = vor.u32 %v4781_v47, %v3782_v1  ;;  %v3579_v11 = vor.u32 %v4727_v2, %v3576_v52  ;;  %v4831_v57 = vld [vmem:[#allocation8 + $0x3ec] sm:$0xf]  ;;  %v3992_v59 = vld [vmem:[#allocation8 + $0x3f8] sm:$0xf0]  ;;  %v3879_v63 = vor.u32 %v4805_v51, %v3878_v50  ;;  %v4078_v41 = vld [vmem:[#allocation10 + $0xa0] sm:$0xf] }
 0x155   :  { %v779_v23 = vmax.f32 %v763_v9, %v771_v17  ;;  %1679 = vmatpush.bf16.msrb.mxu0 %v3527_v13  ;;  %v4817_v9 = vld [vmem:[#allocation8 + $0x374] sm:$0xf0]  ;;  %v4763_v13 = vld [vmem:[#allocation8 + $0x1cc] sm:$0xf]  ;;  %v3512_v34 = vld [vmem:[#allocation8 + $0x38] sm:$0xf0]  ;;  %v3995_v1 = vor.u32 %v4831_v57, %v3992_v59 }
 0x156   :  { %v4723_v17 = vld [vmem:[#allocation8 + $0x8c] sm:$0xf]  ;;  %v3927_v10 = vor.u32 %v4817_v9, %v3926_v8  ;;  %v3723_v19 = vor.u32 %v4763_v13, %v3720_v14  ;;  %v3656_v52 = vld [vmem:[#allocation8 + $0x158] sm:$0xf0]  ;;  %v4110_v14 = vld [vmem:[#allocation10 + $0xe0] sm:$0xf] }
 0x157   :  { %v5371_v33 = vpack.c.bf16 %v779_v23, %v775_v22  ;;  %1703 = vmatpush.bf16.msrb.mxu2 %v3847_v18  ;;  %1640 = vmatmul.bf16.vlgmr.msra.gmra.mxu1 %v5361_v32  ;;  %v3560_v18 = vld [vmem:[#allocation8 + $0x98] sm:$0xf0]  ;;  %v3767_v22 = vor.u32 %v4777_v16, %v3766_v15  ;;  %v4711_v60 = vld [vmem:[#allocation8 + $0x2c] sm:$0xf]  ;;  %v4864_v15 = vld [vmem:[#allocation10 + $0xec] sm:$0xf0] }
 0x158   :  { %1692 = vmatpush.bf16.msrb.mxu1 %v3671_v4  ;;  %v3563_v23 = vor.u32 %v4723_v17, %v3560_v18  ;;  %v4759_v4 = vld [vmem:[#allocation8 + $0x1ac] sm:$0xf]  ;;  %v3515_v47 = vor.u32 %v4711_v60, %v3512_v34  ;;  %v3496_v9 = vld [vmem:[#allocation8 + $0x18] sm:$0xf0]  ;;  %v4062_v50 = vld [vmem:[#allocation10 + $0x80] sm:$0xf] }
 0x159   :  { %1612 = vmatmul.bf16.vlgmr.msrb.gmra.mxu3 %v5371_v33  ;;  %1680 = vmatpush.bf16.msrb.mxu0 %v3511_v28  ;;  %v4773_v28 = vld [vmem:[#allocation8 + $0x214] sm:$0xf0]  ;;  %v3707_v37 = vor.u32 %v4759_v4, %v3704_v26  ;;  %v4747_v2 = vld [vmem:[#allocation8 + $0x14c] sm:$0xf]  ;;  %v3960_v21 = vld [vmem:[#allocation8 + $0x3b8] sm:$0xf0] }
 0x15a   :  { %1716 = vmatpush.bf16.msrb.mxu3 %v3991_v27  ;;  %v3750_v27 = vld [vmem:[#allocation8 + $0x208] sm:$0xf]  ;;  %v4707_v8 = vld [vmem:[#allocation8 + $0xc] sm:$0xf]  ;;  %v3659_v13 = vor.u32 %v4747_v2, %v3656_v52  ;;  %v3800_v4 = vld [vmem:[#allocation8 + $0x278] sm:$0xf0] }
 0x15b   :  { %1704 = vmatpush.bf16.msrb.mxu2 %v3831_v35  ;;  %v3864_v35 = vld [vmem:[#allocation8 + $0x2f8] sm:$0xf0]  ;;  %v3751_v39 = vor.u32 %v4773_v28, %v3750_v27  ;;  %v3499_v17 = vor.u32 %v4707_v8, %v3496_v9  ;;  %v4743_v18 = vld [vmem:[#allocation8 + $0x12c] sm:$0xf]  ;;  %v4094_v26 = vld [vmem:[#allocation10 + $0xc0] sm:$0xf] }
 0x15c   :  { %1693 = vmatpush.bf16.msrb.mxu1 %v3655_v42  ;;  %v4755_v42 = vld [vmem:[#allocation8 + $0x18c] sm:$0xf]  ;;  %v4860_v27 = vld [vmem:[#allocation10 + $0xcc] sm:$0xf0]  ;;  %v3752_v59 = vld [vmem:[#allocation8 + $0x218] sm:$0xf0] }
 0x15d   :  { %1681 = vmatpush.bf16.msrb.mxu0 %v3495_v5  ;;  %v3867_v5 = vor.u32 %v4799_v31, %v3864_v35  ;;  %v4823_v20 = vld [vmem:[#allocation8 + $0x3ac] sm:$0xf]  ;;  %v3624_v31 = vld [vmem:[#allocation8 + $0x118] sm:$0xf0]  ;;  %v4852_v51 = vld [vmem:[#allocation10 + $0x8c] sm:$0xf0] }
 0x15e   :  { %1717 = vmatpush.bf16.msrb.mxu3 %v3975_v43  ;;  %v3688_v43 = vld [vmem:[#allocation8 + $0x198] sm:$0xf0]  ;;  %v3963_v29 = vor.u32 %v4823_v20, %v3960_v21  ;;  %v4739_v30 = vld [vmem:[#allocation8 + $0x10c] sm:$0xf]  ;;  %v4063_v57 = vor.u32 %v4852_v51, %v4062_v50  ;;  %v4848_v2 = vld [vmem:[#allocation10 + $0x6c] sm:$0xf0] }
 0x15f   :  { %1705 = vmatpush.bf16.msrb.mxu2 %v3815_v46  ;;  %v4795_v46 = vld [vmem:[#allocation8 + $0x2cc] sm:$0xf]  ;;  %v3691_v49 = vor.u32 %v4755_v42, %v3688_v43  ;;  %v4856_v42 = vld [vmem:[#allocation10 + $0xac] sm:$0xf0]  ;;  %v3627_v43 = vor.u32 %v4739_v30, %v3624_v31  ;;  %v4238_v52 = vld [vmem:[#allocation10 + $0x1e0] sm:$0xf] }
 0x160   :  { %1694 = vmatpush.bf16.msrb.mxu1 %v3639_v56  ;;  %1682 = vmatmul.bf16.vlgmr.msrb.gmra.mxu0 %v5356_v12  ;;  %v3672_v56 = vld [vmem:[#allocation8 + $0x178] sm:$0xf0]  ;;  %v4779_v38 = vld [vmem:[#allocation8 + $0x24c] sm:$0xf]  ;;  %v4030_v8 = vld [vmem:[#allocation10 + $0x40] sm:$0xf] }
 0x161   :  { %1730 = vmatpush.bf16.msra.mxu0 %v3611_v48  ;;  %v3848_v48 = vld [vmem:[#allocation8 + $0x2d8] sm:$0xf0]  ;;  %v3675_v0 = vor.u32 %v4751_v55, %v3672_v56  ;;  %v4815_v45 = vld [vmem:[#allocation8 + $0x36c] sm:$0xf]  ;;  %v4844_v9 = vld [vmem:[#allocation10 + $0x4c] sm:$0xf0] }
 0x162   :  { %1718 = vmatpush.bf16.msrb.mxu3 %v3959_v58  ;;  %1654 = vmatmul.bf16.vlgmr.msra.gmra.mxu2 %v5367_v3  ;;  %v3851_v58 = vor.u32 %v4795_v46, %v3848_v48  ;;  %v3928_v46 = vld [vmem:[#allocation8 + $0x378] sm:$0xf0]  ;;  %v4775_v48 = vld [vmem:[#allocation8 + $0x22c] sm:$0xf]  ;;  %v4190_v20 = vld [vmem:[#allocation10 + $0x180] sm:$0xf] }
 0x163   :  { %1706 = vmatpush.bf16.msrb.mxu2 %v3799_v61  ;;  %v4791_v61 = vld [vmem:[#allocation8 + $0x2ac] sm:$0xf]  ;;  %v4366_v30 = vld [vmem:[#allocation10 + $0x2e0] sm:$0xf]  ;;  %v4928_v31 = vld [vmem:[#allocation10 + $0x2ec] sm:$0xf0] }
 0x164   :  { %1695 = vmatpush.bf16.msrb.mxu1 %v3623_v53  ;;  %v4827_v53 = vld [vmem:[#allocation8 + $0x3cc] sm:$0xf]  ;;  %v4334_v50 = vld [vmem:[#allocation10 + $0x2a0] sm:$0xf]  ;;  %v4920_v51 = vld [vmem:[#allocation10 + $0x2ac] sm:$0xf0] }
 0x165   :  { %1731 = vmatpush.bf16.msra.mxu0 %v3595_v62  ;;  %v3832_v62 = vld [vmem:[#allocation8 + $0x2b8] sm:$0xf0]  ;;  %v4811_v56 = vld [vmem:[#allocation8 + $0x34c] sm:$0xf] }
 0x166   :  { %1719 = vmatpush.bf16.msrb.mxu3 %v3943_v6  ;;  %v3835_v6 = vor.u32 %v4791_v61, %v3832_v62  ;;  %v4807_v61 = vld [vmem:[#allocation8 + $0x32c] sm:$0xf]  ;;  %v3896_v62 = vld [vmem:[#allocation8 + $0x338] sm:$0xf0] }
 0x167   :  { %1707 = vmatpush.bf16.msrb.mxu2 %v3783_v25  ;;  %1696 = vmatmul.bf16.vlgmr.msrb.gmra.mxu1 %v5361_v32  ;;  %v4787_v25 = vld [vmem:[#allocation8 + $0x28c] sm:$0xf] }
 0x168   :  { %1744 = vmatpush.bf16.msra.mxu1 %v3739_v7  ;;  %v3976_v7 = vld [vmem:[#allocation8 + $0x3d8] sm:$0xf0] }
 0x169   :  { %1732 = vmatpush.bf16.msra.mxu0 %v3579_v11  ;;  %1668 = vmatmul.bf16.vlgmr.msra.gmra.mxu3 %v5371_v33  ;;  %v3816_v11 = vld [vmem:[#allocation8 + $0x298] sm:$0xf0]  ;;  %v3979_v16 = vor.u32 %v4827_v53, %v3976_v7 }
 0x16a   :  { %1720 = vmatpush.bf16.msrb.mxu3 %v3927_v10  ;;  %v3640_v10 = vld [vmem:[#allocation8 + $0x138] sm:$0xf0] }
 0x16b   :  { %1708 = vmatpush.bf16.msrb.mxu2 %v3767_v22  ;;  %v4783_v22 = vld [vmem:[#allocation8 + $0x26c] sm:$0xf]  ;;  %v3643_v28 = vor.u32 %v4743_v18, %v3640_v10  ;;  %v3998_v10 = vld [vmem:[#allocation10] sm:$0xf] }
 0x16c   :  { %1745 = vmatpush.bf16.msra.mxu1 %v3723_v19  ;;  %v3819_v19 = vor.u32 %v4787_v25, %v3816_v11  ;;  %v3803_v35 = vor.u32 %v4783_v22, %v3800_v4  ;;  %v4222_v25 = vld [vmem:[#allocation10 + $0x1c0] sm:$0xf]  ;;  %v4031_v11 = vor.u32 %v4844_v9, %v4030_v8  ;;  %v4884_v22 = vld [vmem:[#allocation10 + $0x18c] sm:$0xf0]  ;;  %v4032_v8 = vld [vmem:[#allocation10 + $0x50] sm:$0xf0] }
 0x16d   :  { %1733 = vmatpush.bf16.msra.mxu0 %v3563_v23  ;;  %v4111_v23 = vor.u32 %v4864_v15, %v4110_v14  ;;  %v4014_v15 = vld [vmem:[#allocation10 + $0x20] sm:$0xf]  ;;  %v4191_v4 = vor.u32 %v4884_v22, %v4190_v20  ;;  %v4890_v9 = vld [vmem:[#allocation10 + $0x1c4] sm:$0xf] }
 0x16e   :  { %1721 = vmatpush.bf16.msrb.mxu3 %v3911_v36  ;;  %v4819_v36 = vld [vmem:[#allocation8 + $0x38c] sm:$0xf]  ;;  %v4270_v20 = vld [vmem:[#allocation10 + $0x220] sm:$0xf] }
 0x16f   :  { %1709 = vmatpush.bf16.msrb.mxu2 %v3751_v39  ;;  %v4095_v39 = vor.u32 %v4860_v27, %v4094_v26  ;;  %v4112_v26 = vld [vmem:[#allocation10 + $0xf0] sm:$0xf0]  ;;  %v4174_v27 = vld [vmem:[#allocation10 + $0x160] sm:$0xf] }
 0x170   :  { %1746 = vmatpush.bf16.msra.mxu1 %v3707_v37  ;;  %v3944_v37 = vld [vmem:[#allocation8 + $0x398] sm:$0xf0] }
 0x171   :  { %1734 = vmatpush.bf16.msra.mxu0 %v3547_v40  ;;  %v3784_v40 = vld [vmem:[#allocation8 + $0x258] sm:$0xf0] }
 0x172   :  { %1722 = vmatpush.bf16.msrb.mxu3 %v3895_v24  ;;  %1710 = vmatmul.bf16.vlgmr.msrb.gmra.mxu2 %v5367_v3  ;;  %v3787_v44 = vor.u32 %v4779_v38, %v3784_v40  ;;  %v4079_v24 = vor.u32 %v4856_v42, %v4078_v41  ;;  %v4096_v38 = vld [vmem:[#allocation10 + $0xd0] sm:$0xf0]  ;;  %v4158_v40 = vld [vmem:[#allocation10 + $0x140] sm:$0xf]  ;;  %v4876_v41 = vld [vmem:[#allocation10 + $0x14c] sm:$0xf0] }
 0x173   :  { %1758 = vmatpush.bf16.msra.mxu2 %v3867_v5  ;;  %v3947_v5 = vor.u32 %v4819_v36, %v3944_v37  ;;  %v4367_v37 = vor.u32 %v4928_v31, %v4366_v30  ;;  %v4350_v42 = vld [vmem:[#allocation10 + $0x2c0] sm:$0xf] }
 0x174   :  { %1747 = vmatpush.bf16.msra.mxu1 %v3691_v49  ;;  %v3768_v49 = vld [vmem:[#allocation8 + $0x238] sm:$0xf0] }
 0x175   :  { %1735 = vmatpush.bf16.msra.mxu0 %v3531_v54  ;;  %v3931_v54 = vor.u32 %v4815_v45, %v3928_v46  ;;  %v3771_v55 = vor.u32 %v4775_v48, %v3768_v49  ;;  %v4080_v45 = vld [vmem:[#allocation10 + $0xb0] sm:$0xf0]  ;;  %v4872_v49 = vld [vmem:[#allocation10 + $0x12c] sm:$0xf0] }
 0x176   :  { %1723 = vmatpush.bf16.msrb.mxu3 %v3879_v63  ;;  %v3899_v63 = vor.u32 %v4807_v61, %v3896_v62  ;;  %v4916_v61 = vld [vmem:[#allocation10 + $0x28c] sm:$0xf0]  ;;  %v4846_v62 = vld [vmem:[#allocation10 + $0x64] sm:$0xf] }
 0x177   :  { %1759 = vmatpush.bf16.msra.mxu2 %v3851_v58  ;;  %v4771_v58 = vld [vmem:[#allocation8 + $0x20c] sm:$0xf] }
 0x178   :  { %1748 = vmatpush.bf16.msra.mxu1 %v3675_v0  ;;  %v3755_v34 = vor.u32 %v4771_v58, %v3752_v59  ;;  %v4803_v0 = vld [vmem:[#allocation8 + $0x30c] sm:$0xf]  ;;  %v4126_v58 = vld [vmem:[#allocation10 + $0x100] sm:$0xf]  ;;  %v4868_v59 = vld [vmem:[#allocation10 + $0x10c] sm:$0xf0] }
 0x179   :  { %1736 = vmatpush.bf16.msra.mxu0 %v3515_v47  ;;  %1724 = vmatmul.bf16.vlgmr.msrb.gmra.mxu3 %v5371_v33 }
 0x17a   :  { %1772 = vmatpush.bf16.msra.mxu3 %v3995_v1  ;;  %v3880_v1 = vld [vmem:[#allocation8 + $0x318] sm:$0xf0] }
 0x17b   :  { %1760 = vmatpush.bf16.msra.mxu2 %v3835_v6  ;;  %v3883_v47 = vor.u32 %v4803_v0, %v3880_v1  ;;  %v4896_v6 = vld [vmem:[#allocation10 + $0x1ec] sm:$0xf0] }
 0x17c   :  { %1749 = vmatpush.bf16.msra.mxu1 %v3659_v13  ;;  %v4239_v7 = vor.u32 %v4896_v6, %v4238_v52  ;;  %v4892_v13 = vld [vmem:[#allocation10 + $0x1cc] sm:$0xf0]  ;;  %v4302_v52 = vld [vmem:[#allocation10 + $0x260] sm:$0xf] }
 0x17d   :  { %1737 = vmatpush.bf16.msra.mxu0 %v3499_v17  ;;  %v4223_v14 = vor.u32 %v4892_v13, %v4222_v25 }
 0x17e   :  { %1773 = vmatpush.bf16.msra.mxu3 %v3979_v16  ;;  %v4206_v16 = vld [vmem:[#allocation10 + $0x1a0] sm:$0xf] }
 0x17f   :  { %1761 = vmatpush.bf16.msra.mxu2 %v3819_v19  ;;  %v4836_v19 = vld [vmem:[#allocation10 + $0xc] sm:$0xf0] }
 0x180   :  { %1750 = vmatpush.bf16.msra.mxu1 %v3643_v28  ;;  %1738 = vmatmul.bf16.vlgmr.msra.gmra.mxu0 %v5356_v12  ;;  %v3912_v12 = vld [vmem:[#allocation8 + $0x358] sm:$0xf0]  ;;  %v3999_v21 = vor.u32 %v4836_v19, %v3998_v10  ;;  %v4880_v28 = vld [vmem:[#allocation10 + $0x16c] sm:$0xf0]  ;;  %v4208_v10 = vld [vmem:[#allocation10 + $0x1b0] sm:$0xf0] }
 0x181   :  { %2584 = vmatpush.bf16.msrb.mxu0 %v4111_v23  ;;  %v3915_v60 = vor.u32 %v4811_v56, %v3912_v12  ;;  %v4862_v23 = vld [vmem:[#allocation10 + $0xe4] sm:$0xf]  ;;  %v4175_v36 = vor.u32 %v4880_v28, %v4174_v27  ;;  %v4064_v12 = vld [vmem:[#allocation10 + $0x90] sm:$0xf0] }
 0x182   :  { %1774 = vmatpush.bf16.msra.mxu3 %v3963_v29  ;;  %v4115_v29 = vor.u32 %v4862_v23, %v4112_v26  ;;  %v4850_v56 = vld [vmem:[#allocation10 + $0x84] sm:$0xf]  ;;  %v4000_v26 = vld [vmem:[#allocation10 + $0x10] sm:$0xf0] }
 0x183   :  { %1762 = vmatpush.bf16.msra.mxu2 %v3803_v35  ;;  %v4858_v35 = vld [vmem:[#allocation10 + $0xc4] sm:$0xf] }
 0x184   :  { %1751 = vmatpush.bf16.msra.mxu1 %v3627_v43  ;;  %v4159_v43 = vor.u32 %v4876_v41, %v4158_v40  ;;  %v4882_v27 = vld [vmem:[#allocation10 + $0x184] sm:$0xf]  ;;  %v4176_v41 = vld [vmem:[#allocation10 + $0x170] sm:$0xf0] }
 0x185   :  { %2585 = vmatpush.bf16.msrb.mxu0 %v4095_v39  ;;  %v4099_v39 = vor.u32 %v4858_v35, %v4096_v38  ;;  %v4254_v35 = vld [vmem:[#allocation10 + $0x200] sm:$0xf]  ;;  %v4878_v40 = vld [vmem:[#allocation10 + $0x164] sm:$0xf] }
 0x186   :  { %1775 = vmatpush.bf16.msra.mxu3 %v3947_v5  ;;  %v4924_v5 = vld [vmem:[#allocation10 + $0x2cc] sm:$0xf0] }
 0x187   :  { %1763 = vmatpush.bf16.msra.mxu2 %v3787_v44  ;;  %1752 = vmatmul.bf16.vlgmr.msra.gmra.mxu1 %v5361_v32  ;;  %v4046_v32 = vld [vmem:[#allocation10 + $0x60] sm:$0xf]  ;;  %v4854_v44 = vld [vmem:[#allocation10 + $0xa4] sm:$0xf]  ;;  %v4351_v46 = vor.u32 %v4924_v5, %v4350_v42 }
 0x188   :  { %v4047_v53 = vor.u32 %v4848_v2, %v4046_v32  ;;  %2598 = vmatpush.bf16.msrb.mxu1 %v4239_v7  ;;  %v4083_v48 = vor.u32 %v4854_v44, %v4080_v45  ;;  %v4240_v32 = vld [vmem:[#allocation10 + $0x1f0] sm:$0xf0]  ;;  %v4842_v7 = vld [vmem:[#allocation10 + $0x44] sm:$0xf] }
 0x189   :  { %2586 = vmatpush.bf16.msrb.mxu0 %v4079_v24  ;;  %v4142_v24 = vld [vmem:[#allocation10 + $0x120] sm:$0xf]  ;;  %v4035_v25 = vor.u32 %v4842_v7, %v4032_v8  ;;  %v4926_v5 = vld [vmem:[#allocation10 + $0x2e4] sm:$0xf]  ;;  %v4368_v44 = vld [vmem:[#allocation10 + $0x2f0] sm:$0xf0] }
 0x18a   :  { %1776 = vmatpush.bf16.msra.mxu3 %v3931_v54  ;;  %v4143_v54 = vor.u32 %v4872_v49, %v4142_v24  ;;  %v4371_v45 = vor.u32 %v4926_v5, %v4368_v44  ;;  %v4874_v49 = vld [vmem:[#allocation10 + $0x144] sm:$0xf]  ;;  %v4128_v8 = vld [vmem:[#allocation10 + $0x110] sm:$0xf0] }
 0x18b   :  { %1764 = vmatpush.bf16.msra.mxu2 %v3771_v55  ;;  %v4335_v55 = vor.u32 %v4920_v51, %v4334_v50  ;;  %v4160_v50 = vld [vmem:[#allocation10 + $0x150] sm:$0xf0]  ;;  %v4922_v51 = vld [vmem:[#allocation10 + $0x2c4] sm:$0xf] }
 0x18c   :  { %2599 = vmatpush.bf16.msrb.mxu1 %v4223_v14  ;;  %v4286_v14 = vld [vmem:[#allocation10 + $0x240] sm:$0xf]  ;;  %v4866_v7 = vld [vmem:[#allocation10 + $0x104] sm:$0xf] }
 0x18d   :  { %2587 = vmatpush.bf16.msrb.mxu0 %v4063_v57  ;;  %v4067_v57 = vor.u32 %v4850_v56, %v4064_v12  ;;  %v5390_v56 = vld [vmem:[%s5442_s6] sm:$0xf] }
 0x18e   :  { %1777 = vmatpush.bf16.msra.mxu3 %v3915_v60  ;;  %v4318_v60 = vld [vmem:[#allocation10 + $0x280] sm:$0xf]  ;;  %v915_v5 = vperm.slane %v5390_v56, 1 }
 0x18f   :  { %1765 = vmatpush.bf16.msra.mxu2 %v3755_v34  ;;  %v4127_v34 = vor.u32 %v4868_v59, %v4126_v58  ;;  %v4319_v0 = vor.u32 %v4916_v61, %v4318_v60  ;;  %v4462_v59 = vld [vmem:[#allocation10 + $0x3a0] sm:$0xf]  ;;  %v4952_v60 = vld [vmem:[#allocation10 + $0x3ac] sm:$0xf0] }
 0x190   :  { %v4463_v61 = vor.u32 %v4952_v60, %v4462_v59 }
 0x191   :  { %2588 = vmatpush.bf16.msrb.mxu0 %v4047_v53  ;;  %v4912_v53 = vld [vmem:[#allocation10 + $0x26c] sm:$0xf0] }
 0x192   :  { %1778 = vmatpush.bf16.msra.mxu3 %v3899_v63  ;;  %1766 = vmatmul.bf16.vlgmr.msra.gmra.mxu2 %v5367_v3  ;;  %v4840_v3 = vld [vmem:[#allocation10 + $0x2c] sm:$0xf0]  ;;  %v4048_v63 = vld [vmem:[#allocation10 + $0x70] sm:$0xf0]  ;;  %v4303_v6 = vor.u32 %v4912_v53, %v4302_v52  ;;  %v4446_v52 = vld [vmem:[#allocation10 + $0x380] sm:$0xf] }
 0x193   :  { %v4015_v17 = vor.u32 %v4840_v3, %v4014_v15  ;;  %2612 = vmatpush.bf16.msrb.mxu2 %v4367_v37  ;;  %v4051_v1 = vor.u32 %v4846_v62, %v4048_v63  ;;  %v4908_v15 = vld [vmem:[#allocation10 + $0x24c] sm:$0xf0]  ;;  %v4494_v37 = vld [vmem:[#allocation10 + $0x3e0] sm:$0xf]  ;;  %v4870_v62 = vld [vmem:[#allocation10 + $0x124] sm:$0xf] }
 0x194   :  { %v4287_v3 = vor.u32 %v4908_v15, %v4286_v14  ;;  %v4144_v63 = vld [vmem:[#allocation10 + $0x130] sm:$0xf0]  ;;  %v4948_v53 = vld [vmem:[#allocation10 + $0x38c] sm:$0xf0] }
 0x195   :  { %2589 = vmatpush.bf16.msrb.mxu0 %v4031_v11  ;;  %v4224_v11 = vld [vmem:[#allocation10 + $0x1d0] sm:$0xf0] }
 0x196   :  { %1779 = vmatpush.bf16.msra.mxu3 %v3883_v47  ;;  %v4894_v47 = vld [vmem:[#allocation10 + $0x1e4] sm:$0xf]  ;;  %v4227_v13 = vor.u32 %v4890_v9, %v4224_v11  ;;  %v4131_v11 = vor.u32 %v4866_v7, %v4128_v8 }
 0x197   :  { %2613 = vmatpush.bf16.msrb.mxu2 %v4351_v46  ;;  %v4243_v2 = vor.u32 %v4894_v47, %v4240_v32  ;;  %v4478_v46 = vld [vmem:[#allocation10 + $0x3c0] sm:$0xf]  ;;  %v4147_v47 = vor.u32 %v4870_v62, %v4144_v63  ;;  %v4336_v32 = vld [vmem:[#allocation10 + $0x2b0] sm:$0xf0]  ;;  %v4914_v9 = vld [vmem:[#allocation10 + $0x284] sm:$0xf] }
 0x198   :  { %v4958_v62 = vld [vmem:[#allocation10 + $0x3e4] sm:$0xf] }
 0x199   :  { %1780 = vmatmul.bf16.vlgmr.msra.gmra.mxu3 %v5371_v33  ;;  %v4888_v33 = vld [vmem:[#allocation10 + $0x1ac] sm:$0xf0]  ;;  %2590 = vmatpush.bf16.msrb.mxu0 %v4015_v17  ;;  %v4016_v17 = vld [vmem:[#allocation10 + $0x30] sm:$0xf0] }
 0x19a   :  { %v4207_v18 = vor.u32 %v4888_v33, %v4206_v16  ;;  %v4838_v16 = vld [vmem:[#allocation10 + $0x24] sm:$0xf] }
 0x19b   :  { %2614 = vmatpush.bf16.msrb.mxu2 %v4335_v55  ;;  %v4886_v33 = vld [vmem:[#allocation10 + $0x1a4] sm:$0xf]  ;;  %v4352_v55 = vld [vmem:[#allocation10 + $0x2d0] sm:$0xf0] }
 0x19c   :  { %2600 = vmatpush.bf16.msrb.mxu1 %v4207_v18  ;;  %v4019_v18 = vor.u32 %v4838_v16, %v4016_v17  ;;  %v4211_v19 = vor.u32 %v4886_v33, %v4208_v10  ;;  %v4430_v17 = vld [vmem:[#allocation10 + $0x360] sm:$0xf]  ;;  %v4944_v33 = vld [vmem:[#allocation10 + $0x36c] sm:$0xf0] }
 0x19d   :  { %2591 = vmatpush.bf16.msrb.mxu0 %v3999_v21  ;;  %v4904_v21 = vld [vmem:[#allocation10 + $0x22c] sm:$0xf0]  ;;  %v4431_v10 = vor.u32 %v4944_v33, %v4430_v17 }
 0x19e   :  { %v4271_v23 = vor.u32 %v4904_v21, %v4270_v20  ;;  %v4304_v20 = vld [vmem:[#allocation10 + $0x270] sm:$0xf0] }
 0x19f   :  { %2615 = vmatpush.bf16.msrb.mxu2 %v4319_v0  ;;  %v4918_v0 = vld [vmem:[#allocation10 + $0x2a4] sm:$0xf] }
 0x1a0   :  { %2601 = vmatpush.bf16.msrb.mxu1 %v4191_v4  ;;  %v4834_v4 = vld [vmem:[#allocation10 + $0x4] sm:$0xf] }
 0x1a1   :  { %2640 = vmatpush.bf16.msra.mxu0 %v4115_v29  ;;  %v4003_v28 = vor.u32 %v4834_v4, %v4000_v26  ;;  %v4192_v29 = vld [vmem:[#allocation10 + $0x190] sm:$0xf0] }
 0x1a2   :  { %v4195_v31 = vor.u32 %v4882_v27, %v4192_v29  ;;  %v4940_v29 = vld [vmem:[#allocation10 + $0x34c] sm:$0xf0] }
 0x1a3   :  { %2616 = vmatpush.bf16.msrb.mxu2 %v4303_v6  ;;  %v4447_v6 = vor.u32 %v4948_v53, %v4446_v52 }
 0x1a4   :  { %2602 = vmatpush.bf16.msrb.mxu1 %v4175_v36  ;;  %v4900_v36 = vld [vmem:[#allocation10 + $0x20c] sm:$0xf0] }
 0x1a5   :  { %2641 = vmatpush.bf16.msra.mxu0 %v4099_v39  ;;  %v4255_v38 = vor.u32 %v4900_v36, %v4254_v35  ;;  %v4960_v39 = vld [vmem:[#allocation10 + $0x3ec] sm:$0xf0]  ;;  %v4288_v35 = vld [vmem:[#allocation10 + $0x250] sm:$0xf0] }
 0x1a6   :  { %v4495_v42 = vor.u32 %v4960_v39, %v4494_v37 }
 0x1a7   :  { %2617 = vmatpush.bf16.msrb.mxu2 %v4287_v3 }
 0x1a8   :  { %2603 = vmatpush.bf16.msrb.mxu1 %v4159_v43  ;;  %v4179_v43 = vor.u32 %v4878_v40, %v4176_v41  ;;  %2626 = vmatpush.bf16.msrb.mxu3 %v4495_v42  ;;  %v4398_v42 = vld [vmem:[#allocation10 + $0x320] sm:$0xf] }
 0x1a9   :  { %2642 = vmatpush.bf16.msra.mxu0 %v4083_v48  ;;  %v4956_v48 = vld [vmem:[#allocation10 + $0x3cc] sm:$0xf0] }
 0x1aa   :  { %v4479_v24 = vor.u32 %v4956_v48, %v4478_v46  ;;  %v4272_v46 = vld [vmem:[#allocation10 + $0x230] sm:$0xf0] }
 0x1ab   :  { %2618 = vmatpush.bf16.msrb.mxu2 %v4271_v23 }
 0x1ac   :  { %2604 = vmatpush.bf16.msrb.mxu1 %v4143_v54  ;;  %v4163_v54 = vor.u32 %v4874_v49, %v4160_v50  ;;  %2627 = vmatpush.bf16.msrb.mxu3 %v4479_v24  ;;  %v4118_v24 = vld [vmem:[#allocation10 + $0xe8] sm:$0xf]  ;;  %v4865_v49 = vld [vmem:[#allocation10 + $0xf4] sm:$0xf0] }
 0x1ad   :  { %2643 = vmatpush.bf16.msra.mxu0 %v4067_v57  ;;  %v4355_v57 = vor.u32 %v4922_v51, %v4352_v55  ;;  %v4119_v59 = vor.u32 %v4865_v49, %v4118_v24  ;;  %v4230_v24 = vld [vmem:[#allocation10 + $0x1c8] sm:$0xf] }
 0x1af   :  { %2619 = vmatpush.bf16.msrb.mxu2 %v4255_v38 }
 0x1b0   :  { %2605 = vmatpush.bf16.msrb.mxu1 %v4127_v34  ;;  %2628 = vmatpush.bf16.msrb.mxu3 %v4463_v61  ;;  %v4256_v61 = vld [vmem:[#allocation10 + $0x210] sm:$0xf0] }
 0x1b1   :  { %2644 = vmatpush.bf16.msra.mxu0 %v4051_v1  ;;  %v914_v1 = vperm.slane %v5390_v56, 0 }
 0x1b3   :  { %2668 = vmatpush.bf16.msra.mxu2 %v4371_v45  ;;  %v4902_v45 = vld [vmem:[#allocation10 + $0x224] sm:$0xf] }
 0x1b4   :  { %2654 = vmatpush.bf16.msra.mxu1 %v4243_v2  ;;  %v4339_v2 = vor.u32 %v4918_v0, %v4336_v32  ;;  %2629 = vmatpush.bf16.msrb.mxu3 %v4447_v6  ;;  %v4275_v50 = vor.u32 %v4902_v45, %v4272_v46  ;;  %v4038_v46 = vld [vmem:[#allocation10 + $0x48] sm:$0xf] }
 0x1b5   :  { %2645 = vmatpush.bf16.msra.mxu0 %v4035_v25 }
 0x1b7   :  { %2669 = vmatpush.bf16.msra.mxu2 %v4355_v57  ;;  %v4932_v57 = vld [vmem:[#allocation10 + $0x30c] sm:$0xf0] }
 0x1b8   :  { %2655 = vmatpush.bf16.msra.mxu1 %v4227_v13  ;;  %v4320_v13 = vld [vmem:[#allocation10 + $0x290] sm:$0xf0]  ;;  %2630 = vmatpush.bf16.msrb.mxu3 %v4431_v10  ;;  %v4070_v10 = vld [vmem:[#allocation10 + $0x88] sm:$0xf] }
 0x1b9   :  { %2646 = vmatpush.bf16.msra.mxu0 %v4019_v18  ;;  %v4323_v15 = vor.u32 %v4914_v9, %v4320_v13  ;;  %v4086_v9 = vld [vmem:[#allocation10 + $0xa8] sm:$0xf]  ;;  %v4857_v13 = vld [vmem:[#allocation10 + $0xb4] sm:$0xf0] }
 0x1bb   :  { %2670 = vmatpush.bf16.msra.mxu2 %v4339_v2  ;;  %v4496_v2 = vld [vmem:[#allocation10 + $0x3f0] sm:$0xf0] }
 0x1bc   :  { %2656 = vmatpush.bf16.msra.mxu1 %v4211_v19  ;;  %v4910_v19 = vld [vmem:[#allocation10 + $0x264] sm:$0xf]  ;;  %v4499_v53 = vor.u32 %v4958_v62, %v4496_v2  ;;  %v4022_v62 = vld [vmem:[#allocation10 + $0x28] sm:$0xf]  ;;  %v4889_v2 = vld [vmem:[#allocation10 + $0x1b4] sm:$0xf0] }
 0x1bd   :  { %v5385_v22 = vpop.f32.mrf.mxu0  ;;  %2647 = vmatpush.bf16.msra.mxu0 %v4003_v28  ;;  %v4307_v4 = vor.u32 %v4910_v19, %v4304_v20  ;;  %v4414_v28 = vld [vmem:[#allocation10 + $0x340] sm:$0xf]  ;;  %v4853_v20 = vld [vmem:[#allocation10 + $0x94] sm:$0xf0] }
 0x1be   :  { %v1572_v25 = vadd.f32 %v5385_v22, %v914_v1 }
 0x1bf   :  { %2671 = vmatpush.bf16.msra.mxu2 %v4323_v15  ;;  %v4480_v15 = vld [vmem:[#allocation10 + $0x3d0] sm:$0xf0] }
 0x1c0   :  { %2657 = vmatpush.bf16.msra.mxu1 %v4195_v31  ;;  %v4906_v31 = vld [vmem:[#allocation10 + $0x244] sm:$0xf] }
 0x1c1   :  { %v4291_v37 = vor.u32 %v4906_v31, %v4288_v35  ;;  %v4071_v35 = vor.u32 %v4853_v20, %v4070_v10  ;;  %v4863_v10 = vld [vmem:[#allocation10 + $0xec] sm:$0xf] }
 0x1c3   :  { %2672 = vmatpush.bf16.msra.mxu2 %v4307_v4 }
 0x1c4   :  { %v1585_v30 = vpop.f32.mrf.mxu1  ;;  %2658 = vmatpush.bf16.msra.mxu1 %v4179_v43  ;;  %v4936_v43 = vld [vmem:[#allocation10 + $0x32c] sm:$0xf0] }
 0x1c5   :  { %v1573_v12 = vpop.f32.mrf.mxu0  ;;  %v1586_v3 = vadd.f32 %v1585_v30, %v1572_v25  ;;  %v4415_v30 = vor.u32 %v4940_v29, %v4414_v28  ;;  %v4399_v44 = vor.u32 %v4936_v43, %v4398_v42 }
 0x1c6   :  { %v1574_v21 = vadd.f32 %v1573_v12, %v914_v1  ;;  %v4382_v12 = vld [vmem:[#allocation10 + $0x300] sm:$0xf]  ;;  %v4102_v1 = vld [vmem:[#allocation10 + $0xc8] sm:$0xf] }
 0x1c7   :  { %2631 = vmatpush.bf16.msrb.mxu3 %v4415_v30  ;;  %2673 = vmatpush.bf16.msra.mxu2 %v4291_v37  ;;  %v4383_v60 = vor.u32 %v4932_v57, %v4382_v12  ;;  %v4054_v30 = vld [vmem:[#allocation10 + $0x68] sm:$0xf] }
 0x1c8   :  { %2659 = vmatpush.bf16.msra.mxu1 %v4163_v54  ;;  %v4246_v37 = vld [vmem:[#allocation10 + $0x1e8] sm:$0xf] }
 0x1cb   :  { %2632 = vmatpush.bf16.msrb.mxu3 %v4399_v44  ;;  %2674 = vmatpush.bf16.msra.mxu2 %v4275_v50 }
 0x1cc   :  { %v1587_v34 = vpop.f32.mrf.mxu1  ;;  %2660 = vmatpush.bf16.msra.mxu1 %v4147_v47  ;;  %v4861_v47 = vld [vmem:[#allocation10 + $0xd4] sm:$0xf0] }
 0x1cd   :  { %v1627_v18 = vpop.f32.mrf.mxu0  ;;  %v1588_v22 = vadd.f32 %v1587_v34, %v1574_v21  ;;  %v4898_v34 = vld [vmem:[#allocation10 + $0x204] sm:$0xf]  ;;  %v4103_v8 = vor.u32 %v4861_v47, %v4102_v1  ;;  %v4214_v1 = vld [vmem:[#allocation10 + $0x1a8] sm:$0xf] }
 0x1ce   :  { %v1628_v63 = vadd.f32 %v1627_v18, %v915_v5  ;;  %v4259_v32 = vor.u32 %v4898_v34, %v4256_v61  ;;  %v4087_v18 = vor.u32 %v4857_v13, %v4086_v9  ;;  %v4950_v21 = vld [vmem:[#allocation10 + $0x3a4] sm:$0xf]  ;;  %v4006_v13 = vld [vmem:[#allocation10 + $0x8] sm:$0xf] }
 0x1cf   :  { %2633 = vmatpush.bf16.msrb.mxu3 %v4383_v60 }
 0x1d0   :  { %2661 = vmatpush.bf16.msra.mxu1 %v4131_v11  ;;  %2675 = vmatpush.bf16.msra.mxu2 %v4259_v32 }
 0x1d3   :  { %2682 = vmatpush.bf16.msra.mxu3 %v4499_v53  ;;  %v4416_v53 = vld [vmem:[#allocation10 + $0x350] sm:$0xf0] }
 0x1d4   :  { %v1641_v26 = vpop.f32.mrf.mxu1 }
 0x1d5   :  { %v1599_v58 = vpop.f32.mrf.mxu2  ;;  %v1629_v51 = vpop.f32.mrf.mxu0  ;;  %v1642_v6 = vadd.f32 %v1641_v26, %v1628_v63  ;;  %v4841_v63 = vld [vmem:[#allocation10 + $0x34] sm:$0xf0] }
 0x1d6   :  { %v1600_v23 = vadd.f32 %v1599_v58, %v1586_v3  ;;  %v1630_v25 = vadd.f32 %v1629_v51, %v915_v5  ;;  %v4893_v51 = vld [vmem:[#allocation10 + $0x1d4] sm:$0xf0] }
 0x1d7   :  { %v4231_v61 = vor.u32 %v4893_v51, %v4230_v24  ;;  %v4925_v24 = vld [vmem:[#allocation10 + $0x2d4] sm:$0xf0]  ;;  %v4088_v51 = vld [vmem:[#allocation10 + $0xb8] sm:$0xf0] }
 0x1dc   :  { %v1613_v14 = vpop.f32.mrf.mxu3  ;;  %v1643_v58 = vpop.f32.mrf.mxu1 }
 0x1dd   :  { %v1601_v16 = vpop.f32.mrf.mxu2  ;;  %v1614_v27 = vadd.f32 %v1613_v14, %v1600_v23  ;;  %v4954_v14 = vld [vmem:[#allocation10 + $0x3c4] sm:$0xf]  ;;  %v1683_v33 = vpop.f32.mrf.mxu0  ;;  %v4464_v23 = vld [vmem:[#allocation10 + $0x3b0] sm:$0xf0] }
 0x1de   :  { %v1602_v36 = vadd.f32 %v1601_v16, %v1588_v22  ;;  %v4483_v3 = vor.u32 %v4954_v14, %v4480_v15  ;;  %v1644_v16 = vadd.f32 %v1643_v58, %v1630_v25  ;;  %v4467_v22 = vor.u32 %v4950_v21, %v4464_v23  ;;  %v4837_v14 = vld [vmem:[#allocation10 + $0x14] sm:$0xf0]  ;;  %v4198_v15 = vld [vmem:[#allocation10 + $0x188] sm:$0xf] }
 0x1df   :  { %v1786_v39 = vmul.f32 0.2, %v1614_v27  ;;  %v4023_v25 = vor.u32 %v4841_v63, %v4022_v62  ;;  %v4072_v62 = vld [vmem:[#allocation10 + $0x98] sm:$0xf0] }
 0x1e0   :  { %2683 = vmatpush.bf16.msra.mxu3 %v4483_v3 }
 0x1e1   :  { %v1794_v54 = vmax.f32 %v1614_v27, %v1786_v39  ;;  %v916_v27 = vperm.slane %v5390_v56, 2 }
 0x1e3   :  { %v1684_v49 = vadd.f32 %v1683_v33, %v916_v27  ;;  %v4400_v33 = vld [vmem:[#allocation10 + $0x330] sm:$0xf0] }
 0x1e4   :  { %v1615_v38 = vpop.f32.mrf.mxu3  ;;  %v1697_v4 = vpop.f32.mrf.mxu1  ;;  %2684 = vmatpush.bf16.msra.mxu3 %v4467_v22  ;;  %v4182_v22 = vld [vmem:[#allocation10 + $0x168] sm:$0xf] }
 0x1e5   :  { %v1616_v40 = vadd.f32 %v1615_v38, %v1602_v36  ;;  %v1655_v41 = vpop.f32.mrf.mxu2  ;;  %v4849_v36 = vld [vmem:[#allocation10 + $0x74] sm:$0xf0]  ;;  %v1685_v12 = vpop.f32.mrf.mxu0 }
 0x1e6   :  { %v1656_v11 = vadd.f32 %v1655_v41, %v1642_v6  ;;  %v4897_v38 = vld [vmem:[#allocation10 + $0x1f4] sm:$0xf0]  ;;  %v4448_v41 = vld [vmem:[#allocation10 + $0x390] sm:$0xf0]  ;;  %v4055_v44 = vor.u32 %v4849_v36, %v4054_v30  ;;  %v1686_v47 = vadd.f32 %v1685_v12, %v916_v27 }
 0x1e7   :  { %v1790_v48 = vmul.f32 0.2, %v1616_v40  ;;  %v4247_v45 = vor.u32 %v4897_v38, %v4246_v37  ;;  %v4881_v27 = vld [vmem:[#allocation10 + $0x174] sm:$0xf0]  ;;  %v4859_v37 = vld [vmem:[#allocation10 + $0xcc] sm:$0xf] }
 0x1e8   :  { %v4929_v36 = vld [vmem:[#allocation10 + $0x2f4] sm:$0xf0]  ;;  %v4104_v38 = vld [vmem:[#allocation10 + $0xd8] sm:$0xf0] }
 0x1e9   :  { %v1798_v55 = vmax.f32 %v1616_v40, %v1790_v48  ;;  %v4946_v40 = vld [vmem:[#allocation10 + $0x384] sm:$0xf]  ;;  %v4845_v48 = vld [vmem:[#allocation10 + $0x54] sm:$0xf0] }
 0x1ea   :  { %v4451_v42 = vor.u32 %v4946_v40, %v4448_v41  ;;  %v4039_v34 = vor.u32 %v4845_v48, %v4038_v46  ;;  %v4877_v46 = vld [vmem:[#allocation10 + $0x154] sm:$0xf0]  ;;  %v4358_v48 = vld [vmem:[#allocation10 + $0x2c8] sm:$0xf] }
 0x1eb   :  { %v5395_v0 = vpack.c.bf16 %v1798_v55, %v1794_v54  ;;  %v4942_v54 = vld [vmem:[#allocation10 + $0x364] sm:$0xf]  ;;  %v4432_v55 = vld [vmem:[#allocation10 + $0x370] sm:$0xf0]  ;;  %v4359_v12 = vor.u32 %v4925_v24, %v4358_v48  ;;  %v4905_v24 = vld [vmem:[#allocation10 + $0x234] sm:$0xf0] }
 0x1ec   :  { %v1669_v52 = vpop.f32.mrf.mxu3  ;;  %2685 = vmatpush.bf16.msra.mxu3 %v4451_v42  ;;  %v4435_v58 = vor.u32 %v4942_v54, %v4432_v55  ;;  %v1699_v60 = vpop.f32.mrf.mxu1  ;;  %v4183_v42 = vor.u32 %v4881_v27, %v4182_v22 }
 0x1ed   :  { %2592 = vmatmul.bf16.vlgmr.msrb.gmra.mxu0 %v5395_v0  ;;  %v1657_v7 = vpop.f32.mrf.mxu2  ;;  %v1670_v17 = vadd.f32 %v1669_v52, %v1656_v11  ;;  %v4938_v52 = vld [vmem:[#allocation10 + $0x344] sm:$0xf]  ;;  %v4215_v11 = vor.u32 %v4889_v2, %v4214_v1  ;;  %v917_v1 = vperm.slane %v5390_v56, 3 }
 0x1ee   :  { %2696 = vmatpush.bf16.msrb.mxu0 %v4119_v59  ;;  %v1658_v19 = vadd.f32 %v1657_v7, %v1644_v16  ;;  %v1698_v59 = vadd.f32 %v1697_v4, %v1684_v49  ;;  %v4419_v7 = vor.u32 %v4938_v52, %v4416_v53  ;;  %v4885_v16 = vld [vmem:[#allocation10 + $0x194] sm:$0xf0]  ;;  %v4007_v4 = vor.u32 %v4837_v14, %v4006_v13  ;;  %v4855_v49 = vld [vmem:[#allocation10 + $0xac] sm:$0xf]  ;;  %v4134_v53 = vld [vmem:[#allocation10 + $0x108] sm:$0xf] }
 0x1ef   :  { %v1787_v28 = vmul.f32 0.2, %v1670_v17  ;;  %v4248_v13 = vld [vmem:[#allocation10 + $0x1f8] sm:$0xf0] }
 0x1f0   :  { %2686 = vmatpush.bf16.msra.mxu3 %v4435_v58  ;;  %v4150_v58 = vld [vmem:[#allocation10 + $0x128] sm:$0xf] }
 0x1f1   :  { %v1795_v43 = vmax.f32 %v1670_v17, %v1787_v28  ;;  %v4934_v17 = vld [vmem:[#allocation10 + $0x324] sm:$0xf]  ;;  %v4374_v28 = vld [vmem:[#allocation10 + $0x2e8] sm:$0xf] }
 0x1f2   :  { %2697 = vmatpush.bf16.msrb.mxu0 %v4103_v8  ;;  %v1700_v8 = vadd.f32 %v1699_v60, %v1686_v47  ;;  %v4403_v20 = vor.u32 %v4934_v17, %v4400_v33  ;;  %v4342_v60 = vld [vmem:[#allocation10 + $0x2a8] sm:$0xf]  ;;  %v4913_v33 = vld [vmem:[#allocation10 + $0x274] sm:$0xf0] }
 0x1f4   :  { %v1671_v26 = vpop.f32.mrf.mxu3  ;;  %2687 = vmatpush.bf16.msra.mxu3 %v4419_v7  ;;  %v4326_v7 = vld [vmem:[#allocation10 + $0x288] sm:$0xf] }
 0x1f5   :  { %v1672_v29 = vadd.f32 %v1671_v26, %v1658_v19  ;;  %v1711_v31 = vpop.f32.mrf.mxu2  ;;  %v4120_v19 = vld [vmem:[#allocation10 + $0xf8] sm:$0xf0]  ;;  %v4199_v26 = vor.u32 %v4885_v16, %v4198_v15 }
 0x1f6   :  { %2698 = vmatpush.bf16.msrb.mxu0 %v4087_v18  ;;  %v1712_v32 = vadd.f32 %v1711_v31, %v1698_v59  ;;  %v4123_v30 = vor.u32 %v4863_v10, %v4120_v19  ;;  %v4930_v31 = vld [vmem:[#allocation10 + $0x304] sm:$0xf]  ;;  %v4873_v59 = vld [vmem:[#allocation10 + $0x134] sm:$0xf0]  ;;  %v4040_v10 = vld [vmem:[#allocation10 + $0x58] sm:$0xf0] }
 0x1f7   :  { %v1791_v39 = vmul.f32 0.2, %v1672_v29  ;;  %v4151_v47 = vor.u32 %v4873_v59, %v4150_v58 }
 0x1f8   :  { %2688 = vmatpush.bf16.msra.mxu3 %v4403_v20 }
 0x1f9   :  { %v1799_v5 = vmax.f32 %v1672_v29, %v1791_v39 }
 0x1fa   :  { %2699 = vmatpush.bf16.msrb.mxu0 %v4071_v35  ;;  %v4384_v35 = vld [vmem:[#allocation10 + $0x310] sm:$0xf0] }
 0x1fb   :  { %v5399_v50 = vpack.c.bf16 %v1799_v5, %v1795_v43  ;;  %v4387_v39 = vor.u32 %v4930_v31, %v4384_v35  ;;  %v4375_v5 = vor.u32 %v4929_v36, %v4374_v28  ;;  %v4294_v28 = vld [vmem:[#allocation10 + $0x248] sm:$0xf]  ;;  %v4909_v35 = vld [vmem:[#allocation10 + $0x254] sm:$0xf0]  ;;  %v4839_v36 = vld [vmem:[#allocation10 + $0x2c] sm:$0xf] }
 0x1fc   :  { %v1725_v57 = vpop.f32.mrf.mxu3 }
 0x1fd   :  { %2606 = vmatmul.bf16.vlgmr.msrb.gmra.mxu1 %v5399_v50  ;;  %2648 = vmatmul.bf16.vlgmr.msra.gmra.mxu0 %v5395_v0  ;;  %v1713_v6 = vpop.f32.mrf.mxu2  ;;  %v1726_v9 = vadd.f32 %v1725_v57, %v1712_v32  ;;  %v1739_v55 = vpop.f32.mrf.mxu0  ;;  %v4091_v57 = vor.u32 %v4855_v49, %v4088_v51  ;;  %v4835_v49 = vld [vmem:[#allocation10 + $0xc] sm:$0xf]  ;;  %v4008_v51 = vld [vmem:[#allocation10 + $0x18] sm:$0xf0] }
 0x1fe   :  { %2700 = vmatpush.bf16.msrb.mxu0 %v4055_v44  ;;  %2710 = vmatpush.bf16.msrb.mxu1 %v4247_v45  ;;  %v1714_v3 = vadd.f32 %v1713_v6, %v1700_v8  ;;  %v4107_v44 = vor.u32 %v4859_v37, %v4104_v38  ;;  %v4166_v45 = vld [vmem:[#allocation10 + $0x148] sm:$0xf]  ;;  %v4869_v6 = vld [vmem:[#allocation10 + $0x114] sm:$0xf0]  ;;  %v1740_v16 = vadd.f32 %v1739_v55, %v917_v1  ;;  %v4024_v37 = vld [vmem:[#allocation10 + $0x38] sm:$0xf0] }
 0x1ff   :  { %v1788_v21 = vmul.f32 0.2, %v1726_v9  ;;  %2689 = vmatpush.bf16.msra.mxu3 %v4387_v39  ;;  %v4167_v54 = vor.u32 %v4877_v46, %v4166_v45  ;;  %v4917_v8 = vld [vmem:[#allocation10 + $0x294] sm:$0xf0]  ;;  %v4135_v14 = vor.u32 %v4869_v6, %v4134_v53  ;;  %v4887_v39 = vld [vmem:[#allocation10 + $0x1ac] sm:$0xf] }
 0x200   :  { %v4327_v56 = vor.u32 %v4917_v8, %v4326_v7  ;;  %v4278_v45 = vld [vmem:[#allocation10 + $0x228] sm:$0xf]  ;;  %v4883_v55 = vld [vmem:[#allocation10 + $0x18c] sm:$0xf]  ;;  %v4376_v53 = vld [vmem:[#allocation10 + $0x2f8] sm:$0xf0] }
 0x201   :  { %v1796_v40 = vmax.f32 %v1726_v9, %v1788_v21  ;;  %v4847_v9 = vld [vmem:[#allocation10 + $0x6c] sm:$0xf]  ;;  %v4279_v59 = vor.u32 %v4905_v24, %v4278_v45 }
 0x202   :  { %2701 = vmatpush.bf16.msrb.mxu0 %v4039_v34  ;;  %2711 = vmatpush.bf16.msrb.mxu1 %v4231_v61  ;;  %v4921_v34 = vld [vmem:[#allocation10 + $0x2b4] sm:$0xf0]  ;;  %v4851_v61 = vld [vmem:[#allocation10 + $0x8c] sm:$0xf] }
 0x203   :  { %v4343_v2 = vor.u32 %v4921_v34, %v4342_v60  ;;  %v4075_v52 = vor.u32 %v4851_v61, %v4072_v62  ;;  %v4891_v21 = vld [vmem:[#allocation10 + $0x1cc] sm:$0xf]  ;;  %v4011_v60 = vor.u32 %v4835_v49, %v4008_v51  ;;  %v4262_v34 = vld [vmem:[#allocation10 + $0x208] sm:$0xf]  ;;  %v4901_v61 = vld [vmem:[#allocation10 + $0x214] sm:$0xf0] }
 0x204   :  { %v1727_v18 = vpop.f32.mrf.mxu3  ;;  %v1753_v63 = vpop.f32.mrf.mxu1  ;;  %v4502_v62 = vld [vmem:[#allocation10 + $0x3e8] sm:$0xf]  ;;  %v4263_v8 = vor.u32 %v4901_v61, %v4262_v34  ;;  %v4907_v24 = vld [vmem:[#allocation10 + $0x24c] sm:$0xf]  ;;  %v4296_v49 = vld [vmem:[#allocation10 + $0x258] sm:$0xf0] }
 0x205   :  { %v1728_v23 = vadd.f32 %v1727_v18, %v1714_v3  ;;  %v4310_v3 = vld [vmem:[#allocation10 + $0x268] sm:$0xf]  ;;  %v4843_v18 = vld [vmem:[#allocation10 + $0x4c] sm:$0xf]  ;;  %v1741_v19 = vpop.f32.mrf.mxu0  ;;  %v4933_v61 = vld [vmem:[#allocation10 + $0x314] sm:$0xf0] }
 0x206   :  { %2702 = vmatpush.bf16.msrb.mxu0 %v4023_v25  ;;  %2712 = vmatpush.bf16.msrb.mxu1 %v4215_v11  ;;  %v4056_v25 = vld [vmem:[#allocation10 + $0x78] sm:$0xf0]  ;;  %v4895_v11 = vld [vmem:[#allocation10 + $0x1ec] sm:$0xf]  ;;  %v4311_v22 = vor.u32 %v4913_v33, %v4310_v3  ;;  %v4043_v27 = vor.u32 %v4843_v18, %v4040_v10  ;;  %v4390_v34 = vld [vmem:[#allocation10 + $0x308] sm:$0xf] }
 0x207   :  { %v1792_v29 = vmul.f32 0.2, %v1728_v23  ;;  %v4059_v15 = vor.u32 %v4847_v9, %v4056_v25  ;;  %v4251_v17 = vor.u32 %v4895_v11, %v4248_v13  ;;  %v4168_v3 = vld [vmem:[#allocation10 + $0x158] sm:$0xf0] }
 0x209   :  { %v1800_v41 = vmax.f32 %v1728_v23, %v1792_v29  ;;  %v4232_v23 = vld [vmem:[#allocation10 + $0x1d8] sm:$0xf0]  ;;  %v1742_v29 = vadd.f32 %v1741_v19, %v917_v1  ;;  %v4470_v19 = vld [vmem:[#allocation10 + $0x3a8] sm:$0xf] }
 0x20a   :  { %2703 = vmatpush.bf16.msrb.mxu0 %v4007_v4  ;;  %2713 = vmatpush.bf16.msrb.mxu1 %v4199_v26  ;;  %v1754_v4 = vadd.f32 %v1753_v63, %v1740_v16  ;;  %v4235_v31 = vor.u32 %v4891_v21, %v4232_v23  ;;  %v4923_v16 = vld [vmem:[#allocation10 + $0x2cc] sm:$0xf]  ;;  %v4152_v23 = vld [vmem:[#allocation10 + $0x138] sm:$0xf0] }
 0x20b   :  { %v5403_v43 = vpack.c.bf16 %v1800_v41, %v1796_v40  ;;  %v4216_v40 = vld [vmem:[#allocation10 + $0x1b8] sm:$0xf0]  ;;  %v4871_v21 = vld [vmem:[#allocation10 + $0x12c] sm:$0xf] }
 0x20c   :  { %v1755_v26 = vpop.f32.mrf.mxu1  ;;  %v4219_v48 = vor.u32 %v4887_v39, %v4216_v40  ;;  %v4438_v40 = vld [vmem:[#allocation10 + $0x368] sm:$0xf] }
 0x20d   :  { %2620 = vmatmul.bf16.vlgmr.msrb.gmra.mxu2 %v5403_v43  ;;  %2662 = vmatmul.bf16.vlgmr.msra.gmra.mxu1 %v5399_v50  ;;  %v1756_v41 = vadd.f32 %v1755_v26, %v1742_v29  ;;  %v4344_v26 = vld [vmem:[#allocation10 + $0x2b8] sm:$0xf0]  ;;  %v4949_v29 = vld [vmem:[#allocation10 + $0x394] sm:$0xf0] }
 0x20e   :  { %2752 = vmatpush.bf16.msra.mxu0 %v4123_v30  ;;  %2714 = vmatpush.bf16.msrb.mxu1 %v4183_v42 }
 0x20f   :  { %2704 = vmatmul.bf16.vlgmr.msrb.gmra.mxu0 %v5395_v0  ;;  %2724 = vmatpush.bf16.msrb.mxu2 %v4375_v5  ;;  %v4295_v5 = vor.u32 %v4909_v35, %v4294_v28  ;;  %v4454_v28 = vld [vmem:[#allocation10 + $0x388] sm:$0xf]  ;;  %v4915_v35 = vld [vmem:[#allocation10 + $0x28c] sm:$0xf] }
 0x212   :  { %2753 = vmatpush.bf16.msra.mxu0 %v4107_v44  ;;  %2715 = vmatpush.bf16.msrb.mxu1 %v4167_v54  ;;  %v4027_v44 = vor.u32 %v4839_v36, %v4024_v37  ;;  %v4328_v36 = vld [vmem:[#allocation10 + $0x298] sm:$0xf0]  ;;  %v4455_v37 = vor.u32 %v4949_v29, %v4454_v28  ;;  %v4964_v28 = vld [vmem:[#allocation11 + $0x10] sm:$0xff] }
 0x213   :  { %2725 = vmatpush.bf16.msrb.mxu2 %v4359_v12  ;;  %v4200_v12 = vld [vmem:[#allocation10 + $0x198] sm:$0xf0]  ;;  %v4331_v39 = vor.u32 %v4915_v35, %v4328_v36  ;;  %v4976_v29 = vld [vmem:[#allocation11 + $0x70] sm:$0xff]  ;;  %v4974_v35 = vld [vmem:[#allocation11 + $0x60] sm:$0xff] }
 0x214   :  { %v4203_v1 = vor.u32 %v4883_v55, %v4200_v12  ;;  %v4406_v55 = vld [vmem:[#allocation10 + $0x328] sm:$0xf]  ;;  %v4937_v12 = vld [vmem:[#allocation10 + $0x334] sm:$0xf0] }
 0x215   :  { %v1767_v32 = vpop.f32.mrf.mxu2 }
 0x216   :  { %2754 = vmatpush.bf16.msra.mxu0 %v4091_v57  ;;  %2716 = vmatpush.bf16.msrb.mxu1 %v4151_v47  ;;  %v1768_v30 = vadd.f32 %v1767_v32, %v1754_v4  ;;  %v4961_v47 = vld [vmem:[#allocation10 + $0x3f4] sm:$0xf0]  ;;  %v4879_v32 = vld [vmem:[#allocation10 + $0x16c] sm:$0xf] }
 0x217   :  { %2726 = vmatpush.bf16.msrb.mxu2 %v4343_v2  ;;  %v4184_v2 = vld [vmem:[#allocation10 + $0x178] sm:$0xf0]  ;;  %v4503_v9 = vor.u32 %v4961_v47, %v4502_v62  ;;  %v4919_v4 = vld [vmem:[#allocation10 + $0x2ac] sm:$0xf] }
 0x218   :  { %v4187_v11 = vor.u32 %v4879_v32, %v4184_v2  ;;  %v4899_v62 = vld [vmem:[#allocation10 + $0x20c] sm:$0xf]  ;;  %v4504_v47 = vld [vmem:[#allocation10 + $0x3f8] sm:$0xf0]  ;;  %v4391_v32 = vor.u32 %v4933_v61, %v4390_v34 }
 0x21a   :  { %2755 = vmatpush.bf16.msra.mxu0 %v4075_v52  ;;  %2717 = vmatpush.bf16.msrb.mxu1 %v4135_v14  ;;  %v4927_v52 = vld [vmem:[#allocation10 + $0x2ec] sm:$0xf]  ;;  %v4486_v14 = vld [vmem:[#allocation10 + $0x3c8] sm:$0xf] }
 0x21b   :  { %2727 = vmatpush.bf16.msrb.mxu2 %v4327_v56  ;;  %v4379_v13 = vor.u32 %v4927_v52, %v4376_v53  ;;  %v4957_v56 = vld [vmem:[#allocation10 + $0x3d4] sm:$0xf0]  ;;  %v4955_v52 = vld [vmem:[#allocation10 + $0x3cc] sm:$0xf]  ;;  %v4488_v53 = vld [vmem:[#allocation10 + $0x3d8] sm:$0xf0] }
 0x21c   :  { %v1781_v20 = vpop.f32.mrf.mxu3  ;;  %v4487_v33 = vor.u32 %v4957_v56, %v4486_v14  ;;  %v4943_v56 = vld [vmem:[#allocation10 + $0x36c] sm:$0xf] }
 0x21d   :  { %v1769_v38 = vpop.f32.mrf.mxu2  ;;  %2676 = vmatmul.bf16.vlgmr.msra.gmra.mxu2 %v5403_v43  ;;  %2718 = vmatmul.bf16.vlgmr.msrb.gmra.mxu1 %v5399_v50  ;;  %v1782_v42 = vadd.f32 %v1781_v20, %v1768_v30  ;;  %v4953_v20 = vld [vmem:[#allocation10 + $0x3b4] sm:$0xf0]  ;;  %v4867_v30 = vld [vmem:[#allocation10 + $0x10c] sm:$0xf] }
 0x21e   :  { %2756 = vmatpush.bf16.msra.mxu0 %v4059_v15  ;;  %2766 = vmatpush.bf16.msra.mxu1 %v4251_v17  ;;  %v1770_v46 = vadd.f32 %v1769_v38, %v1756_v41  ;;  %v4875_v15 = vld [vmem:[#allocation10 + $0x14c] sm:$0xf]  ;;  %v4360_v17 = vld [vmem:[#allocation10 + $0x2d8] sm:$0xf0]  ;;  %v4945_v41 = vld [vmem:[#allocation10 + $0x374] sm:$0xf0] }
 0x21f   :  { %2728 = vmatpush.bf16.msrb.mxu2 %v4311_v22  ;;  %v1789_v57 = vmul.f32 0.2, %v1782_v42  ;;  %v4171_v18 = vor.u32 %v4875_v15, %v4168_v3  ;;  %v4363_v10 = vor.u32 %v4923_v16, %v4360_v17  ;;  %v4471_v22 = vor.u32 %v4953_v20, %v4470_v19  ;;  %v4440_v15 = vld [vmem:[#allocation10 + $0x378] sm:$0xf0]  ;;  %v4939_v16 = vld [vmem:[#allocation10 + $0x34c] sm:$0xf] }
 0x220   :  { %v4443_v3 = vor.u32 %v4943_v56, %v4440_v15  ;;  %v4424_v17 = vld [vmem:[#allocation10 + $0x358] sm:$0xf0]  ;;  %v4931_v20 = vld [vmem:[#allocation10 + $0x30c] sm:$0xf] }
 0x221   :  { %v1797_v6 = vmax.f32 %v1782_v42, %v1789_v57  ;;  %v4911_v42 = vld [vmem:[#allocation10 + $0x26c] sm:$0xf] }
 0x222   :  { %2757 = vmatpush.bf16.msra.mxu0 %v4043_v27  ;;  %2767 = vmatpush.bf16.msra.mxu1 %v4235_v31  ;;  %v4347_v27 = vor.u32 %v4919_v4, %v4344_v26  ;;  %v4136_v31 = vld [vmem:[#allocation10 + $0x118] sm:$0xf0]  ;;  %v4903_v57 = vld [vmem:[#allocation10 + $0x22c] sm:$0xf]  ;;  %v4968_v4 = vld [vmem:[#allocation11 + $0x30] sm:$0xff] }
 0x223   :  { %2729 = vmatpush.bf16.msrb.mxu2 %v4295_v5  ;;  %v4139_v38 = vor.u32 %v4867_v30, %v4136_v31  ;;  %v4312_v5 = vld [vmem:[#allocation10 + $0x278] sm:$0xf0]  ;;  %v4967_v26 = vld [vmem:[#allocation11 + $0x28] sm:$0xff] }
 0x224   :  { %v1783_v54 = vpop.f32.mrf.mxu3  ;;  %v4315_v45 = vor.u32 %v4911_v42, %v4312_v5  ;;  %v4963_v30 = vld [vmem:[#allocation11 + $0x8] sm:$0xff]  ;;  %v4984_v42 = vld [vmem:[#allocation11 + $0xb0] sm:$0xff]  ;;  %v5424_v5 = vld [vmem:[%s5444_s8] sm:$0xf] }
 0x225   :  { %v1784_v58 = vadd.f32 %v1783_v54, %v1770_v46  ;;  %v4422_v46 = vld [vmem:[#allocation10 + $0x348] sm:$0xf]  ;;  %v4299_v54 = vor.u32 %v4907_v24, %v4296_v49  ;;  %v1936_v24 = vperm.slane %v5424_v5, 0 }
 0x226   :  { %2758 = vmatpush.bf16.msra.mxu0 %v4027_v44  ;;  %2768 = vmatpush.bf16.msra.mxu1 %v4219_v48  ;;  %v4439_v44 = vor.u32 %v4945_v41, %v4438_v40  ;;  %v4941_v48 = vld [vmem:[#allocation10 + $0x354] sm:$0xf0]  ;;  %v4975_v31 = vld [vmem:[#allocation11 + $0x68] sm:$0xff]  ;;  %v4972_v41 = vld [vmem:[#allocation11 + $0x50] sm:$0xff] }
 0x227   :  { %v1793_v63 = vmul.f32 0.2, %v1784_v58  ;;  %2730 = vmatpush.bf16.msrb.mxu2 %v4279_v59  ;;  %v4423_v51 = vor.u32 %v4941_v48, %v4422_v46  ;;  %v4407_v59 = vor.u32 %v4937_v12, %v4406_v55  ;;  %v4983_v46 = vld [vmem:[#allocation11 + $0xa8] sm:$0xff] }
 0x229   :  { %v1801_v7 = vmax.f32 %v1784_v58, %v1793_v63  ;;  %v4280_v58 = vld [vmem:[#allocation10 + $0x238] sm:$0xf0] }
 0x22a   :  { %2759 = vmatpush.bf16.msra.mxu0 %v4011_v60  ;;  %2769 = vmatpush.bf16.msra.mxu1 %v4203_v1  ;;  %v4283_v60 = vor.u32 %v4903_v57, %v4280_v58  ;;  %v4264_v63 = vld [vmem:[#allocation10 + $0x218] sm:$0xf0]  ;;  %v4959_v1 = vld [vmem:[#allocation10 + $0x3ec] sm:$0xf] }
 0x22b   :  { %v5411_v25 = vpack.c.bf16 %v1801_v7, %v1797_v6  ;;  %2731 = vmatpush.bf16.msrb.mxu2 %v4263_v8  ;;  %v4507_v2 = vor.u32 %v4959_v1, %v4504_v47  ;;  %v4491_v6 = vor.u32 %v4955_v52, %v4488_v53  ;;  %v4951_v7 = vld [vmem:[#allocation10 + $0x3ac] sm:$0xf]  ;;  %v4472_v8 = vld [vmem:[#allocation10 + $0x3b8] sm:$0xf0]  ;;  %v4980_v1 = vld [vmem:[#allocation11 + $0x90] sm:$0xff] }
 0x22c   :  { %v4981_v58 = vld [vmem:[#allocation11 + $0x98] sm:$0xff]  ;;  %v4979_v53 = vld [vmem:[#allocation11 + $0x88] sm:$0xff] }
 0x22d   :  { %2634 = vmatmul.bf16.vlgmr.msrb.gmra.mxu3 %v5411_v25  ;;  %2760 = vmatmul.bf16.vlgmr.msra.gmra.mxu0 %v5395_v0  ;;  %v4155_v0 = vor.u32 %v4871_v21, %v4152_v23  ;;  %v4969_v23 = vld [vmem:[#allocation11 + $0x38] sm:$0xff] }
 0x22e   :  { %2738 = vmatpush.bf16.msrb.mxu3 %v4503_v9  ;;  %2770 = vmatpush.bf16.msra.mxu1 %v4187_v11  ;;  %v4475_v9 = vor.u32 %v4951_v7, %v4472_v8  ;;  %v4947_v11 = vld [vmem:[#allocation10 + $0x38c] sm:$0xf] }
 0x22f   :  { %2780 = vmatpush.bf16.msra.mxu2 %v4379_v13  ;;  %v4456_v13 = vld [vmem:[#allocation10 + $0x398] sm:$0xf0]  ;;  %3088 = vmatpush.bf16.msrb.mxu0 %v4969_v23 }
 0x230   :  { %2732 = vmatmul.bf16.vlgmr.msrb.gmra.mxu2 %v5403_v43  ;;  %v4459_v14 = vor.u32 %v4947_v11, %v4456_v13  ;;  %v4978_v13 = vld [vmem:[#allocation11 + $0x80] sm:$0xff] }
 0x232   :  { %2739 = vmatpush.bf16.msrb.mxu3 %v4487_v33  ;;  %2771 = vmatpush.bf16.msra.mxu1 %v4171_v18  ;;  %v4427_v33 = vor.u32 %v4939_v16, %v4424_v17  ;;  %v4935_v18 = vld [vmem:[#allocation10 + $0x32c] sm:$0xf] }
 0x233   :  { %2781 = vmatpush.bf16.msra.mxu2 %v4363_v10  ;;  %v4408_v10 = vld [vmem:[#allocation10 + $0x338] sm:$0xf0]  ;;  %3089 = vmatpush.bf16.msrb.mxu0 %v4968_v4 }
 0x234   :  { %v4411_v19 = vor.u32 %v4935_v18, %v4408_v10  ;;  %v4992_v18 = vld [vmem:[#allocation11 + $0xf0] sm:$0xff] }
 0x236   :  { %2740 = vmatpush.bf16.msrb.mxu3 %v4471_v22  ;;  %2772 = vmatpush.bf16.msra.mxu1 %v4155_v0  ;;  %v4966_v22 = vld [vmem:[#allocation11 + $0x20] sm:$0xff]  ;;  %v4965_v0 = vld [vmem:[#allocation11 + $0x18] sm:$0xff] }
 0x237   :  { %2782 = vmatpush.bf16.msra.mxu2 %v4347_v27  ;;  %3090 = vmatpush.bf16.msrb.mxu0 %v4967_v26  ;;  %v4977_v27 = vld [vmem:[#allocation11 + $0x78] sm:$0xff]  ;;  %v4990_v26 = vld [vmem:[#allocation11 + $0xe0] sm:$0xff] }
 0x23a   :  { %2741 = vmatpush.bf16.msrb.mxu3 %v4455_v37  ;;  %2773 = vmatpush.bf16.msra.mxu1 %v4139_v38  ;;  %v4973_v38 = vld [vmem:[#allocation11 + $0x58] sm:$0xff] }
 0x23b   :  { %2783 = vmatpush.bf16.msra.mxu2 %v4331_v39  ;;  %3091 = vmatpush.bf16.msrb.mxu0 %v4966_v22  ;;  %v4985_v39 = vld [vmem:[#allocation11 + $0xb8] sm:$0xff] }
 0x23d   :  { %2690 = vmatmul.bf16.vlgmr.msra.gmra.mxu3 %v5411_v25  ;;  %2774 = vmatmul.bf16.vlgmr.msra.gmra.mxu1 %v5399_v50  ;;  %v4267_v50 = vor.u32 %v4899_v62, %v4264_v63 }
 0x23e   :  { %2742 = vmatpush.bf16.msrb.mxu3 %v4439_v44  ;;  %3102 = vmatpush.bf16.msrb.mxu1 %v4977_v27 }
 0x23f   :  { %2784 = vmatpush.bf16.msra.mxu2 %v4315_v45  ;;  %3092 = vmatpush.bf16.msrb.mxu0 %v4965_v0  ;;  %v4971_v45 = vld [vmem:[#allocation11 + $0x48] sm:$0xff] }
 0x242   :  { %2743 = vmatpush.bf16.msrb.mxu3 %v4423_v51  ;;  %3103 = vmatpush.bf16.msrb.mxu1 %v4976_v29  ;;  %v4970_v51 = vld [vmem:[#allocation11 + $0x40] sm:$0xff] }
 0x243   :  { %2785 = vmatpush.bf16.msra.mxu2 %v4299_v54  ;;  %3093 = vmatpush.bf16.msrb.mxu0 %v4964_v28  ;;  %v4982_v54 = vld [vmem:[#allocation11 + $0xa0] sm:$0xff] }
 0x246   :  { %2744 = vmatpush.bf16.msrb.mxu3 %v4407_v59  ;;  %3104 = vmatpush.bf16.msrb.mxu1 %v4975_v31 }
 0x247   :  { %2786 = vmatpush.bf16.msra.mxu2 %v4283_v60  ;;  %3094 = vmatpush.bf16.msrb.mxu0 %v4963_v30  ;;  %v1938_v30 = vperm.slane %v5424_v5, 2 }
 0x24a   :  { %2745 = vmatpush.bf16.msrb.mxu3 %v4391_v32  ;;  %3105 = vmatpush.bf16.msrb.mxu1 %v4974_v35 }
 0x24b   :  { %2787 = vmatpush.bf16.msra.mxu2 %v4267_v50 }
 0x24d   :  { %2746 = vmatmul.bf16.vlgmr.msrb.gmra.mxu3 %v5411_v25 }
 0x24e   :  { %2794 = vmatpush.bf16.msra.mxu3 %v4507_v2  ;;  %2788 = vmatmul.bf16.vlgmr.msra.gmra.mxu2 %v5403_v43  ;;  %v4392_v43 = vld [vmem:[#allocation10 + $0x318] sm:$0xf0] }
 0x24f   :  { %v4395_v21 = vor.u32 %v4931_v20, %v4392_v43  ;;  %3106 = vmatpush.bf16.msrb.mxu1 %v4973_v38  ;;  %3116 = vmatpush.bf16.msrb.mxu2 %v4985_v39  ;;  %v4991_v20 = vld [vmem:[#allocation11 + $0xe8] sm:$0xff] }
 0x252   :  { %2795 = vmatpush.bf16.msra.mxu3 %v4491_v6  ;;  %v1937_v6 = vperm.slane %v5424_v5, 1 }
 0x253   :  { %3107 = vmatpush.bf16.msrb.mxu1 %v4972_v41  ;;  %3117 = vmatpush.bf16.msrb.mxu2 %v4984_v42  ;;  %v4988_v42 = vld [vmem:[#allocation11 + $0xd0] sm:$0xff] }
 0x256   :  { %2796 = vmatpush.bf16.msra.mxu3 %v4475_v9 }
 0x257   :  { %3108 = vmatpush.bf16.msrb.mxu1 %v4971_v45  ;;  %3118 = vmatpush.bf16.msrb.mxu2 %v4983_v46 }
 0x25a   :  { %2797 = vmatpush.bf16.msra.mxu3 %v4459_v14  ;;  %v4993_v14 = vld [vmem:[#allocation11 + $0xf8] sm:$0xff] }
 0x25b   :  { %3109 = vmatpush.bf16.msrb.mxu1 %v4970_v51  ;;  %3119 = vmatpush.bf16.msrb.mxu2 %v4982_v54  ;;  %v4987_v51 = vld [vmem:[#allocation11 + $0xc8] sm:$0xff] }
 0x25e   :  { %2798 = vmatpush.bf16.msra.mxu3 %v4443_v3 }
 0x25f   :  { %3120 = vmatpush.bf16.msrb.mxu2 %v4981_v58  ;;  %v4986_v58 = vld [vmem:[#allocation11 + $0xc0] sm:$0xff] }
 0x262   :  { %2799 = vmatpush.bf16.msra.mxu3 %v4427_v33 }
 0x263   :  { %3121 = vmatpush.bf16.msrb.mxu2 %v4980_v1 }
 0x266   :  { %2800 = vmatpush.bf16.msra.mxu3 %v4411_v19 }
 0x267   :  { %3122 = vmatpush.bf16.msrb.mxu2 %v4979_v53 }
 0x26a   :  { %2801 = vmatpush.bf16.msra.mxu3 %v4395_v21  ;;  %v2593_v36 = vpop.f32.mrf.mxu0 }
 0x26b   :  { %v2594_v55 = vadd.f32 %v2593_v36, %v1936_v24  ;;  %3123 = vmatpush.bf16.msrb.mxu2 %v4978_v13  ;;  %v4989_v36 = vld [vmem:[#allocation11 + $0xd8] sm:$0xff] }
 0x26d   :  { %2802 = vmatmul.bf16.vlgmr.msra.gmra.mxu3 %v5411_v25  ;;  %v4962_v25 = vld [vmem:[#allocation11] sm:$0xff] }
 0x26e   :  { %3095 = vmatpush.bf16.msrb.mxu0 %v4962_v25  ;;  %3130 = vmatpush.bf16.msrb.mxu3 %v4993_v14 }
 0x272   :  { %v2595_v44 = vpop.f32.mrf.mxu0  ;;  %3131 = vmatpush.bf16.msrb.mxu3 %v4992_v18  ;;  %v5010_v18 = vld [vmem:[%s5446_s10] ss:$0 sm:$0xff]  ;;  %s5209_s10 = smov [#allocation13]  }
 0x273   :  { %v2596_v60 = vadd.f32 %v2595_v44, %v1936_v24  ;;  %s3188_s13 = sshll.u32 %s5209_s10, 4  ;;  %s3189_s13 = int_to_ptr.vmem [resolvable:$true] %s3188_s13 }
 0x276   :  { %3132 = vmatpush.bf16.msrb.mxu3 %v4991_v20 }
 0x27a   :  { %v2607_v37 = vpop.f32.mrf.mxu1  ;;  %v2649_v59 = vpop.f32.mrf.mxu0  ;;  %3133 = vmatpush.bf16.msrb.mxu3 %v4990_v26 }
 0x27b   :  { %v2608_v57 = vadd.f32 %v2607_v37, %v2594_v55  ;;  %v2650_v15 = vadd.f32 %v2649_v59, %v1937_v6 }
 0x27e   :  { %3134 = vmatpush.bf16.msrb.mxu3 %v4989_v36 }
 0x282   :  { %v2609_v48 = vpop.f32.mrf.mxu1  ;;  %v2651_v8 = vpop.f32.mrf.mxu0  ;;  %3135 = vmatpush.bf16.msrb.mxu3 %v4988_v42 }
 0x283   :  { %v2610_v62 = vadd.f32 %v2609_v48, %v2596_v60  ;;  %v2652_v10 = vadd.f32 %v2651_v8, %v1937_v6 }
 0x286   :  { %3136 = vmatpush.bf16.msrb.mxu3 %v4987_v51 }
 0x28a   :  { %v2663_v61 = vpop.f32.mrf.mxu1  ;;  %3137 = vmatpush.bf16.msrb.mxu3 %v4986_v58 }
 0x28b   :  { %v2664_v33 = vadd.f32 %v2663_v61, %v2650_v15 }
 0x28c   :  { %v2705_v23 = vpop.f32.mrf.mxu0 }
 0x28d   :  { %v2706_v37 = vadd.f32 %v2705_v23, %v1938_v30 }
 0x290   :  { %v2621_v40 = vpop.f32.mrf.mxu2 }
 0x291   :  { %v2622_v34 = vadd.f32 %v2621_v40, %v2608_v57 }
 0x292   :  { %v2665_v56 = vpop.f32.mrf.mxu1 }
 0x293   :  { %v2666_v43 = vadd.f32 %v2665_v56, %v2652_v10 }
 0x294   :  { %v2707_v39 = vpop.f32.mrf.mxu0 }
 0x295   :  { %v2708_v45 = vadd.f32 %v2707_v39, %v1938_v30 }
 0x298   :  { %v2623_v49 = vpop.f32.mrf.mxu2 }
 0x299   :  { %v2624_v32 = vadd.f32 %v2623_v49, %v2610_v62 }
 0x29a   :  { %v2719_v22 = vpop.f32.mrf.mxu1 }
 0x29b   :  { %v2720_v41 = vadd.f32 %v2719_v22, %v2706_v37 }
 0x2a0   :  { %v2677_v47 = vpop.f32.mrf.mxu2 }
 0x2a1   :  { %v2678_v19 = vadd.f32 %v2677_v47, %v2664_v33  ;;  %v1939_v47 = vperm.slane %v5424_v5, 3 }
 0x2a2   :  { %v2721_v44 = vpop.f32.mrf.mxu1 }
 0x2a3   :  { %v2722_v24 = vadd.f32 %v2721_v44, %v2708_v45 }
 0x2a8   :  { %v2679_v16 = vpop.f32.mrf.mxu2 }
 0x2a9   :  { %v2680_v4 = vadd.f32 %v2679_v16, %v2666_v43 }
 0x2aa   :  { %v2761_v62 = vpop.f32.mrf.mxu0 }
 0x2b0   :  { %v2635_v12 = vpop.f32.mrf.mxu3 }
 0x2b1   :  { %v2636_v63 = vadd.f32 %v2635_v12, %v2622_v34 }
 0x2b3   :  { %v2808_v2 = vmul.f32 0.2, %v2636_v63  ;;  %v2733_v29 = vpop.f32.mrf.mxu2 }
 0x2b4   :  { %v2734_v46 = vadd.f32 %v2733_v29, %v2720_v41 }
 0x2b5   :  { %v2816_v9 = vmax.f32 %v2636_v63, %v2808_v2 }
 0x2b8   :  { %v2637_v50 = vpop.f32.mrf.mxu3 }
 0x2b9   :  { %v2638_v52 = vadd.f32 %v2637_v50, %v2624_v32  ;;  %v2762_v32 = vadd.f32 %v2761_v62, %v1939_v47  ;;  %v2763_v50 = vpop.f32.mrf.mxu0 }
 0x2ba   :  { %v2775_v63 = vpop.f32.mrf.mxu1  ;;  %v2764_v6 = vadd.f32 %v2763_v50, %v1939_v47 }
 0x2bb   :  { %v2812_v7 = vmul.f32 0.2, %v2638_v52  ;;  %v2735_v48 = vpop.f32.mrf.mxu2 }
 0x2bc   :  { %v2736_v54 = vadd.f32 %v2735_v48, %v2722_v24 }
 0x2bd   :  { %v2820_v11 = vmax.f32 %v2638_v52, %v2812_v7  ;;  %v2776_v52 = vadd.f32 %v2775_v63, %v2762_v32 }
 0x2bf   :  { %v2824_v3 = vpack.c.bf16 %v2820_v11, %v2816_v9 }
 0x2c0   :  { %v2691_v17 = vpop.f32.mrf.mxu3 }
 0x2c1   :  { %3096 = vmatmul.bf16.vlgmr.msrb.gmra.mxu0 %v2824_v3  ;;  %v2692_v21 = vadd.f32 %v2691_v17, %v2678_v19 }
 0x2c2   :  { %v2777_v53 = vpop.f32.mrf.mxu1 }
 0x2c3   :  { %v2809_v27 = vmul.f32 0.2, %v2692_v21  ;;  %v2778_v9 = vadd.f32 %v2777_v53, %v2764_v6 }
 0x2c5   :  { %v2817_v25 = vmax.f32 %v2692_v21, %v2809_v27 }
 0x2c8   :  { %v2693_v0 = vpop.f32.mrf.mxu3 }
 0x2c9   :  { %v2694_v28 = vadd.f32 %v2693_v0, %v2680_v4 }
 0x2cb   :  { %v2813_v31 = vmul.f32 0.2, %v2694_v28 }
 0x2cd   :  { %v2821_v35 = vmax.f32 %v2694_v28, %v2813_v31 }
 0x2cf   :  { %v2825_v38 = vpack.c.bf16 %v2821_v35, %v2817_v25 }
 0x2d0   :  { %v2747_v40 = vpop.f32.mrf.mxu3 }
 0x2d1   :  { %3110 = vmatmul.bf16.vlgmr.msrb.gmra.mxu1 %v2825_v38  ;;  %v2748_v49 = vadd.f32 %v2747_v40, %v2734_v46  ;;  %v2789_v1 = vpop.f32.mrf.mxu2 }
 0x2d2   :  { %v2790_v7 = vadd.f32 %v2789_v1, %v2776_v52 }
 0x2d3   :  { %v2810_v12 = vmul.f32 0.2, %v2748_v49 }
 0x2d5   :  { %v2818_v60 = vmax.f32 %v2748_v49, %v2810_v12 }
 0x2d8   :  { %v2749_v55 = vpop.f32.mrf.mxu3 }
 0x2d9   :  { %v2750_v57 = vadd.f32 %v2749_v55, %v2736_v54  ;;  %v2791_v8 = vpop.f32.mrf.mxu2 }
 0x2da   :  { %v2792_v13 = vadd.f32 %v2791_v8, %v2778_v9 }
 0x2db   :  { %v2814_v59 = vmul.f32 0.2, %v2750_v57 }
 0x2dd   :  { %v2822_v34 = vmax.f32 %v2750_v57, %v2814_v59 }
 0x2df   :  { %v2826_v61 = vpack.c.bf16 %v2822_v34, %v2818_v60 }
 0x2e1   :  { %3124 = vmatmul.bf16.vlgmr.msrb.gmra.mxu2 %v2826_v61 }
 0x2f0   :  { %v2803_v2 = vpop.f32.mrf.mxu3 }
 0x2f1   :  { %v2804_v11 = vadd.f32 %v2803_v2, %v2790_v7 }
 0x2f3   :  { %v2811_v56 = vmul.f32 0.2, %v2804_v11 }
 0x2f5   :  { %v2819_v16 = vmax.f32 %v2804_v11, %v2811_v56 }
 0x2f8   :  { %v2805_v14 = vpop.f32.mrf.mxu3 }
 0x2f9   :  { %v2806_v15 = vadd.f32 %v2805_v14, %v2792_v13 }
 0x2fb   :  { %v2815_v3 = vmul.f32 0.2, %v2806_v15 }
 0x2fd   :  { %v2823_v17 = vmax.f32 %v2806_v15, %v2815_v3 }
 0x2ff   :  { %v2827_v33 = vpack.c.bf16 %v2823_v17, %v2819_v16 }
 0x301   :  { %3138 = vmatmul.bf16.vlgmr.msrb.gmra.mxu3 %v2827_v33 }
 0x33e   :  { %v3097_v5 = vpop.f32.mrf.mxu0 }
 0x33f   :  { %v3098_v20 = vadd.f32 %v5010_v18, %v3097_v5 }
 0x346   :  { %v3099_v23 = vpop.f32.mrf.mxu0 }
 0x347   :  { %v3100_v0 = vadd.f32 %v5010_v18, %v3099_v23 }
 0x34e   :  { %v3111_v10 = vpop.f32.mrf.mxu1 }
 0x34f   :  { %v3112_v43 = vadd.f32 %v3111_v10, %v3098_v20 }
 0x356   :  { %v3113_v22 = vpop.f32.mrf.mxu1 }
 0x357   :  { %v3114_v29 = vadd.f32 %v3113_v22, %v3100_v0 }
 0x364   :  { %v3125_v19 = vpop.f32.mrf.mxu2 }
 0x365   :  { %v3126_v21 = vadd.f32 %v3125_v19, %v3112_v43 }
 0x36c   :  { %v3127_v28 = vpop.f32.mrf.mxu2 }
 0x36d   :  { %v3128_v30 = vadd.f32 %v3127_v28, %v3114_v29 }
 0x384   :  { %v3139_v4 = vpop.f32.mrf.mxu3 }
 0x385   :  { %v3140_v26 = vadd.f32 %v3139_v4, %v3126_v21 }
 0x387   :  { %v4636_v27 = vmul.f32 -1.442695, %v3140_v26 }
 0x389   :  { %5011 = vpow2.f32 %v4636_v27 }
 0x38c   :  { %v3141_v31 = vpop.f32.mrf.mxu3 }
 0x38d   :  { %v3142_v25 = vadd.f32 %v3141_v31, %v3128_v30 }
 0x38f   :  { %v5012_v35 = vpop.eup %5011  ;;  %v4637_v36 = vmul.f32 -1.442695, %v3142_v25 }
 0x390   :  { %v3150_v37 = vadd.f32 1.0, %v5012_v35 }
 0x391   :  { %5013 = vpow2.f32 %v4637_v36 }
 0x392   :  { %5015 = vrcp.f32 %v3150_v37  ;;  %v3163_v44 = vand.u32 2147483648, %v3150_v37  ;;  %v3161_v46 = vand.u32 2147483647, %v3150_v37  ;;  %vm3157_vm5 = vweird.f32 %v3150_v37 }
 0x394   :  { %v3164_v49 = vor.u32 1.1754944e-38, %v3163_v44  ;;  %vm3162_vm7 = vcmp.eq.f32.partialorder %v3161_v46, 8.507059e+37 }
 0x397   :  { %v5014_v38 = vpop.eup %5013 }
 0x398   :  { %v5016_v39 = vpop.eup %5015  ;;  %v3151_v40 = vadd.f32 1.0, %v5014_v38 }
 0x399   :  { %v3153_v41 = vmul.f32 %v5016_v39, %v3150_v37  ;;  %vm3158_vm4 = vweird.f32 %v5016_v39 }
 0x39a   :  { %5017 = vrcp.f32 %v3151_v40  ;;  %vm3159_vm6 = vmor %vm3157_vm5, %vm3158_vm4  ;;  %v3178_v57 = vand.u32 2147483648, %v3151_v40  ;;  %v3176_v59 = vand.u32 2147483647, %v3151_v40  ;;  %vm3172_vm9 = vweird.f32 %v3151_v40 }
 0x39b   :  { %v3154_v42 = vsub.f32 1.0, %v3153_v41 }
 0x39c   :  { %v3179_v34 = vor.u32 1.1754944e-38, %v3178_v57  ;;  %vm3177_vm11 = vcmp.eq.f32.partialorder %v3176_v59, 8.507059e+37 }
 0x39d   :  { %v3155_v45 = vmul.f32 %v5016_v39, %v3154_v42 }
 0x39f   :  { %v3156_v48 = vadd.f32 %v5016_v39, %v3155_v45 }
 0x3a0   :  { %v5018_v24 = vpop.eup %5017 }
 0x3a1   :  { %v3168_v51 = vmul.f32 %v5018_v24, %v3151_v40  ;;  %v3160_v54 = vsel %vm3159_vm6, %v5016_v39, %v3156_v48  ;;  %vm3173_vm8 = vweird.f32 %v5018_v24 }
 0x3a2   :  { %v3165_v55 = vsel %vm3162_vm7, %v3164_v49, %v3160_v54  ;;  %vm3174_vm10 = vmor %vm3172_vm9, %vm3173_vm8 }
 0x3a3   :  { %v3169_v12 = vsub.f32 1.0, %v3168_v51  ;;  %3182 = vst [vmem:[#allocation13] sm:$0xff] %v3165_v55 }
 0x3a5   :  { %v3170_v58 = vmul.f32 %v5018_v24, %v3169_v12 }
 0x3a7   :  { %v3171_v60 = vadd.f32 %v5018_v24, %v3170_v58 }
 0x3a9   :  { %v3175_v61 = vsel %vm3174_vm10, %v5018_v24, %v3171_v60 }
 0x3aa   :  { %v3180_v62 = vsel %vm3177_vm11, %v3179_v34, %v3175_v61 }
 0x3ab   :  { %3183 = vst [vmem:[#allocation13 + $0x8] sm:$0xff] %v3180_v62 }
 0x3ac   :  { %3196 = dma.vmem_to_hbm [thread:$0]  %s3189_s13, 256, %s3191_s16, [#allocation4], %s5210_s0, %s5210_s0, %s5211_s17  }
 0x3ad   :  { %5195 = dma.done.wait [#allocation4], 256  }
 0x3ae   :  { %5196 = vsyncadd [#allocation4], 4294967040 }
 0x3af   :  { %3201 = vsyncpa [#allocation3], 1 }
 0x3b0   :  { %3202 = vsyncpa [#allocation6], 1 }
 0x3b1   :  { %3203 = vsyncpa [#allocation9], 1 }
 0x3b2   :  { %3204 = vsyncpa [#allocation12], 1 }
 0x3b3   :  { %3205 = vsyncpa [#allocation4], 1 }

</bundles_post_ra>
